<compile_context>
chip_gen: v5e
topology: v5e:2x2
jax: 0.10.0
libtpu: 0.0.40
codegen_flags: <defaults>
</compile_context>

<pallas_src>
import jax
import jax.numpy as jnp
from jax.experimental import pallas as pl
from jax.experimental.pallas import tpu as pltpu

K_IN = 12288            # 3 * 64 * 64
N1, N2, N3 = 84, 50, 2
TILE_B_MAX = 128        # batch tile: 128 x 12288 f32 = 6 MiB per buffer


def _round_up(x, m):
    return ((x + m - 1) // m) * m


def simplenet_kernel(x_ref, w1_ref, b1_ref, w2_ref, b2_ref, w3_ref, b3_ref,
                     o_ref):
    # fc1: full-K dot in one shot (K grid collapsed). bf16 operands, f32 acc.
    h1 = jnp.dot(x_ref[...].astype(jnp.bfloat16), w1_ref[...],
                 preferred_element_type=jnp.float32)
    h1 = jnp.maximum(h1 + b1_ref[...], 0.0)
    # fc2 + relu (tiny, f32 weights)
    h2 = jnp.dot(h1, w2_ref[...], preferred_element_type=jnp.float32)
    h2 = jnp.maximum(h2 + b2_ref[...], 0.0)
    # fc3 (no activation)
    h3 = jnp.dot(h2, w3_ref[...], preferred_element_type=jnp.float32)
    o_ref[...] = (h3 + b3_ref[...]).astype(o_ref.dtype)


def simplenet_forward(x_nchw, params):
    w1, b1, w2, b2, w3, b3 = params
    B = x_nchw.shape[0]
    # Glue: flatten NCHW -> (B, 12288), exactly like torch's x.view(-1, 12288).
    xf = x_nchw.reshape(B, K_IN).astype(jnp.float32)

    # Batch tiling: bound VMEM independent of B; pad B up to a tile multiple.
    tile_b = min(TILE_B_MAX, _round_up(B, 8))
    b_pad = _round_up(B, tile_b)
    if b_pad != B:
        xf = jnp.pad(xf, ((0, b_pad - B), (0, 0)))
    n_b = b_pad // tile_b

    full = pl.BlockSpec(memory_space=pltpu.MemorySpace.VMEM)

    flops = 2 * b_pad * (K_IN * N1 + N1 * N2 + N2 * N3)
    # w1 is fetched once (constant block index along the batch axis); x once.
    bytes_accessed = (w1.size * w1.dtype.itemsize + xf.size * 4 +
                      w2.size * 4 + w3.size * 4 +
                      (b1.size + b2.size + b3.size) * 4 + b_pad * N3 * 4)

    out = pl.pallas_call(
        simplenet_kernel,
        out_shape=jax.ShapeDtypeStruct((b_pad, N3), jnp.float32),
        grid_spec=pltpu.PrefetchScalarGridSpec(
            num_scalar_prefetch=0,
            grid=(n_b,),
            in_specs=[
                pl.BlockSpec((tile_b, K_IN), lambda i: (i, 0)),  # x: B-tiled
                pl.BlockSpec((K_IN, N1), lambda i: (0, 0)),      # w1: resident
                full,                                            # b1
                full,                                            # w2
                full,                                            # b2
                full,                                            # w3
                full,                                            # b3
            ],
            out_specs=pl.BlockSpec((tile_b, N3), lambda i: (i, 0)),
        ),
        compiler_params=pltpu.CompilerParams(
            dimension_semantics=("parallel",),      # batch axis -> megacore
            vmem_limit_bytes=40 * 1024 * 1024,
        ),
        cost_estimate=pl.CostEstimate(
            flops=flops, transcendentals=0, bytes_accessed=bytes_accessed),
    )(xf, w1, b1, w2, b2, w3, b3)

    return out[:B] if b_pad != B else out


def init_params(key):
    # Deterministic synthetic init (shapes from SimpleNet.__init__).
    k1, k2, k3, k4, k5, k6 = jax.random.split(key, 6)
    # Stored as (in, out) so the kernel does x @ W + b.
    # w1 (the only large operand) ships as bf16; everything else stays f32.
    w1 = (jax.random.normal(k1, (K_IN, N1), jnp.float32) * 0.02
          ).astype(jnp.bfloat16)
    b1 = jax.random.normal(k2, (1, N1), jnp.float32) * 0.02
    w2 = jax.random.normal(k3, (N1, N2), jnp.float32) * 0.02
    b2 = jax.random.normal(k4, (1, N2), jnp.float32) * 0.02
    w3 = jax.random.normal(k5, (N2, N3), jnp.float32) * 0.02
    b3 = jax.random.normal(k6, (1, N3), jnp.float32) * 0.02
    return (w1, b1, w2, b2, w3, b3)


def reference_forward(x_nchw, params):
    # Pure-JAX reference for correctness checking (same bf16 fc1 path).
    w1, b1, w2, b2, w3, b3 = params
    x = x_nchw.reshape(x_nchw.shape[0], K_IN).astype(jnp.float32)
    h1 = jnp.dot(x.astype(jnp.bfloat16), w1,
                 preferred_element_type=jnp.float32)
    h1 = jnp.maximum(h1 + b1, 0.0)
    h2 = jnp.maximum(h1 @ w2 + b2, 0.0)
    return h2 @ w3 + b3


if __name__ == "__main__":
    key = jax.random.PRNGKey(0)
    k_params, k_x, k_x2 = jax.random.split(key, 3)
    params = init_params(k_params)

    # batch=2, input image 3x64x64 (3*64*64 = 12288, as implied by fc1).
    x = jax.random.normal(k_x, (2, 3, 64, 64), jnp.float32)
    out = jax.block_until_ready(simplenet_forward(x, params))
    ref = reference_forward(x, params)
    assert out.shape == (2, 2), out.shape
    assert jnp.allclose(out, ref, atol=2e-2, rtol=2e-2), (
        "mismatch vs pure-JAX reference (B=2)")

    # Larger batch (not a multiple of the 8-row padding) to exercise batch
    # padding/slicing and the masked lane stores on the (B, 2) output.
    x_big = jax.random.normal(k_x2, (18, 3, 64, 64), jnp.float32)
    out_big = jax.block_until_ready(simplenet_forward(x_big, params))
    ref_big = reference_forward(x_big, params)
    assert out_big.shape == (18, 2), out_big.shape
    assert jnp.allclose(out_big, ref_big, atol=2e-2, rtol=2e-2), (
        "mismatch vs pure-JAX reference (B=18)")

    print("KERNEL_OK")
</pallas_src>

<mosaic_0001>
module attributes {stable_mosaic.version = 11 : i64} {
  func.func @simplenet_kernel(%arg0: i32, %arg1: memref<8x12288xf32, #tpu.memory_space<vmem>>, %arg2: memref<12288x84xbf16, #tpu.memory_space<vmem>>, %arg3: memref<1x84xf32, #tpu.memory_space<vmem>>, %arg4: memref<84x50xf32, #tpu.memory_space<vmem>>, %arg5: memref<1x50xf32, #tpu.memory_space<vmem>>, %arg6: memref<50x2xf32, #tpu.memory_space<vmem>>, %arg7: memref<1x2xf32, #tpu.memory_space<vmem>>, %arg8: memref<8x2xf32, #tpu.memory_space<vmem>>) attributes {dimension_semantics = [#tpu.dimension_semantics<parallel>], iteration_bounds = array<i64: 1>, scalar_prefetch = 0 : i64, scratch_operands = 0 : i64, tpu.core_type = #tpu.core_type<tc>, window_params = [{transform_indices = @transform_0, window_bounds = array<i64: 8, 12288>}, {pipeline_mode = #tpu.pipeline_mode<synchronous>, transform_indices = @transform_1, window_bounds = array<i64: 12288, 84>}, {pipeline_mode = #tpu.pipeline_mode<synchronous>, transform_indices = @transform_2, window_bounds = array<i64: 1, 84>}, {pipeline_mode = #tpu.pipeline_mode<synchronous>, transform_indices = @transform_3, window_bounds = array<i64: 84, 50>}, {pipeline_mode = #tpu.pipeline_mode<synchronous>, transform_indices = @transform_4, window_bounds = array<i64: 1, 50>}, {pipeline_mode = #tpu.pipeline_mode<synchronous>, transform_indices = @transform_5, window_bounds = array<i64: 50, 2>}, {pipeline_mode = #tpu.pipeline_mode<synchronous>, transform_indices = @transform_6, window_bounds = array<i64: 1, 2>}, {transform_indices = @transform_7, window_bounds = array<i64: 8, 2>}]} {
    %c0 = arith.constant 0 : index
    %c0_0 = arith.constant 0 : index
    %0 = vector.load %arg1[%c0, %c0_0] : memref<8x12288xf32, #tpu.memory_space<vmem>>, vector<8x12288xf32>
    %1 = arith.truncf %0 : vector<8x12288xf32> to vector<8x12288xbf16>
    %c0_1 = arith.constant 0 : index
    %c0_2 = arith.constant 0 : index
    %2 = vector.load %arg2[%c0_1, %c0_2] : memref<12288x84xbf16, #tpu.memory_space<vmem>>, vector<12288x84xbf16>
    %cst = arith.constant dense<0.000000e+00> : vector<8x84xf32>
    %3 = tpu.matmul %1, %2, %cst {dimension_numbers = #tpu.dot_dimension_numbers<[1], [0], [0], [1], [0, 0, 1, 1], [], []>} : vector<8x12288xbf16>, vector<12288x84xbf16>, vector<8x84xf32> -> vector<8x84xf32>
    %c0_3 = arith.constant 0 : index
    %c0_4 = arith.constant 0 : index
    %4 = vector.load %arg3[%c0_3, %c0_4] : memref<1x84xf32, #tpu.memory_space<vmem>>, vector<1x84xf32>
    %5 = vector.broadcast %4 : vector<1x84xf32> to vector<8x84xf32>
    %6 = arith.addf %3, %5 : vector<8x84xf32>
    %cst_5 = arith.constant 0.000000e+00 : f32
    %7 = vector.broadcast %cst_5 : f32 to vector<8x84xf32>
    %8 = arith.maximumf %6, %7 : vector<8x84xf32>
    %c0_6 = arith.constant 0 : index
    %c0_7 = arith.constant 0 : index
    %9 = vector.load %arg4[%c0_6, %c0_7] : memref<84x50xf32, #tpu.memory_space<vmem>>, vector<84x50xf32>
    %cst_8 = arith.constant dense<0.000000e+00> : vector<8x50xf32>
    %10 = tpu.matmul %8, %9, %cst_8 {dimension_numbers = #tpu.dot_dimension_numbers<[1], [0], [0], [1], [0, 0, 1, 1], [], []>} : vector<8x84xf32>, vector<84x50xf32>, vector<8x50xf32> -> vector<8x50xf32>
    %c0_9 = arith.constant 0 : index
    %c0_10 = arith.constant 0 : index
    %11 = vector.load %arg5[%c0_9, %c0_10] : memref<1x50xf32, #tpu.memory_space<vmem>>, vector<1x50xf32>
    %12 = vector.broadcast %11 : vector<1x50xf32> to vector<8x50xf32>
    %13 = arith.addf %10, %12 : vector<8x50xf32>
    %cst_11 = arith.constant 0.000000e+00 : f32
    %14 = vector.broadcast %cst_11 : f32 to vector<8x50xf32>
    %15 = arith.maximumf %13, %14 : vector<8x50xf32>
    %c0_12 = arith.constant 0 : index
    %c0_13 = arith.constant 0 : index
    %16 = vector.load %arg6[%c0_12, %c0_13] : memref<50x2xf32, #tpu.memory_space<vmem>>, vector<50x2xf32>
    %cst_14 = arith.constant dense<0.000000e+00> : vector<8x2xf32>
    %17 = tpu.matmul %15, %16, %cst_14 {dimension_numbers = #tpu.dot_dimension_numbers<[1], [0], [0], [1], [0, 0, 1, 1], [], []>} : vector<8x50xf32>, vector<50x2xf32>, vector<8x2xf32> -> vector<8x2xf32>
    %c0_15 = arith.constant 0 : index
    %c0_16 = arith.constant 0 : index
    %18 = vector.load %arg7[%c0_15, %c0_16] : memref<1x2xf32, #tpu.memory_space<vmem>>, vector<1x2xf32>
    %19 = vector.broadcast %18 : vector<1x2xf32> to vector<8x2xf32>
    %20 = arith.addf %17, %19 : vector<8x2xf32>
    %c0_17 = arith.constant 0 : index
    %c0_18 = arith.constant 0 : index
    %21 = vector.load %arg8[%c0_17, %c0_18] : memref<8x2xf32, #tpu.memory_space<vmem>>, vector<8x2xf32>
    tpu.vector_store %arg8[%c0_17, %c0_18], %20 {strides = array<i32>} : memref<8x2xf32, #tpu.memory_space<vmem>>, vector<8x2xf32>,
    return
  }
  func.func @transform_0(%arg0: i32) -> (i32, i32) {
    %c0_i32 = arith.constant 0 : i32
    %c0_i32_0 = arith.constant 0 : i32
    return %arg0, %c0_i32 : i32, i32
  }
  func.func @transform_1(%arg0: i32) -> (i32, i32) {
    %c0_i32 = arith.constant 0 : i32
    %c0_i32_0 = arith.constant 0 : i32
    %c0_i32_1 = arith.constant 0 : i32
    return %c0_i32, %c0_i32_0 : i32, i32
  }
  func.func @transform_2(%arg0: i32) -> (i32, i32) {
    %c0_i32 = arith.constant 0 : i32
    %c0_i32_0 = arith.constant 0 : i32
    %c0_i32_1 = arith.constant 0 : i32
    return %c0_i32, %c0_i32_0 : i32, i32
  }
  func.func @transform_3(%arg0: i32) -> (i32, i32) {
    %c0_i32 = arith.constant 0 : i32
    %c0_i32_0 = arith.constant 0 : i32
    %c0_i32_1 = arith.constant 0 : i32
    return %c0_i32, %c0_i32_0 : i32, i32
  }
  func.func @transform_4(%arg0: i32) -> (i32, i32) {
    %c0_i32 = arith.constant 0 : i32
    %c0_i32_0 = arith.constant 0 : i32
    %c0_i32_1 = arith.constant 0 : i32
    return %c0_i32, %c0_i32_0 : i32, i32
  }
  func.func @transform_5(%arg0: i32) -> (i32, i32) {
    %c0_i32 = arith.constant 0 : i32
    %c0_i32_0 = arith.constant 0 : i32
    %c0_i32_1 = arith.constant 0 : i32
    return %c0_i32, %c0_i32_0 : i32, i32
  }
  func.func @transform_6(%arg0: i32) -> (i32, i32) {
    %c0_i32 = arith.constant 0 : i32
    %c0_i32_0 = arith.constant 0 : i32
    %c0_i32_1 = arith.constant 0 : i32
    return %c0_i32, %c0_i32_0 : i32, i32
  }
  func.func @transform_7(%arg0: i32) -> (i32, i32) {
    %c0_i32 = arith.constant 0 : i32
    %c0_i32_0 = arith.constant 0 : i32
    return %arg0, %c0_i32 : i32, i32
  }
}

</mosaic_0001>

<bundles_post_ra>
// kernel: tpu_custom_call.1
= control target key start
LH: loop header
LB: loop body
LE: loop exit
PB: predicated region body
PF: predicated region fallthrough
CT: control target
= control target key end

     0   :  { %vm7634_vm0 = vcmask 1043456   ;;  %vm7674_vm1 = vcmask 1041408   ;;  %vm7630_vm2 = vcmask 687104   ;;  %vm7670_vm3 = vcmask 408576   ;;  %s14303_s1 = inlined_call_operand.vmem [shape: bf16[12288,84], index: 1, kind: input, shape index: {}]   ;;  %s14304_s0 = inlined_call_operand.vmem [shape: f32[8,12288], index: 0, kind: input, shape index: {}]   ;;  %s14305_s2 = inlined_call_operand.vmem [shape: f32[1,84], index: 2, kind: input, shape index: {}]   ;;  %s14306_s4 = inlined_call_operand.vmem [shape: f32[1,50], index: 4, kind: input, shape index: {}]   ;;  %s14307_s3 = inlined_call_operand.vmem [shape: f32[84,50], index: 3, kind: input, shape index: {}]   ;;  %s14308_s5 = inlined_call_operand.vmem [shape: f32[50,2], index: 5, kind: input, shape index: {}]   ;;  %s14309_s6 = inlined_call_operand.vmem [shape: f32[1,2], index: 6, kind: input, shape index: {}]   ;;  %s14310_s7 = inlined_call_operand.vmem [shape: f32[8,2], index: 7, kind: output, shape index: {}]  }
   0x1   :  { %v10787_v0 = vld [vmem:[%s14303_s1 + $0x38] sm:$0xff]  ;;  %v10786_v4 = vld [vmem:[%s14303_s1 + $0x30] sm:$0xff]  ;;  %v10785_v8 = vld [vmem:[%s14303_s1 + $0x28] sm:$0xff]  ;;  %vm7698_vm4 = vcmask 15360  }
   0x2   :  { %v10795_v1 = vld [vmem:[%s14303_s1 + $0x78] sm:$0xff]  ;;  %6366 = vmatpush.bf16.msra.mxu0 %v10787_v0  ;;  %v10794_v5 = vld [vmem:[%s14303_s1 + $0x70] sm:$0xff]  ;;  %v10793_v9 = vld [vmem:[%s14303_s1 + $0x68] sm:$0xff] }
   0x3   :  { %v10803_v2 = vld [vmem:[%s14303_s1 + $0xb8] sm:$0xff]  ;;  %6379 = vmatpush.bf16.msra.mxu1 %v10795_v1  ;;  %v10802_v6 = vld [vmem:[%s14303_s1 + $0xb0] sm:$0xff]  ;;  %v10801_v10 = vld [vmem:[%s14303_s1 + $0xa8] sm:$0xff] }
   0x4   :  { %v10811_v3 = vld [vmem:[%s14303_s1 + $0xf8] sm:$0xff]  ;;  %6392 = vmatpush.bf16.msra.mxu2 %v10803_v2  ;;  %v10810_v7 = vld [vmem:[%s14303_s1 + $0xf0] sm:$0xff]  ;;  %v10809_v11 = vld [vmem:[%s14303_s1 + $0xe8] sm:$0xff] }
   0x5   :  { %6405 = vmatpush.bf16.msra.mxu3 %v10811_v3  ;;  %v10784_v12 = vld [vmem:[%s14303_s1 + $0x20] sm:$0xff]  ;;  %v10783_v16 = vld [vmem:[%s14303_s1 + $0x18] sm:$0xff]  ;;  %v10782_v20 = vld [vmem:[%s14303_s1 + $0x10] sm:$0xff] }
   0x6   :  { %6367 = vmatpush.bf16.msra.mxu0 %v10786_v4  ;;  %v10792_v13 = vld [vmem:[%s14303_s1 + $0x60] sm:$0xff]  ;;  %v10791_v17 = vld [vmem:[%s14303_s1 + $0x58] sm:$0xff]  ;;  %v10790_v21 = vld [vmem:[%s14303_s1 + $0x50] sm:$0xff] }
   0x7   :  { %6380 = vmatpush.bf16.msra.mxu1 %v10794_v5  ;;  %v10800_v14 = vld [vmem:[%s14303_s1 + $0xa0] sm:$0xff]  ;;  %v10799_v18 = vld [vmem:[%s14303_s1 + $0x98] sm:$0xff]  ;;  %v10798_v22 = vld [vmem:[%s14303_s1 + $0x90] sm:$0xff] }
   0x8   :  { %6393 = vmatpush.bf16.msra.mxu2 %v10802_v6  ;;  %v10808_v15 = vld [vmem:[%s14303_s1 + $0xe0] sm:$0xff]  ;;  %v10807_v19 = vld [vmem:[%s14303_s1 + $0xd8] sm:$0xff]  ;;  %v10806_v23 = vld [vmem:[%s14303_s1 + $0xd0] sm:$0xff] }
   0x9   :  { %6406 = vmatpush.bf16.msra.mxu3 %v10810_v7  ;;  %v10781_v24 = vld [vmem:[%s14303_s1 + $0x8] sm:$0xff]  ;;  %v10780_v28 = vld [vmem:[%s14303_s1] sm:$0xff]  ;;  %v10819_v32 = vld [vmem:[%s14303_s1 + $0x138] sm:$0xff] }
   0xa   :  { %6368 = vmatpush.bf16.msra.mxu0 %v10785_v8  ;;  %v10789_v25 = vld [vmem:[%s14303_s1 + $0x48] sm:$0xff]  ;;  %v10788_v29 = vld [vmem:[%s14303_s1 + $0x40] sm:$0xff]  ;;  %v28_v33 = vld [vmem:[%s14304_s0 + $0x10] sm:$0xff] }
   0xb   :  { %6381 = vmatpush.bf16.msra.mxu1 %v10793_v9  ;;  %v10797_v26 = vld [vmem:[%s14303_s1 + $0x88] sm:$0xff]  ;;  %v10796_v30 = vld [vmem:[%s14303_s1 + $0x80] sm:$0xff]  ;;  %v10827_v35 = vld [vmem:[%s14303_s1 + $0x178] sm:$0xff]  ;;  %v124_v40 = vpack.c.bf16 %v28_v33, %v28_v33 }
   0xc   :  { %6394 = vmatpush.bf16.msra.mxu2 %v10801_v10  ;;  %v10805_v27 = vld [vmem:[%s14303_s1 + $0xc8] sm:$0xff]  ;;  %v10804_v31 = vld [vmem:[%s14303_s1 + $0xc0] sm:$0xff]  ;;  %v29_v36 = vld [vmem:[%s14304_s0 + $0x18] sm:$0xff] }
   0xd   :  { %6407 = vmatpush.bf16.msra.mxu3 %v10809_v11  ;;  %v26_v34 = vld [vmem:[%s14304_s0] sm:$0xff]  ;;  %v27_v37 = vld [vmem:[%s14304_s0 + $0x8] sm:$0xff]  ;;  %v10835_v38 = vld [vmem:[%s14303_s1 + $0x1b8] sm:$0xff]  ;;  %v125_v42 = vpack.c.bf16 %v29_v36, %v29_v36 }
   0xe   :  { %6369 = vmatpush.bf16.msra.mxu0 %v10784_v12  ;;  %v10843_v39 = vld [vmem:[%s14303_s1 + $0x1f8] sm:$0xff]  ;;  %v122_v41 = vpack.c.bf16 %v26_v34, %v26_v34  ;;  %v123_v43 = vpack.c.bf16 %v27_v37, %v27_v37  ;;  %v10818_v44 = vld [vmem:[%s14303_s1 + $0x130] sm:$0xff]  ;;  %v10817_v48 = vld [vmem:[%s14303_s1 + $0x128] sm:$0xff] }
   0xf   :  { %6382 = vmatpush.bf16.msra.mxu1 %v10792_v13  ;;  %v10826_v45 = vld [vmem:[%s14303_s1 + $0x170] sm:$0xff]  ;;  %v10825_v49 = vld [vmem:[%s14303_s1 + $0x168] sm:$0xff]  ;;  %v10816_v52 = vld [vmem:[%s14303_s1 + $0x120] sm:$0xff] }
  0x10   :  { %6395 = vmatpush.bf16.msra.mxu2 %v10800_v14  ;;  %v10834_v46 = vld [vmem:[%s14303_s1 + $0x1b0] sm:$0xff]  ;;  %v10833_v50 = vld [vmem:[%s14303_s1 + $0x1a8] sm:$0xff]  ;;  %v10824_v53 = vld [vmem:[%s14303_s1 + $0x160] sm:$0xff] }
  0x11   :  { %6408 = vmatpush.bf16.msra.mxu3 %v10808_v15  ;;  %v10842_v47 = vld [vmem:[%s14303_s1 + $0x1f0] sm:$0xff]  ;;  %v10841_v51 = vld [vmem:[%s14303_s1 + $0x1e8] sm:$0xff]  ;;  %v10832_v54 = vld [vmem:[%s14303_s1 + $0x1a0] sm:$0xff] }
  0x12   :  { %6370 = vmatpush.bf16.msra.mxu0 %v10783_v16  ;;  %v10840_v55 = vld [vmem:[%s14303_s1 + $0x1e0] sm:$0xff]  ;;  %v10815_v56 = vld [vmem:[%s14303_s1 + $0x118] sm:$0xff]  ;;  %v10814_v60 = vld [vmem:[%s14303_s1 + $0x110] sm:$0xff] }
  0x13   :  { %6383 = vmatpush.bf16.msra.mxu1 %v10791_v17  ;;  %v10823_v57 = vld [vmem:[%s14303_s1 + $0x158] sm:$0xff]  ;;  %v10822_v61 = vld [vmem:[%s14303_s1 + $0x150] sm:$0xff]  ;;  %v10813_v0 = vld [vmem:[%s14303_s1 + $0x108] sm:$0xff] }
  0x14   :  { %6396 = vmatpush.bf16.msra.mxu2 %v10799_v18  ;;  %v10831_v58 = vld [vmem:[%s14303_s1 + $0x198] sm:$0xff]  ;;  %v10830_v62 = vld [vmem:[%s14303_s1 + $0x190] sm:$0xff]  ;;  %v10821_v1 = vld [vmem:[%s14303_s1 + $0x148] sm:$0xff] }
  0x15   :  { %6409 = vmatpush.bf16.msra.mxu3 %v10807_v19  ;;  %v10839_v59 = vld [vmem:[%s14303_s1 + $0x1d8] sm:$0xff]  ;;  %v10838_v63 = vld [vmem:[%s14303_s1 + $0x1d0] sm:$0xff]  ;;  %v10829_v2 = vld [vmem:[%s14303_s1 + $0x188] sm:$0xff] }
  0x16   :  { %6371 = vmatpush.bf16.msra.mxu0 %v10782_v20  ;;  %v10837_v3 = vld [vmem:[%s14303_s1 + $0x1c8] sm:$0xff]  ;;  %v10812_v4 = vld [vmem:[%s14303_s1 + $0x100] sm:$0xff]  ;;  %v10851_v8 = vld [vmem:[%s14303_s1 + $0x238] sm:$0xff] }
  0x17   :  { %6384 = vmatpush.bf16.msra.mxu1 %v10790_v21  ;;  %v10820_v5 = vld [vmem:[%s14303_s1 + $0x140] sm:$0xff]  ;;  %v32_v9 = vld [vmem:[%s14304_s0 + $0x30] sm:$0xff]  ;;  %v10859_v11 = vld [vmem:[%s14303_s1 + $0x278] sm:$0xff] }
  0x18   :  { %6397 = vmatpush.bf16.msra.mxu2 %v10798_v22  ;;  %v10828_v6 = vld [vmem:[%s14303_s1 + $0x180] sm:$0xff]  ;;  %v33_v12 = vld [vmem:[%s14304_s0 + $0x38] sm:$0xff]  ;;  %v31_v13 = vld [vmem:[%s14304_s0 + $0x28] sm:$0xff]  ;;  %v128_v16 = vpack.c.bf16 %v32_v9, %v32_v9 }
  0x19   :  { %6410 = vmatpush.bf16.msra.mxu3 %v10806_v23  ;;  %v10836_v7 = vld [vmem:[%s14303_s1 + $0x1c0] sm:$0xff]  ;;  %v10867_v14 = vld [vmem:[%s14303_s1 + $0x2b8] sm:$0xff]  ;;  %v129_v18 = vpack.c.bf16 %v33_v12, %v33_v12  ;;  %v127_v19 = vpack.c.bf16 %v31_v13, %v31_v13  ;;  %v10850_v20 = vld [vmem:[%s14303_s1 + $0x230] sm:$0xff] }
  0x1a   :  { %6372 = vmatpush.bf16.msra.mxu0 %v10781_v24  ;;  %v30_v10 = vld [vmem:[%s14304_s0 + $0x20] sm:$0xff]  ;;  %v10875_v15 = vld [vmem:[%s14303_s1 + $0x2f8] sm:$0xff]  ;;  %v10858_v21 = vld [vmem:[%s14303_s1 + $0x270] sm:$0xff] }
  0x1b   :  { %6385 = vmatpush.bf16.msra.mxu1 %v10789_v25  ;;  %v126_v17 = vpack.c.bf16 %v30_v10, %v30_v10  ;;  %v10866_v22 = vld [vmem:[%s14303_s1 + $0x2b0] sm:$0xff]  ;;  %v10849_v24 = vld [vmem:[%s14303_s1 + $0x228] sm:$0xff]  ;;  %v10855_v33 = vld [vmem:[%s14303_s1 + $0x258] sm:$0xff] }
  0x1c   :  { %6398 = vmatpush.bf16.msra.mxu2 %v10797_v26  ;;  %v10874_v23 = vld [vmem:[%s14303_s1 + $0x2f0] sm:$0xff]  ;;  %v10857_v25 = vld [vmem:[%s14303_s1 + $0x268] sm:$0xff]  ;;  %v10863_v34 = vld [vmem:[%s14303_s1 + $0x298] sm:$0xff] }
  0x1d   :  { %6411 = vmatpush.bf16.msra.mxu3 %v10805_v27  ;;  %v10865_v26 = vld [vmem:[%s14303_s1 + $0x2a8] sm:$0xff]  ;;  %v10846_v36 = vld [vmem:[%s14303_s1 + $0x210] sm:$0xff]  ;;  %v10887_v9 = vld [vmem:[%s14303_s1 + $0x358] sm:$0xff] }
  0x1e   :  { %6373 = vmatpush.bf16.msra.mxu0 %v10780_v28  ;;  %v10873_v27 = vld [vmem:[%s14303_s1 + $0x2e8] sm:$0xff]  ;;  %v10848_v28 = vld [vmem:[%s14303_s1 + $0x220] sm:$0xff]  ;;  %v10854_v37 = vld [vmem:[%s14303_s1 + $0x250] sm:$0xff] }
  0x1f   :  { %6386 = vmatpush.bf16.msra.mxu1 %v10788_v29  ;;  %v10856_v29 = vld [vmem:[%s14303_s1 + $0x260] sm:$0xff]  ;;  %v10895_v10 = vld [vmem:[%s14303_s1 + $0x398] sm:$0xff]  ;;  %v10878_v12 = vld [vmem:[%s14303_s1 + $0x310] sm:$0xff] }
  0x20   :  { %6399 = vmatpush.bf16.msra.mxu2 %v10796_v30  ;;  %v10864_v30 = vld [vmem:[%s14303_s1 + $0x2a0] sm:$0xff]  ;;  %v10886_v13 = vld [vmem:[%s14303_s1 + $0x350] sm:$0xff] }
  0x21   :  { %6412 = vmatpush.bf16.msra.mxu3 %v10804_v31  ;;  %6374 = vmatmul.bf16.vlgmr.msra.gmra.mxu0 %v122_v41  ;;  %v10872_v31 = vld [vmem:[%s14303_s1 + $0x2e0] sm:$0xff]  ;;  %v10853_v41 = vld [vmem:[%s14303_s1 + $0x248] sm:$0xff] }
  0x22   :  { %6418 = vmatpush.bf16.msrb.mxu0 %v10819_v32  ;;  %6387 = vmatmul.bf16.vlgmr.msra.gmra.mxu1 %v123_v43  ;;  %v10847_v32 = vld [vmem:[%s14303_s1 + $0x218] sm:$0xff]  ;;  %v10869_v43 = vld [vmem:[%s14303_s1 + $0x2c8] sm:$0xff] }
  0x23   :  { %6431 = vmatpush.bf16.msrb.mxu1 %v10827_v35  ;;  %6400 = vmatmul.bf16.vlgmr.msra.gmra.mxu2 %v124_v40  ;;  %v10871_v35 = vld [vmem:[%s14303_s1 + $0x2d8] sm:$0xff]  ;;  %v10845_v40 = vld [vmem:[%s14303_s1 + $0x208] sm:$0xff] }
  0x24   :  { %6444 = vmatpush.bf16.msrb.mxu2 %v10835_v38  ;;  %6413 = vmatmul.bf16.vlgmr.msra.gmra.mxu3 %v125_v42  ;;  %v10862_v38 = vld [vmem:[%s14303_s1 + $0x290] sm:$0xff]  ;;  %v10861_v42 = vld [vmem:[%s14303_s1 + $0x288] sm:$0xff] }
  0x25   :  { %6457 = vmatpush.bf16.msrb.mxu3 %v10843_v39  ;;  %v10870_v39 = vld [vmem:[%s14303_s1 + $0x2d0] sm:$0xff] }
  0x26   :  { %6419 = vmatpush.bf16.msrb.mxu0 %v10818_v44  ;;  %v10844_v44 = vld [vmem:[%s14303_s1 + $0x200] sm:$0xff] }
  0x27   :  { %6432 = vmatpush.bf16.msrb.mxu1 %v10826_v45  ;;  %v10852_v45 = vld [vmem:[%s14303_s1 + $0x240] sm:$0xff] }
  0x28   :  { %6445 = vmatpush.bf16.msrb.mxu2 %v10834_v46  ;;  %v10860_v46 = vld [vmem:[%s14303_s1 + $0x280] sm:$0xff] }
  0x29   :  { %6458 = vmatpush.bf16.msrb.mxu3 %v10842_v47  ;;  %v10868_v47 = vld [vmem:[%s14303_s1 + $0x2c0] sm:$0xff] }
  0x2a   :  { %6420 = vmatpush.bf16.msrb.mxu0 %v10817_v48  ;;  %v10883_v48 = vld [vmem:[%s14303_s1 + $0x338] sm:$0xff] }
  0x2b   :  { %6433 = vmatpush.bf16.msrb.mxu1 %v10825_v49  ;;  %v34_v49 = vld [vmem:[%s14304_s0 + $0x40] sm:$0xff] }
  0x2c   :  { %6446 = vmatpush.bf16.msrb.mxu2 %v10833_v50  ;;  %v36_v50 = vld [vmem:[%s14304_s0 + $0x50] sm:$0xff] }
  0x2d   :  { %6459 = vmatpush.bf16.msrb.mxu3 %v10841_v51  ;;  %v10891_v51 = vld [vmem:[%s14303_s1 + $0x378] sm:$0xff] }
  0x2e   :  { %6421 = vmatpush.bf16.msrb.mxu0 %v10816_v52  ;;  %v35_v52 = vld [vmem:[%s14304_s0 + $0x48] sm:$0xff] }
  0x2f   :  { %6434 = vmatpush.bf16.msrb.mxu1 %v10824_v53  ;;  %v37_v53 = vld [vmem:[%s14304_s0 + $0x58] sm:$0xff] }
  0x30   :  { %6447 = vmatpush.bf16.msrb.mxu2 %v10832_v54  ;;  %v10899_v54 = vld [vmem:[%s14303_s1 + $0x3b8] sm:$0xff] }
  0x31   :  { %6460 = vmatpush.bf16.msrb.mxu3 %v10840_v55  ;;  %v10907_v55 = vld [vmem:[%s14303_s1 + $0x3f8] sm:$0xff] }
  0x32   :  { %6422 = vmatpush.bf16.msrb.mxu0 %v10815_v56  ;;  %v130_v56 = vpack.c.bf16 %v34_v49, %v34_v49  ;;  %v10919_v49 = vld [vmem:[%s14303_s1 + $0x458] sm:$0xff] }
  0x33   :  { %6435 = vmatpush.bf16.msrb.mxu1 %v10823_v57  ;;  %v132_v57 = vpack.c.bf16 %v36_v50, %v36_v50  ;;  %v10927_v50 = vld [vmem:[%s14303_s1 + $0x498] sm:$0xff] }
  0x34   :  { %6448 = vmatpush.bf16.msrb.mxu2 %v10831_v58  ;;  %v131_v58 = vpack.c.bf16 %v35_v52, %v35_v52  ;;  %v10910_v52 = vld [vmem:[%s14303_s1 + $0x410] sm:$0xff] }
  0x35   :  { %6461 = vmatpush.bf16.msrb.mxu3 %v10839_v59  ;;  %v133_v59 = vpack.c.bf16 %v37_v53, %v37_v53  ;;  %v10918_v53 = vld [vmem:[%s14303_s1 + $0x450] sm:$0xff] }
  0x36   :  { %6423 = vmatpush.bf16.msrb.mxu0 %v10814_v60  ;;  %v10882_v60 = vld [vmem:[%s14303_s1 + $0x330] sm:$0xff] }
  0x37   :  { %6436 = vmatpush.bf16.msrb.mxu1 %v10822_v61  ;;  %v10890_v61 = vld [vmem:[%s14303_s1 + $0x370] sm:$0xff] }
  0x38   :  { %6449 = vmatpush.bf16.msrb.mxu2 %v10830_v62  ;;  %v10898_v62 = vld [vmem:[%s14303_s1 + $0x3b0] sm:$0xff] }
  0x39   :  { %6462 = vmatpush.bf16.msrb.mxu3 %v10838_v63  ;;  %v10906_v63 = vld [vmem:[%s14303_s1 + $0x3f0] sm:$0xff] }
  0x3a   :  { %6424 = vmatpush.bf16.msrb.mxu0 %v10813_v0  ;;  %v10881_v0 = vld [vmem:[%s14303_s1 + $0x328] sm:$0xff] }
  0x3b   :  { %6437 = vmatpush.bf16.msrb.mxu1 %v10821_v1  ;;  %v10889_v1 = vld [vmem:[%s14303_s1 + $0x368] sm:$0xff] }
  0x3c   :  { %6450 = vmatpush.bf16.msrb.mxu2 %v10829_v2  ;;  %v10897_v2 = vld [vmem:[%s14303_s1 + $0x3a8] sm:$0xff] }
  0x3d   :  { %6463 = vmatpush.bf16.msrb.mxu3 %v10837_v3  ;;  %v10905_v3 = vld [vmem:[%s14303_s1 + $0x3e8] sm:$0xff] }
  0x3e   :  { %6425 = vmatpush.bf16.msrb.mxu0 %v10812_v4  ;;  %v10880_v4 = vld [vmem:[%s14303_s1 + $0x320] sm:$0xff] }
  0x3f   :  { %6438 = vmatpush.bf16.msrb.mxu1 %v10820_v5  ;;  %v10888_v5 = vld [vmem:[%s14303_s1 + $0x360] sm:$0xff] }
  0x40   :  { %6451 = vmatpush.bf16.msrb.mxu2 %v10828_v6  ;;  %v10896_v6 = vld [vmem:[%s14303_s1 + $0x3a0] sm:$0xff] }
  0x41   :  { %6464 = vmatpush.bf16.msrb.mxu3 %v10836_v7  ;;  %6426 = vmatmul.bf16.vlgmr.msrb.gmra.mxu0 %v126_v17  ;;  %v10904_v7 = vld [vmem:[%s14303_s1 + $0x3e0] sm:$0xff]  ;;  %v10885_v17 = vld [vmem:[%s14303_s1 + $0x348] sm:$0xff] }
  0x42   :  { %6470 = vmatpush.bf16.msra.mxu0 %v10851_v8  ;;  %6439 = vmatmul.bf16.vlgmr.msrb.gmra.mxu1 %v127_v19  ;;  %v10879_v8 = vld [vmem:[%s14303_s1 + $0x318] sm:$0xff]  ;;  %v10901_v19 = vld [vmem:[%s14303_s1 + $0x3c8] sm:$0xff] }
  0x43   :  { %6483 = vmatpush.bf16.msra.mxu1 %v10859_v11  ;;  %6452 = vmatmul.bf16.vlgmr.msrb.gmra.mxu2 %v128_v16  ;;  %v10903_v11 = vld [vmem:[%s14303_s1 + $0x3d8] sm:$0xff]  ;;  %v10877_v16 = vld [vmem:[%s14303_s1 + $0x308] sm:$0xff] }
  0x44   :  { %6496 = vmatpush.bf16.msra.mxu2 %v10867_v14  ;;  %6465 = vmatmul.bf16.vlgmr.msrb.gmra.mxu3 %v129_v18  ;;  %v10894_v14 = vld [vmem:[%s14303_s1 + $0x390] sm:$0xff]  ;;  %v10893_v18 = vld [vmem:[%s14303_s1 + $0x388] sm:$0xff] }
  0x45   :  { %6509 = vmatpush.bf16.msra.mxu3 %v10875_v15  ;;  %v10902_v15 = vld [vmem:[%s14303_s1 + $0x3d0] sm:$0xff] }
  0x46   :  { %6471 = vmatpush.bf16.msra.mxu0 %v10850_v20  ;;  %v10876_v20 = vld [vmem:[%s14303_s1 + $0x300] sm:$0xff] }
  0x47   :  { %6484 = vmatpush.bf16.msra.mxu1 %v10858_v21  ;;  %v10884_v21 = vld [vmem:[%s14303_s1 + $0x340] sm:$0xff] }
  0x48   :  { %6497 = vmatpush.bf16.msra.mxu2 %v10866_v22  ;;  %v10892_v22 = vld [vmem:[%s14303_s1 + $0x380] sm:$0xff] }
  0x49   :  { %6510 = vmatpush.bf16.msra.mxu3 %v10874_v23  ;;  %v10900_v23 = vld [vmem:[%s14303_s1 + $0x3c0] sm:$0xff] }
  0x4a   :  { %6472 = vmatpush.bf16.msra.mxu0 %v10849_v24  ;;  %v10915_v24 = vld [vmem:[%s14303_s1 + $0x438] sm:$0xff] }
  0x4b   :  { %6485 = vmatpush.bf16.msra.mxu1 %v10857_v25  ;;  %v38_v25 = vld [vmem:[%s14304_s0 + $0x60] sm:$0xff] }
  0x4c   :  { %6498 = vmatpush.bf16.msra.mxu2 %v10865_v26  ;;  %v40_v26 = vld [vmem:[%s14304_s0 + $0x70] sm:$0xff] }
  0x4d   :  { %6511 = vmatpush.bf16.msra.mxu3 %v10873_v27  ;;  %v10923_v27 = vld [vmem:[%s14303_s1 + $0x478] sm:$0xff] }
  0x4e   :  { %6473 = vmatpush.bf16.msra.mxu0 %v10848_v28  ;;  %v39_v28 = vld [vmem:[%s14304_s0 + $0x68] sm:$0xff] }
  0x4f   :  { %6486 = vmatpush.bf16.msra.mxu1 %v10856_v29  ;;  %v41_v29 = vld [vmem:[%s14304_s0 + $0x78] sm:$0xff] }
  0x50   :  { %6499 = vmatpush.bf16.msra.mxu2 %v10864_v30  ;;  %v10931_v30 = vld [vmem:[%s14303_s1 + $0x4b8] sm:$0xff] }
  0x51   :  { %6512 = vmatpush.bf16.msra.mxu3 %v10872_v31  ;;  %v10939_v31 = vld [vmem:[%s14303_s1 + $0x4f8] sm:$0xff] }
  0x52   :  { %6474 = vmatpush.bf16.msra.mxu0 %v10847_v32  ;;  %v134_v32 = vpack.c.bf16 %v38_v25, %v38_v25 }
  0x53   :  { %6487 = vmatpush.bf16.msra.mxu1 %v10855_v33  ;;  %v136_v33 = vpack.c.bf16 %v40_v26, %v40_v26  ;;  %v10960_v26 = vld [vmem:[%s14303_s1 + $0x5a0] sm:$0xff] }
  0x54   :  { %6500 = vmatpush.bf16.msra.mxu2 %v10863_v34  ;;  %v135_v34 = vpack.c.bf16 %v39_v28, %v39_v28 }
  0x55   :  { %6513 = vmatpush.bf16.msra.mxu3 %v10871_v35  ;;  %v137_v35 = vpack.c.bf16 %v41_v29, %v41_v29  ;;  %v10943_v29 = vld [vmem:[%s14303_s1 + $0x518] sm:$0xff] }
  0x56   :  { %6475 = vmatpush.bf16.msra.mxu0 %v10846_v36  ;;  %v10914_v36 = vld [vmem:[%s14303_s1 + $0x430] sm:$0xff] }
  0x57   :  { %6488 = vmatpush.bf16.msra.mxu1 %v10854_v37  ;;  %v10922_v37 = vld [vmem:[%s14303_s1 + $0x470] sm:$0xff] }
  0x58   :  { %6501 = vmatpush.bf16.msra.mxu2 %v10862_v38  ;;  %v10930_v38 = vld [vmem:[%s14303_s1 + $0x4b0] sm:$0xff] }
  0x59   :  { %6514 = vmatpush.bf16.msra.mxu3 %v10870_v39  ;;  %v10938_v39 = vld [vmem:[%s14303_s1 + $0x4f0] sm:$0xff] }
  0x5a   :  { %6476 = vmatpush.bf16.msra.mxu0 %v10845_v40  ;;  %v10913_v40 = vld [vmem:[%s14303_s1 + $0x428] sm:$0xff] }
  0x5b   :  { %6489 = vmatpush.bf16.msra.mxu1 %v10853_v41  ;;  %v10921_v41 = vld [vmem:[%s14303_s1 + $0x468] sm:$0xff] }
  0x5c   :  { %6502 = vmatpush.bf16.msra.mxu2 %v10861_v42  ;;  %v10929_v42 = vld [vmem:[%s14303_s1 + $0x4a8] sm:$0xff] }
  0x5d   :  { %6515 = vmatpush.bf16.msra.mxu3 %v10869_v43  ;;  %v10937_v43 = vld [vmem:[%s14303_s1 + $0x4e8] sm:$0xff] }
  0x5e   :  { %6477 = vmatpush.bf16.msra.mxu0 %v10844_v44  ;;  %v10912_v44 = vld [vmem:[%s14303_s1 + $0x420] sm:$0xff] }
  0x5f   :  { %6490 = vmatpush.bf16.msra.mxu1 %v10852_v45  ;;  %v10920_v45 = vld [vmem:[%s14303_s1 + $0x460] sm:$0xff] }
  0x60   :  { %6503 = vmatpush.bf16.msra.mxu2 %v10860_v46  ;;  %v10928_v46 = vld [vmem:[%s14303_s1 + $0x4a0] sm:$0xff] }
  0x61   :  { %6516 = vmatpush.bf16.msra.mxu3 %v10868_v47  ;;  %6478 = vmatmul.bf16.vlgmr.msra.gmra.mxu0 %v130_v56  ;;  %v10936_v47 = vld [vmem:[%s14303_s1 + $0x4e0] sm:$0xff]  ;;  %v10909_v56 = vld [vmem:[%s14303_s1 + $0x408] sm:$0xff] }
  0x62   :  { %6522 = vmatpush.bf16.msrb.mxu0 %v10883_v48  ;;  %6491 = vmatmul.bf16.vlgmr.msra.gmra.mxu1 %v131_v58  ;;  %v10911_v48 = vld [vmem:[%s14303_s1 + $0x418] sm:$0xff]  ;;  %v10925_v58 = vld [vmem:[%s14303_s1 + $0x488] sm:$0xff] }
  0x63   :  { %6535 = vmatpush.bf16.msrb.mxu1 %v10891_v51  ;;  %6504 = vmatmul.bf16.vlgmr.msra.gmra.mxu2 %v132_v57  ;;  %v10935_v51 = vld [vmem:[%s14303_s1 + $0x4d8] sm:$0xff]  ;;  %v10917_v57 = vld [vmem:[%s14303_s1 + $0x448] sm:$0xff] }
  0x64   :  { %6548 = vmatpush.bf16.msrb.mxu2 %v10899_v54  ;;  %6517 = vmatmul.bf16.vlgmr.msra.gmra.mxu3 %v133_v59  ;;  %v10926_v54 = vld [vmem:[%s14303_s1 + $0x490] sm:$0xff]  ;;  %v10933_v59 = vld [vmem:[%s14303_s1 + $0x4c8] sm:$0xff] }
  0x65   :  { %6561 = vmatpush.bf16.msrb.mxu3 %v10907_v55  ;;  %v10934_v55 = vld [vmem:[%s14303_s1 + $0x4d0] sm:$0xff] }
  0x66   :  { %6523 = vmatpush.bf16.msrb.mxu0 %v10882_v60  ;;  %v10908_v60 = vld [vmem:[%s14303_s1 + $0x400] sm:$0xff] }
  0x67   :  { %6536 = vmatpush.bf16.msrb.mxu1 %v10890_v61  ;;  %v10916_v61 = vld [vmem:[%s14303_s1 + $0x440] sm:$0xff] }
  0x68   :  { %6549 = vmatpush.bf16.msrb.mxu2 %v10898_v62  ;;  %v10924_v62 = vld [vmem:[%s14303_s1 + $0x480] sm:$0xff] }
  0x69   :  { %6562 = vmatpush.bf16.msrb.mxu3 %v10906_v63  ;;  %v10932_v63 = vld [vmem:[%s14303_s1 + $0x4c0] sm:$0xff] }
  0x6a   :  { %6524 = vmatpush.bf16.msrb.mxu0 %v10881_v0  ;;  %v10947_v0 = vld [vmem:[%s14303_s1 + $0x538] sm:$0xff] }
  0x6b   :  { %6537 = vmatpush.bf16.msrb.mxu1 %v10889_v1  ;;  %v42_v1 = vld [vmem:[%s14304_s0 + $0x80] sm:$0xff] }
  0x6c   :  { %6550 = vmatpush.bf16.msrb.mxu2 %v10897_v2  ;;  %v44_v2 = vld [vmem:[%s14304_s0 + $0x90] sm:$0xff] }
  0x6d   :  { %6563 = vmatpush.bf16.msrb.mxu3 %v10905_v3  ;;  %v10955_v3 = vld [vmem:[%s14303_s1 + $0x578] sm:$0xff] }
  0x6e   :  { %6525 = vmatpush.bf16.msrb.mxu0 %v10880_v4  ;;  %v43_v4 = vld [vmem:[%s14304_s0 + $0x88] sm:$0xff] }
  0x6f   :  { %6538 = vmatpush.bf16.msrb.mxu1 %v10888_v5  ;;  %v45_v5 = vld [vmem:[%s14304_s0 + $0x98] sm:$0xff] }
  0x70   :  { %6551 = vmatpush.bf16.msrb.mxu2 %v10896_v6  ;;  %v10963_v6 = vld [vmem:[%s14303_s1 + $0x5b8] sm:$0xff] }
  0x71   :  { %6564 = vmatpush.bf16.msrb.mxu3 %v10904_v7  ;;  %v10971_v7 = vld [vmem:[%s14303_s1 + $0x5f8] sm:$0xff] }
  0x72   :  { %6526 = vmatpush.bf16.msrb.mxu0 %v10879_v8  ;;  %v138_v8 = vpack.c.bf16 %v42_v1, %v42_v1  ;;  %v10978_v1 = vld [vmem:[%s14303_s1 + $0x630] sm:$0xff] }
  0x73   :  { %6539 = vmatpush.bf16.msrb.mxu1 %v10887_v9  ;;  %v140_v9 = vpack.c.bf16 %v44_v2, %v44_v2  ;;  %v10986_v2 = vld [vmem:[%s14303_s1 + $0x670] sm:$0xff] }
  0x74   :  { %6552 = vmatpush.bf16.msrb.mxu2 %v10895_v10  ;;  %v139_v10 = vpack.c.bf16 %v43_v4, %v43_v4  ;;  %v11002_v4 = vld [vmem:[%s14303_s1 + $0x6f0] sm:$0xff] }
  0x75   :  { %6565 = vmatpush.bf16.msrb.mxu3 %v10903_v11  ;;  %v141_v11 = vpack.c.bf16 %v45_v5, %v45_v5  ;;  %v10977_v5 = vld [vmem:[%s14303_s1 + $0x628] sm:$0xff] }
  0x76   :  { %6527 = vmatpush.bf16.msrb.mxu0 %v10878_v12  ;;  %v10946_v12 = vld [vmem:[%s14303_s1 + $0x530] sm:$0xff] }
  0x77   :  { %6540 = vmatpush.bf16.msrb.mxu1 %v10886_v13  ;;  %v10954_v13 = vld [vmem:[%s14303_s1 + $0x570] sm:$0xff] }
  0x78   :  { %6553 = vmatpush.bf16.msrb.mxu2 %v10894_v14  ;;  %v10962_v14 = vld [vmem:[%s14303_s1 + $0x5b0] sm:$0xff] }
  0x79   :  { %6566 = vmatpush.bf16.msrb.mxu3 %v10902_v15  ;;  %v10970_v15 = vld [vmem:[%s14303_s1 + $0x5f0] sm:$0xff] }
  0x7a   :  { %6528 = vmatpush.bf16.msrb.mxu0 %v10877_v16  ;;  %v10945_v16 = vld [vmem:[%s14303_s1 + $0x528] sm:$0xff] }
  0x7b   :  { %6541 = vmatpush.bf16.msrb.mxu1 %v10885_v17  ;;  %v10953_v17 = vld [vmem:[%s14303_s1 + $0x568] sm:$0xff] }
  0x7c   :  { %6554 = vmatpush.bf16.msrb.mxu2 %v10893_v18  ;;  %v11548_v18 = vld [vmem:[%s14305_s2] ss:$0 sm:$0xff] }
  0x7d   :  { %6567 = vmatpush.bf16.msrb.mxu3 %v10901_v19  ;;  %v10961_v19 = vld [vmem:[%s14303_s1 + $0x5a8] sm:$0xff] }
  0x7e   :  { %6529 = vmatpush.bf16.msrb.mxu0 %v10876_v20  ;;  %v10969_v20 = vld [vmem:[%s14303_s1 + $0x5e8] sm:$0xff] }
  0x7f   :  { %6542 = vmatpush.bf16.msrb.mxu1 %v10884_v21 }
  0x80   :  { %6555 = vmatpush.bf16.msrb.mxu2 %v10892_v22  ;;  %v10944_v22 = vld [vmem:[%s14303_s1 + $0x520] sm:$0xff] }
  0x81   :  { %6568 = vmatpush.bf16.msrb.mxu3 %v10900_v23  ;;  %6530 = vmatmul.bf16.vlgmr.msrb.gmra.mxu0 %v134_v32  ;;  %v10952_v23 = vld [vmem:[%s14303_s1 + $0x560] sm:$0xff]  ;;  %v10967_v32 = vld [vmem:[%s14303_s1 + $0x5d8] sm:$0xff] }
  0x82   :  { %6574 = vmatpush.bf16.msra.mxu0 %v10915_v24  ;;  %6543 = vmatmul.bf16.vlgmr.msrb.gmra.mxu1 %v135_v34 }
  0x83   :  { %6587 = vmatpush.bf16.msra.mxu1 %v10923_v27  ;;  %6556 = vmatmul.bf16.vlgmr.msrb.gmra.mxu2 %v136_v33  ;;  %v10968_v27 = vld [vmem:[%s14303_s1 + $0x5e0] sm:$0xff] }
  0x84   :  { %6600 = vmatpush.bf16.msra.mxu2 %v10931_v30  ;;  %6569 = vmatmul.bf16.vlgmr.msrb.gmra.mxu3 %v137_v35  ;;  %v10951_v30 = vld [vmem:[%s14303_s1 + $0x558] sm:$0xff] }
  0x85   :  { %6613 = vmatpush.bf16.msra.mxu3 %v10939_v31  ;;  %v10959_v31 = vld [vmem:[%s14303_s1 + $0x598] sm:$0xff] }
  0x86   :  { %6575 = vmatpush.bf16.msra.mxu0 %v10914_v36 }
  0x87   :  { %6588 = vmatpush.bf16.msra.mxu1 %v10922_v37  ;;  %v10942_v37 = vld [vmem:[%s14303_s1 + $0x510] sm:$0xff] }
  0x88   :  { %6601 = vmatpush.bf16.msra.mxu2 %v10930_v38  ;;  %v10950_v38 = vld [vmem:[%s14303_s1 + $0x550] sm:$0xff] }
  0x89   :  { %6614 = vmatpush.bf16.msra.mxu3 %v10938_v39 }
  0x8a   :  { %6576 = vmatpush.bf16.msra.mxu0 %v10913_v40 }
  0x8b   :  { %6589 = vmatpush.bf16.msra.mxu1 %v10921_v41  ;;  %v10958_v41 = vld [vmem:[%s14303_s1 + $0x590] sm:$0xff] }
  0x8c   :  { %6602 = vmatpush.bf16.msra.mxu2 %v10929_v42  ;;  %v10966_v42 = vld [vmem:[%s14303_s1 + $0x5d0] sm:$0xff] }
  0x8d   :  { %6615 = vmatpush.bf16.msra.mxu3 %v10937_v43  ;;  %v10941_v43 = vld [vmem:[%s14303_s1 + $0x508] sm:$0xff] }
  0x8e   :  { %6577 = vmatpush.bf16.msra.mxu0 %v10912_v44  ;;  %v10949_v44 = vld [vmem:[%s14303_s1 + $0x548] sm:$0xff] }
  0x8f   :  { %6590 = vmatpush.bf16.msra.mxu1 %v10920_v45  ;;  %v10957_v45 = vld [vmem:[%s14303_s1 + $0x588] sm:$0xff] }
  0x90   :  { %6603 = vmatpush.bf16.msra.mxu2 %v10928_v46  ;;  %v10965_v46 = vld [vmem:[%s14303_s1 + $0x5c8] sm:$0xff] }
  0x91   :  { %6616 = vmatpush.bf16.msra.mxu3 %v10936_v47 }
  0x92   :  { %6578 = vmatpush.bf16.msra.mxu0 %v10911_v48 }
  0x93   :  { %6591 = vmatpush.bf16.msra.mxu1 %v10919_v49  ;;  %v10940_v49 = vld [vmem:[%s14303_s1 + $0x500] sm:$0xff] }
  0x94   :  { %6604 = vmatpush.bf16.msra.mxu2 %v10927_v50  ;;  %v10948_v50 = vld [vmem:[%s14303_s1 + $0x540] sm:$0xff] }
  0x95   :  { %6617 = vmatpush.bf16.msra.mxu3 %v10935_v51  ;;  %v10956_v51 = vld [vmem:[%s14303_s1 + $0x580] sm:$0xff] }
  0x96   :  { %6579 = vmatpush.bf16.msra.mxu0 %v10910_v52  ;;  %v10964_v52 = vld [vmem:[%s14303_s1 + $0x5c0] sm:$0xff] }
  0x97   :  { %6592 = vmatpush.bf16.msra.mxu1 %v10918_v53  ;;  %v10979_v53 = vld [vmem:[%s14303_s1 + $0x638] sm:$0xff] }
  0x98   :  { %6605 = vmatpush.bf16.msra.mxu2 %v10926_v54  ;;  %v46_v54 = vld [vmem:[%s14304_s0 + $0xa0] sm:$0xff] }
  0x99   :  { %6618 = vmatpush.bf16.msra.mxu3 %v10934_v55  ;;  %v48_v55 = vld [vmem:[%s14304_s0 + $0xb0] sm:$0xff] }
  0x9a   :  { %6580 = vmatpush.bf16.msra.mxu0 %v10909_v56  ;;  %v10987_v56 = vld [vmem:[%s14303_s1 + $0x678] sm:$0xff] }
  0x9b   :  { %6593 = vmatpush.bf16.msra.mxu1 %v10917_v57  ;;  %v47_v57 = vld [vmem:[%s14304_s0 + $0xa8] sm:$0xff] }
  0x9c   :  { %6606 = vmatpush.bf16.msra.mxu2 %v10925_v58  ;;  %v49_v58 = vld [vmem:[%s14304_s0 + $0xb8] sm:$0xff] }
  0x9d   :  { %6619 = vmatpush.bf16.msra.mxu3 %v10933_v59  ;;  %v10995_v59 = vld [vmem:[%s14303_s1 + $0x6b8] sm:$0xff] }
  0x9e   :  { %6581 = vmatpush.bf16.msra.mxu0 %v10908_v60  ;;  %v6375_v21 = vpop.f32.mrf.mxu0  ;;  %v11003_v60 = vld [vmem:[%s14303_s1 + $0x6f8] sm:$0xff] }
  0x9f   :  { %6594 = vmatpush.bf16.msra.mxu1 %v10916_v61  ;;  %v6376_v24 = vadd.f32 %v11548_v18, %v6375_v21  ;;  %v6388_v25 = vpop.f32.mrf.mxu1  ;;  %v142_v61 = vpack.c.bf16 %v46_v54, %v46_v54  ;;  %v10983_v18 = vld [vmem:[%s14303_s1 + $0x658] sm:$0xff]  ;;  %v11018_v54 = vld [vmem:[%s14303_s1 + $0x770] sm:$0xff] }
  0xa0   :  { %6607 = vmatpush.bf16.msra.mxu2 %v10924_v62  ;;  %v144_v62 = vpack.c.bf16 %v48_v55, %v48_v55  ;;  %v11026_v55 = vld [vmem:[%s14303_s1 + $0x7b0] sm:$0xff] }
  0xa1   :  { %6620 = vmatpush.bf16.msra.mxu3 %v10932_v63  ;;  %6582 = vmatmul.bf16.vlgmr.msra.gmra.mxu0 %v138_v8  ;;  %v6389_v28 = vadd.f32 %v6388_v25, %v6376_v24  ;;  %v143_v63 = vpack.c.bf16 %v47_v57, %v47_v57  ;;  %v11001_v8 = vld [vmem:[%s14303_s1 + $0x6e8] sm:$0xff]  ;;  %v10974_v25 = vld [vmem:[%s14303_s1 + $0x610] sm:$0xff] }
  0xa2   :  { %6626 = vmatpush.bf16.msrb.mxu0 %v10947_v0  ;;  %6595 = vmatmul.bf16.vlgmr.msra.gmra.mxu1 %v139_v10  ;;  %v145_v0 = vpack.c.bf16 %v49_v58, %v49_v58  ;;  %v10976_v10 = vld [vmem:[%s14303_s1 + $0x620] sm:$0xff]  ;;  %v11009_v57 = vld [vmem:[%s14303_s1 + $0x728] sm:$0xff] }
  0xa3   :  { %6639 = vmatpush.bf16.msrb.mxu1 %v10955_v3  ;;  %6608 = vmatmul.bf16.vlgmr.msra.gmra.mxu2 %v140_v9  ;;  %v10994_v3 = vld [vmem:[%s14303_s1 + $0x6b0] sm:$0xff]  ;;  %v11017_v58 = vld [vmem:[%s14303_s1 + $0x768] sm:$0xff] }
  0xa4   :  { %6652 = vmatpush.bf16.msrb.mxu2 %v10963_v6  ;;  %6621 = vmatmul.bf16.vlgmr.msra.gmra.mxu3 %v141_v11  ;;  %v10985_v6 = vld [vmem:[%s14303_s1 + $0x668] sm:$0xff]  ;;  %v10984_v11 = vld [vmem:[%s14303_s1 + $0x660] sm:$0xff] }
  0xa5   :  { %6665 = vmatpush.bf16.msrb.mxu3 %v10971_v7  ;;  %v10993_v7 = vld [vmem:[%s14303_s1 + $0x6a8] sm:$0xff] }
  0xa6   :  { %6627 = vmatpush.bf16.msrb.mxu0 %v10946_v12  ;;  %v6401_v33 = vpop.f32.mrf.mxu2  ;;  %v6377_v36 = vpop.f32.mrf.mxu0 }
  0xa7   :  { %6640 = vmatpush.bf16.msrb.mxu1 %v10954_v13  ;;  %v6402_v34 = vadd.f32 %v6401_v33, %v6389_v28  ;;  %v6414_v35 = vpop.f32.mrf.mxu3  ;;  %v6390_v40 = vpop.f32.mrf.mxu1  ;;  %v10989_v33 = vld [vmem:[%s14303_s1 + $0x688] sm:$0xff] }
  0xa8   :  { %6653 = vmatpush.bf16.msrb.mxu2 %v10962_v14  ;;  %v10992_v14 = vld [vmem:[%s14303_s1 + $0x6a0] sm:$0xff] }
  0xa9   :  { %6666 = vmatpush.bf16.msrb.mxu3 %v10970_v15  ;;  %v12200_v39 = vadd.f32 %v6414_v35, %v6402_v34  ;;  %v11000_v15 = vld [vmem:[%s14303_s1 + $0x6e0] sm:$0xff]  ;;  %v10997_v34 = vld [vmem:[%s14303_s1 + $0x6c8] sm:$0xff] }
  0xaa   :  { %6628 = vmatpush.bf16.msrb.mxu0 %v10945_v16  ;;  %v10996_v40 = vld [vmem:[%s14303_s1 + $0x6c0] sm:$0xff] }
  0xab   :  { %6641 = vmatpush.bf16.msrb.mxu1 %v10953_v17  ;;  %v10975_v17 = vld [vmem:[%s14303_s1 + $0x618] sm:$0xff] }
  0xac   :  { %6654 = vmatpush.bf16.msrb.mxu2 %v10961_v19  ;;  %v10991_v19 = vld [vmem:[%s14303_s1 + $0x698] sm:$0xff] }
  0xad   :  { %6667 = vmatpush.bf16.msrb.mxu3 %v10969_v20  ;;  %v10999_v20 = vld [vmem:[%s14303_s1 + $0x6d8] sm:$0xff] }
  0xae   :  { %6629 = vmatpush.bf16.msrb.mxu0 %v10944_v22  ;;  %v6403_v47 = vpop.f32.mrf.mxu2 }
  0xaf   :  { %6642 = vmatpush.bf16.msrb.mxu1 %v10952_v23  ;;  %v6416_v48 = vpop.f32.mrf.mxu3  ;;  %v11027_v47 = vld [vmem:[%s14303_s1 + $0x7b8] sm:$0xff] }
  0xb0   :  { %6655 = vmatpush.bf16.msrb.mxu2 %v10960_v26  ;;  %v10982_v26 = vld [vmem:[%s14303_s1 + $0x650] sm:$0xff]  ;;  %v11035_v48 = vld [vmem:[%s14303_s1 + $0x7f8] sm:$0xff] }
  0xb1   :  { %6668 = vmatpush.bf16.msrb.mxu3 %v10968_v27 }
  0xb2   :  { %6630 = vmatpush.bf16.msrb.mxu0 %v10943_v29  ;;  %v10990_v29 = vld [vmem:[%s14303_s1 + $0x690] sm:$0xff] }
  0xb3   :  { %6643 = vmatpush.bf16.msrb.mxu1 %v10951_v30  ;;  %v10998_v30 = vld [vmem:[%s14303_s1 + $0x6d0] sm:$0xff] }
  0xb4   :  { %6656 = vmatpush.bf16.msrb.mxu2 %v10959_v31  ;;  %v10973_v31 = vld [vmem:[%s14303_s1 + $0x608] sm:$0xff] }
  0xb5   :  { %6669 = vmatpush.bf16.msrb.mxu3 %v10967_v32  ;;  %v10981_v32 = vld [vmem:[%s14303_s1 + $0x648] sm:$0xff] }
  0xb6   :  { %6631 = vmatpush.bf16.msrb.mxu0 %v10942_v37  ;;  %v10972_v37 = vld [vmem:[%s14303_s1 + $0x600] sm:$0xff] }
  0xb7   :  { %6644 = vmatpush.bf16.msrb.mxu1 %v10950_v38  ;;  %v10980_v38 = vld [vmem:[%s14303_s1 + $0x640] sm:$0xff] }
  0xb8   :  { %6657 = vmatpush.bf16.msrb.mxu2 %v10958_v41  ;;  %v11011_v41 = vld [vmem:[%s14303_s1 + $0x738] sm:$0xff] }
  0xb9   :  { %6670 = vmatpush.bf16.msrb.mxu3 %v10966_v42  ;;  %v50_v42 = vld [vmem:[%s14304_s0 + $0xc0] sm:$0xff] }
  0xba   :  { %6632 = vmatpush.bf16.msrb.mxu0 %v10941_v43  ;;  %v52_v43 = vld [vmem:[%s14304_s0 + $0xd0] sm:$0xff] }
  0xbb   :  { %6645 = vmatpush.bf16.msrb.mxu1 %v10949_v44  ;;  %v11019_v44 = vld [vmem:[%s14303_s1 + $0x778] sm:$0xff] }
  0xbc   :  { %6658 = vmatpush.bf16.msrb.mxu2 %v10957_v45  ;;  %v51_v45 = vld [vmem:[%s14304_s0 + $0xc8] sm:$0xff] }
  0xbd   :  { %6671 = vmatpush.bf16.msrb.mxu3 %v10965_v46  ;;  %v53_v46 = vld [vmem:[%s14304_s0 + $0xd8] sm:$0xff] }
  0xbe   :  { %6633 = vmatpush.bf16.msrb.mxu0 %v10940_v49  ;;  %v6427_v9 = vpop.f32.mrf.mxu0  ;;  %v146_v49 = vpack.c.bf16 %v50_v42, %v50_v42  ;;  %v11050_v42 = vld [vmem:[%s14303_s1 + $0x870] sm:$0xff] }
  0xbf   :  { %6646 = vmatpush.bf16.msrb.mxu1 %v10948_v50  ;;  %v6428_v12 = vadd.f32 %v6427_v9, %v12200_v39  ;;  %v6440_v13 = vpop.f32.mrf.mxu1  ;;  %v10988_v39 = vld [vmem:[%s14303_s1 + $0x680] sm:$0xff]  ;;  %v148_v50 = vpack.c.bf16 %v52_v43, %v52_v43  ;;  %v11058_v43 = vld [vmem:[%s14303_s1 + $0x8b0] sm:$0xff] }
  0xc0   :  { %6659 = vmatpush.bf16.msrb.mxu2 %v10956_v51  ;;  %v147_v51 = vpack.c.bf16 %v51_v45, %v51_v45  ;;  %v11041_v45 = vld [vmem:[%s14303_s1 + $0x828] sm:$0xff] }
  0xc1   :  { %6672 = vmatpush.bf16.msrb.mxu3 %v10964_v52  ;;  %6634 = vmatmul.bf16.vlgmr.msrb.gmra.mxu0 %v142_v61  ;;  %v6441_v16 = vadd.f32 %v6440_v13, %v6428_v12  ;;  %v149_v52 = vpack.c.bf16 %v53_v46, %v53_v46  ;;  %v11049_v46 = vld [vmem:[%s14303_s1 + $0x868] sm:$0xff] }
  0xc2   :  { %6678 = vmatpush.bf16.msra.mxu0 %v10979_v53  ;;  %6647 = vmatmul.bf16.vlgmr.msrb.gmra.mxu1 %v143_v63  ;;  %v11010_v53 = vld [vmem:[%s14303_s1 + $0x730] sm:$0xff]  ;;  %v11008_v63 = vld [vmem:[%s14303_s1 + $0x720] sm:$0xff] }
  0xc3   :  { %6691 = vmatpush.bf16.msra.mxu1 %v10987_v56  ;;  %6660 = vmatmul.bf16.vlgmr.msrb.gmra.mxu2 %v144_v62  ;;  %v11034_v56 = vld [vmem:[%s14303_s1 + $0x7f0] sm:$0xff] }
  0xc4   :  { %6704 = vmatpush.bf16.msra.mxu2 %v10995_v59  ;;  %6673 = vmatmul.bf16.vlgmr.msrb.gmra.mxu3 %v145_v0  ;;  %v11025_v59 = vld [vmem:[%s14303_s1 + $0x7a8] sm:$0xff]  ;;  %v11016_v0 = vld [vmem:[%s14303_s1 + $0x760] sm:$0xff] }
  0xc5   :  { %6717 = vmatpush.bf16.msra.mxu3 %v11003_v60  ;;  %v11033_v60 = vld [vmem:[%s14303_s1 + $0x7e8] sm:$0xff] }
  0xc6   :  { %6679 = vmatpush.bf16.msra.mxu0 %v10978_v1  ;;  %v6453_v21 = vpop.f32.mrf.mxu2  ;;  %v6429_v24 = vpop.f32.mrf.mxu0 }
  0xc7   :  { %6692 = vmatpush.bf16.msra.mxu1 %v10986_v2  ;;  %v6454_v22 = vadd.f32 %v6453_v21, %v6441_v16  ;;  %v6466_v23 = vpop.f32.mrf.mxu3  ;;  %v6442_v28 = vpop.f32.mrf.mxu1  ;;  %v11024_v2 = vld [vmem:[%s14303_s1 + $0x7a0] sm:$0xff]  ;;  %v11021_v21 = vld [vmem:[%s14303_s1 + $0x788] sm:$0xff] }
  0xc8   :  { %6705 = vmatpush.bf16.msra.mxu2 %v10994_v3  ;;  %v11032_v3 = vld [vmem:[%s14303_s1 + $0x7e0] sm:$0xff] }
  0xc9   :  { %6718 = vmatpush.bf16.msra.mxu3 %v11002_v4  ;;  %v12311_v27 = vadd.f32 %v6466_v23, %v6454_v22  ;;  %v11029_v22 = vld [vmem:[%s14303_s1 + $0x7c8] sm:$0xff]  ;;  %v11028_v28 = vld [vmem:[%s14303_s1 + $0x7c0] sm:$0xff] }
  0xca   :  { %6680 = vmatpush.bf16.msra.mxu0 %v10977_v5  ;;  %v11007_v5 = vld [vmem:[%s14303_s1 + $0x718] sm:$0xff] }
  0xcb   :  { %6693 = vmatpush.bf16.msra.mxu1 %v10985_v6  ;;  %v11015_v6 = vld [vmem:[%s14303_s1 + $0x758] sm:$0xff] }
  0xcc   :  { %6706 = vmatpush.bf16.msra.mxu2 %v10993_v7  ;;  %v11023_v7 = vld [vmem:[%s14303_s1 + $0x798] sm:$0xff] }
  0xcd   :  { %6719 = vmatpush.bf16.msra.mxu3 %v11001_v8  ;;  %v11031_v8 = vld [vmem:[%s14303_s1 + $0x7d8] sm:$0xff] }
  0xce   :  { %6681 = vmatpush.bf16.msra.mxu0 %v10976_v10  ;;  %v6455_v35 = vpop.f32.mrf.mxu2 }
  0xcf   :  { %6694 = vmatpush.bf16.msra.mxu1 %v10984_v11  ;;  %v6468_v36 = vpop.f32.mrf.mxu3  ;;  %v11059_v35 = vld [vmem:[%s14303_s1 + $0x8b8] sm:$0xff] }
  0xd0   :  { %6707 = vmatpush.bf16.msra.mxu2 %v10992_v14  ;;  %v11006_v14 = vld [vmem:[%s14303_s1 + $0x710] sm:$0xff]  ;;  %v11067_v36 = vld [vmem:[%s14303_s1 + $0x8f8] sm:$0xff] }
  0xd1   :  { %6720 = vmatpush.bf16.msra.mxu3 %v11000_v15  ;;  %v11014_v15 = vld [vmem:[%s14303_s1 + $0x750] sm:$0xff] }
  0xd2   :  { %6682 = vmatpush.bf16.msra.mxu0 %v10975_v17  ;;  %v11022_v17 = vld [vmem:[%s14303_s1 + $0x790] sm:$0xff] }
  0xd3   :  { %6695 = vmatpush.bf16.msra.mxu1 %v10983_v18  ;;  %v11030_v18 = vld [vmem:[%s14303_s1 + $0x7d0] sm:$0xff] }
  0xd4   :  { %6708 = vmatpush.bf16.msra.mxu2 %v10991_v19  ;;  %v11005_v19 = vld [vmem:[%s14303_s1 + $0x708] sm:$0xff] }
  0xd5   :  { %6721 = vmatpush.bf16.msra.mxu3 %v10999_v20  ;;  %v11013_v20 = vld [vmem:[%s14303_s1 + $0x748] sm:$0xff] }
  0xd6   :  { %6683 = vmatpush.bf16.msra.mxu0 %v10974_v25  ;;  %v11004_v25 = vld [vmem:[%s14303_s1 + $0x700] sm:$0xff] }
  0xd7   :  { %6696 = vmatpush.bf16.msra.mxu1 %v10982_v26  ;;  %v11012_v26 = vld [vmem:[%s14303_s1 + $0x740] sm:$0xff] }
  0xd8   :  { %6709 = vmatpush.bf16.msra.mxu2 %v10990_v29  ;;  %v11043_v29 = vld [vmem:[%s14303_s1 + $0x838] sm:$0xff] }
  0xd9   :  { %6722 = vmatpush.bf16.msra.mxu3 %v10998_v30  ;;  %v54_v30 = vld [vmem:[%s14304_s0 + $0xe0] sm:$0xff] }
  0xda   :  { %6684 = vmatpush.bf16.msra.mxu0 %v10973_v31  ;;  %v56_v31 = vld [vmem:[%s14304_s0 + $0xf0] sm:$0xff] }
  0xdb   :  { %6697 = vmatpush.bf16.msra.mxu1 %v10981_v32  ;;  %v11051_v32 = vld [vmem:[%s14303_s1 + $0x878] sm:$0xff] }
  0xdc   :  { %6710 = vmatpush.bf16.msra.mxu2 %v10989_v33  ;;  %v55_v33 = vld [vmem:[%s14304_s0 + $0xe8] sm:$0xff] }
  0xdd   :  { %6723 = vmatpush.bf16.msra.mxu3 %v10997_v34  ;;  %v57_v34 = vld [vmem:[%s14304_s0 + $0xf8] sm:$0xff] }
  0xde   :  { %6685 = vmatpush.bf16.msra.mxu0 %v10972_v37  ;;  %v6479_v61 = vpop.f32.mrf.mxu0  ;;  %v150_v37 = vpack.c.bf16 %v54_v30, %v54_v30  ;;  %v11082_v30 = vld [vmem:[%s14303_s1 + $0x970] sm:$0xff] }
  0xdf   :  { %6698 = vmatpush.bf16.msra.mxu1 %v10980_v38  ;;  %v6480_v62 = vadd.f32 %v6479_v61, %v12311_v27  ;;  %v6492_v1 = vpop.f32.mrf.mxu1  ;;  %v11020_v27 = vld [vmem:[%s14303_s1 + $0x780] sm:$0xff]  ;;  %v152_v38 = vpack.c.bf16 %v56_v31, %v56_v31  ;;  %v11090_v31 = vld [vmem:[%s14303_s1 + $0x9b0] sm:$0xff] }
  0xe0   :  { %6711 = vmatpush.bf16.msra.mxu2 %v10988_v39  ;;  %v151_v39 = vpack.c.bf16 %v55_v33, %v55_v33  ;;  %v11073_v33 = vld [vmem:[%s14303_s1 + $0x928] sm:$0xff] }
  0xe1   :  { %6724 = vmatpush.bf16.msra.mxu3 %v10996_v40  ;;  %6686 = vmatmul.bf16.vlgmr.msra.gmra.mxu0 %v146_v49  ;;  %v6493_v4 = vadd.f32 %v6492_v1, %v6480_v62  ;;  %v153_v40 = vpack.c.bf16 %v57_v34, %v57_v34  ;;  %v11081_v34 = vld [vmem:[%s14303_s1 + $0x968] sm:$0xff] }
  0xe2   :  { %6730 = vmatpush.bf16.msrb.mxu0 %v11011_v41  ;;  %6699 = vmatmul.bf16.vlgmr.msra.gmra.mxu1 %v147_v51  ;;  %v11042_v41 = vld [vmem:[%s14303_s1 + $0x830] sm:$0xff]  ;;  %v11040_v51 = vld [vmem:[%s14303_s1 + $0x820] sm:$0xff] }
  0xe3   :  { %6743 = vmatpush.bf16.msrb.mxu1 %v11019_v44  ;;  %6712 = vmatmul.bf16.vlgmr.msra.gmra.mxu2 %v148_v50  ;;  %v11066_v44 = vld [vmem:[%s14303_s1 + $0x8f0] sm:$0xff] }
  0xe4   :  { %6756 = vmatpush.bf16.msrb.mxu2 %v11027_v47  ;;  %6725 = vmatmul.bf16.vlgmr.msra.gmra.mxu3 %v149_v52  ;;  %v11057_v47 = vld [vmem:[%s14303_s1 + $0x8a8] sm:$0xff]  ;;  %v11048_v52 = vld [vmem:[%s14303_s1 + $0x860] sm:$0xff] }
  0xe5   :  { %6769 = vmatpush.bf16.msrb.mxu3 %v11035_v48  ;;  %v11065_v48 = vld [vmem:[%s14303_s1 + $0x8e8] sm:$0xff] }
  0xe6   :  { %6731 = vmatpush.bf16.msrb.mxu0 %v11010_v53  ;;  %v6505_v9 = vpop.f32.mrf.mxu2  ;;  %v6481_v12 = vpop.f32.mrf.mxu0 }
  0xe7   :  { %6744 = vmatpush.bf16.msrb.mxu1 %v11018_v54  ;;  %v6506_v10 = vadd.f32 %v6505_v9, %v6493_v4  ;;  %v6518_v11 = vpop.f32.mrf.mxu3  ;;  %v6494_v16 = vpop.f32.mrf.mxu1  ;;  %v11056_v54 = vld [vmem:[%s14303_s1 + $0x8a0] sm:$0xff]  ;;  %v11053_v9 = vld [vmem:[%s14303_s1 + $0x888] sm:$0xff] }
  0xe8   :  { %6757 = vmatpush.bf16.msrb.mxu2 %v11026_v55  ;;  %v11064_v55 = vld [vmem:[%s14303_s1 + $0x8e0] sm:$0xff] }
  0xe9   :  { %6770 = vmatpush.bf16.msrb.mxu3 %v11034_v56  ;;  %v12416_v13 = vadd.f32 %v6518_v11, %v6506_v10  ;;  %v11061_v10 = vld [vmem:[%s14303_s1 + $0x8c8] sm:$0xff]  ;;  %v11060_v16 = vld [vmem:[%s14303_s1 + $0x8c0] sm:$0xff] }
  0xea   :  { %6732 = vmatpush.bf16.msrb.mxu0 %v11009_v57  ;;  %v11039_v57 = vld [vmem:[%s14303_s1 + $0x818] sm:$0xff] }
  0xeb   :  { %6745 = vmatpush.bf16.msrb.mxu1 %v11017_v58  ;;  %v11047_v58 = vld [vmem:[%s14303_s1 + $0x858] sm:$0xff] }
  0xec   :  { %6758 = vmatpush.bf16.msrb.mxu2 %v11025_v59  ;;  %v11055_v59 = vld [vmem:[%s14303_s1 + $0x898] sm:$0xff] }
  0xed   :  { %6771 = vmatpush.bf16.msrb.mxu3 %v11033_v60  ;;  %v11063_v60 = vld [vmem:[%s14303_s1 + $0x8d8] sm:$0xff] }
  0xee   :  { %6733 = vmatpush.bf16.msrb.mxu0 %v11008_v63  ;;  %v6507_v23 = vpop.f32.mrf.mxu2 }
  0xef   :  { %6746 = vmatpush.bf16.msrb.mxu1 %v11016_v0  ;;  %v6520_v24 = vpop.f32.mrf.mxu3  ;;  %v11091_v23 = vld [vmem:[%s14303_s1 + $0x9b8] sm:$0xff] }
  0xf0   :  { %6759 = vmatpush.bf16.msrb.mxu2 %v11024_v2  ;;  %v11038_v2 = vld [vmem:[%s14303_s1 + $0x810] sm:$0xff]  ;;  %v11099_v24 = vld [vmem:[%s14303_s1 + $0x9f8] sm:$0xff] }
  0xf1   :  { %6772 = vmatpush.bf16.msrb.mxu3 %v11032_v3  ;;  %v11046_v3 = vld [vmem:[%s14303_s1 + $0x850] sm:$0xff] }
  0xf2   :  { %6734 = vmatpush.bf16.msrb.mxu0 %v11007_v5  ;;  %v11054_v5 = vld [vmem:[%s14303_s1 + $0x890] sm:$0xff] }
  0xf3   :  { %6747 = vmatpush.bf16.msrb.mxu1 %v11015_v6  ;;  %v11062_v6 = vld [vmem:[%s14303_s1 + $0x8d0] sm:$0xff] }
  0xf4   :  { %6760 = vmatpush.bf16.msrb.mxu2 %v11023_v7  ;;  %v11037_v7 = vld [vmem:[%s14303_s1 + $0x808] sm:$0xff] }
  0xf5   :  { %6773 = vmatpush.bf16.msrb.mxu3 %v11031_v8  ;;  %v11045_v8 = vld [vmem:[%s14303_s1 + $0x848] sm:$0xff] }
  0xf6   :  { %6735 = vmatpush.bf16.msrb.mxu0 %v11006_v14  ;;  %v11044_v14 = vld [vmem:[%s14303_s1 + $0x840] sm:$0xff] }
  0xf7   :  { %6748 = vmatpush.bf16.msrb.mxu1 %v11014_v15  ;;  %v11052_v15 = vld [vmem:[%s14303_s1 + $0x880] sm:$0xff] }
  0xf8   :  { %6761 = vmatpush.bf16.msrb.mxu2 %v11022_v17  ;;  %v11075_v17 = vld [vmem:[%s14303_s1 + $0x938] sm:$0xff] }
  0xf9   :  { %6774 = vmatpush.bf16.msrb.mxu3 %v11030_v18  ;;  %v58_v18 = vld [vmem:[%s14304_s0 + $0x100] sm:$0xff] }
  0xfa   :  { %6736 = vmatpush.bf16.msrb.mxu0 %v11005_v19  ;;  %v60_v19 = vld [vmem:[%s14304_s0 + $0x110] sm:$0xff] }
  0xfb   :  { %6749 = vmatpush.bf16.msrb.mxu1 %v11013_v20  ;;  %v11083_v20 = vld [vmem:[%s14303_s1 + $0x978] sm:$0xff] }
  0xfc   :  { %6762 = vmatpush.bf16.msrb.mxu2 %v11021_v21  ;;  %v59_v21 = vld [vmem:[%s14304_s0 + $0x108] sm:$0xff] }
  0xfd   :  { %6775 = vmatpush.bf16.msrb.mxu3 %v11029_v22  ;;  %v61_v22 = vld [vmem:[%s14304_s0 + $0x118] sm:$0xff] }
  0xfe   :  { %6737 = vmatpush.bf16.msrb.mxu0 %v11004_v25  ;;  %v6531_v49 = vpop.f32.mrf.mxu0  ;;  %v154_v25 = vpack.c.bf16 %v58_v18, %v58_v18  ;;  %v11114_v18 = vld [vmem:[%s14303_s1 + $0xa70] sm:$0xff] }
  0xff   :  { %6750 = vmatpush.bf16.msrb.mxu1 %v11012_v26  ;;  %v6532_v50 = vadd.f32 %v6531_v49, %v12416_v13  ;;  %v6544_v53 = vpop.f32.mrf.mxu1  ;;  %v11036_v13 = vld [vmem:[%s14303_s1 + $0x800] sm:$0xff]  ;;  %v156_v26 = vpack.c.bf16 %v60_v19, %v60_v19  ;;  %v11122_v19 = vld [vmem:[%s14303_s1 + $0xab0] sm:$0xff] }
 0x100   :  { %6763 = vmatpush.bf16.msrb.mxu2 %v11020_v27  ;;  %v155_v27 = vpack.c.bf16 %v59_v21, %v59_v21  ;;  %v11105_v21 = vld [vmem:[%s14303_s1 + $0xa28] sm:$0xff] }
 0x101   :  { %6776 = vmatpush.bf16.msrb.mxu3 %v11028_v28  ;;  %6738 = vmatmul.bf16.vlgmr.msrb.gmra.mxu0 %v150_v37  ;;  %v6545_v56 = vadd.f32 %v6544_v53, %v6532_v50  ;;  %v157_v28 = vpack.c.bf16 %v61_v22, %v61_v22  ;;  %v11113_v22 = vld [vmem:[%s14303_s1 + $0xa68] sm:$0xff] }
 0x102   :  { %6782 = vmatpush.bf16.msra.mxu0 %v11043_v29  ;;  %6751 = vmatmul.bf16.vlgmr.msrb.gmra.mxu1 %v151_v39  ;;  %v11074_v29 = vld [vmem:[%s14303_s1 + $0x930] sm:$0xff]  ;;  %v11072_v39 = vld [vmem:[%s14303_s1 + $0x920] sm:$0xff] }
 0x103   :  { %6795 = vmatpush.bf16.msra.mxu1 %v11051_v32  ;;  %6764 = vmatmul.bf16.vlgmr.msrb.gmra.mxu2 %v152_v38  ;;  %v11098_v32 = vld [vmem:[%s14303_s1 + $0x9f0] sm:$0xff] }
 0x104   :  { %6808 = vmatpush.bf16.msra.mxu2 %v11059_v35  ;;  %6777 = vmatmul.bf16.vlgmr.msrb.gmra.mxu3 %v153_v40  ;;  %v11089_v35 = vld [vmem:[%s14303_s1 + $0x9a8] sm:$0xff]  ;;  %v11080_v40 = vld [vmem:[%s14303_s1 + $0x960] sm:$0xff] }
 0x105   :  { %6821 = vmatpush.bf16.msra.mxu3 %v11067_v36  ;;  %v11097_v36 = vld [vmem:[%s14303_s1 + $0x9e8] sm:$0xff] }
 0x106   :  { %6783 = vmatpush.bf16.msra.mxu0 %v11042_v41  ;;  %v6557_v61 = vpop.f32.mrf.mxu2  ;;  %v6533_v0 = vpop.f32.mrf.mxu0 }
 0x107   :  { %6796 = vmatpush.bf16.msra.mxu1 %v11050_v42  ;;  %v6558_v62 = vadd.f32 %v6557_v61, %v6545_v56  ;;  %v6570_v63 = vpop.f32.mrf.mxu3  ;;  %v6546_v4 = vpop.f32.mrf.mxu1  ;;  %v11088_v42 = vld [vmem:[%s14303_s1 + $0x9a0] sm:$0xff]  ;;  %v11085_v61 = vld [vmem:[%s14303_s1 + $0x988] sm:$0xff] }
 0x108   :  { %6809 = vmatpush.bf16.msra.mxu2 %v11058_v43  ;;  %v11096_v43 = vld [vmem:[%s14303_s1 + $0x9e0] sm:$0xff] }
 0x109   :  { %6822 = vmatpush.bf16.msra.mxu3 %v11066_v44  ;;  %v12527_v1 = vadd.f32 %v6570_v63, %v6558_v62  ;;  %v11093_v62 = vld [vmem:[%s14303_s1 + $0x9c8] sm:$0xff]  ;;  %v11092_v4 = vld [vmem:[%s14303_s1 + $0x9c0] sm:$0xff] }
 0x10a   :  { %6784 = vmatpush.bf16.msra.mxu0 %v11041_v45  ;;  %v11071_v45 = vld [vmem:[%s14303_s1 + $0x918] sm:$0xff] }
 0x10b   :  { %6797 = vmatpush.bf16.msra.mxu1 %v11049_v46  ;;  %v11079_v46 = vld [vmem:[%s14303_s1 + $0x958] sm:$0xff] }
 0x10c   :  { %6810 = vmatpush.bf16.msra.mxu2 %v11057_v47  ;;  %v11087_v47 = vld [vmem:[%s14303_s1 + $0x998] sm:$0xff] }
 0x10d   :  { %6823 = vmatpush.bf16.msra.mxu3 %v11065_v48  ;;  %v11095_v48 = vld [vmem:[%s14303_s1 + $0x9d8] sm:$0xff] }
 0x10e   :  { %6785 = vmatpush.bf16.msra.mxu0 %v11040_v51  ;;  %v6559_v11 = vpop.f32.mrf.mxu2 }
 0x10f   :  { %6798 = vmatpush.bf16.msra.mxu1 %v11048_v52  ;;  %v6572_v12 = vpop.f32.mrf.mxu3  ;;  %v11123_v11 = vld [vmem:[%s14303_s1 + $0xab8] sm:$0xff] }
 0x110   :  { %6811 = vmatpush.bf16.msra.mxu2 %v11056_v54  ;;  %v11070_v54 = vld [vmem:[%s14303_s1 + $0x910] sm:$0xff]  ;;  %v11131_v12 = vld [vmem:[%s14303_s1 + $0xaf8] sm:$0xff] }
 0x111   :  { %6824 = vmatpush.bf16.msra.mxu3 %v11064_v55  ;;  %v11078_v55 = vld [vmem:[%s14303_s1 + $0x950] sm:$0xff] }
 0x112   :  { %6786 = vmatpush.bf16.msra.mxu0 %v11039_v57  ;;  %v11086_v57 = vld [vmem:[%s14303_s1 + $0x990] sm:$0xff] }
 0x113   :  { %6799 = vmatpush.bf16.msra.mxu1 %v11047_v58  ;;  %v11094_v58 = vld [vmem:[%s14303_s1 + $0x9d0] sm:$0xff] }
 0x114   :  { %6812 = vmatpush.bf16.msra.mxu2 %v11055_v59  ;;  %v11069_v59 = vld [vmem:[%s14303_s1 + $0x908] sm:$0xff] }
 0x115   :  { %6825 = vmatpush.bf16.msra.mxu3 %v11063_v60  ;;  %v11077_v60 = vld [vmem:[%s14303_s1 + $0x948] sm:$0xff] }
 0x116   :  { %6787 = vmatpush.bf16.msra.mxu0 %v11038_v2  ;;  %v11076_v2 = vld [vmem:[%s14303_s1 + $0x940] sm:$0xff] }
 0x117   :  { %6800 = vmatpush.bf16.msra.mxu1 %v11046_v3  ;;  %v11084_v3 = vld [vmem:[%s14303_s1 + $0x980] sm:$0xff] }
 0x118   :  { %6813 = vmatpush.bf16.msra.mxu2 %v11054_v5  ;;  %v11107_v5 = vld [vmem:[%s14303_s1 + $0xa38] sm:$0xff] }
 0x119   :  { %6826 = vmatpush.bf16.msra.mxu3 %v11062_v6  ;;  %v62_v6 = vld [vmem:[%s14304_s0 + $0x120] sm:$0xff] }
 0x11a   :  { %6788 = vmatpush.bf16.msra.mxu0 %v11037_v7  ;;  %v64_v7 = vld [vmem:[%s14304_s0 + $0x130] sm:$0xff] }
 0x11b   :  { %6801 = vmatpush.bf16.msra.mxu1 %v11045_v8  ;;  %v11115_v8 = vld [vmem:[%s14303_s1 + $0xa78] sm:$0xff] }
 0x11c   :  { %6814 = vmatpush.bf16.msra.mxu2 %v11053_v9  ;;  %v63_v9 = vld [vmem:[%s14304_s0 + $0x128] sm:$0xff] }
 0x11d   :  { %6827 = vmatpush.bf16.msra.mxu3 %v11061_v10  ;;  %v65_v10 = vld [vmem:[%s14304_s0 + $0x138] sm:$0xff] }
 0x11e   :  { %6789 = vmatpush.bf16.msra.mxu0 %v11036_v13  ;;  %v6583_v37 = vpop.f32.mrf.mxu0  ;;  %v158_v13 = vpack.c.bf16 %v62_v6, %v62_v6  ;;  %v11146_v6 = vld [vmem:[%s14303_s1 + $0xb70] sm:$0xff] }
 0x11f   :  { %6802 = vmatpush.bf16.msra.mxu1 %v11044_v14  ;;  %v6584_v38 = vadd.f32 %v6583_v37, %v12527_v1  ;;  %v6596_v41 = vpop.f32.mrf.mxu1  ;;  %v11068_v1 = vld [vmem:[%s14303_s1 + $0x900] sm:$0xff]  ;;  %v160_v14 = vpack.c.bf16 %v64_v7, %v64_v7  ;;  %v11154_v7 = vld [vmem:[%s14303_s1 + $0xbb0] sm:$0xff] }
 0x120   :  { %6815 = vmatpush.bf16.msra.mxu2 %v11052_v15  ;;  %v159_v15 = vpack.c.bf16 %v63_v9, %v63_v9  ;;  %v11137_v9 = vld [vmem:[%s14303_s1 + $0xb28] sm:$0xff] }
 0x121   :  { %6828 = vmatpush.bf16.msra.mxu3 %v11060_v16  ;;  %6790 = vmatmul.bf16.vlgmr.msra.gmra.mxu0 %v154_v25  ;;  %v6597_v44 = vadd.f32 %v6596_v41, %v6584_v38  ;;  %v161_v16 = vpack.c.bf16 %v65_v10, %v65_v10  ;;  %v11145_v10 = vld [vmem:[%s14303_s1 + $0xb68] sm:$0xff] }
 0x122   :  { %6834 = vmatpush.bf16.msrb.mxu0 %v11075_v17  ;;  %6803 = vmatmul.bf16.vlgmr.msra.gmra.mxu1 %v155_v27  ;;  %v11106_v17 = vld [vmem:[%s14303_s1 + $0xa30] sm:$0xff]  ;;  %v11104_v27 = vld [vmem:[%s14303_s1 + $0xa20] sm:$0xff] }
 0x123   :  { %6847 = vmatpush.bf16.msrb.mxu1 %v11083_v20  ;;  %6816 = vmatmul.bf16.vlgmr.msra.gmra.mxu2 %v156_v26  ;;  %v11130_v20 = vld [vmem:[%s14303_s1 + $0xaf0] sm:$0xff] }
 0x124   :  { %6860 = vmatpush.bf16.msrb.mxu2 %v11091_v23  ;;  %6829 = vmatmul.bf16.vlgmr.msra.gmra.mxu3 %v157_v28  ;;  %v11121_v23 = vld [vmem:[%s14303_s1 + $0xaa8] sm:$0xff]  ;;  %v11112_v28 = vld [vmem:[%s14303_s1 + $0xa60] sm:$0xff] }
 0x125   :  { %6873 = vmatpush.bf16.msrb.mxu3 %v11099_v24  ;;  %v11129_v24 = vld [vmem:[%s14303_s1 + $0xae8] sm:$0xff] }
 0x126   :  { %6835 = vmatpush.bf16.msrb.mxu0 %v11074_v29  ;;  %v6609_v49 = vpop.f32.mrf.mxu2  ;;  %v6585_v52 = vpop.f32.mrf.mxu0 }
 0x127   :  { %6848 = vmatpush.bf16.msrb.mxu1 %v11082_v30  ;;  %v6610_v50 = vadd.f32 %v6609_v49, %v6597_v44  ;;  %v6622_v51 = vpop.f32.mrf.mxu3  ;;  %v6598_v56 = vpop.f32.mrf.mxu1  ;;  %v11120_v30 = vld [vmem:[%s14303_s1 + $0xaa0] sm:$0xff]  ;;  %v11117_v49 = vld [vmem:[%s14303_s1 + $0xa88] sm:$0xff] }
 0x128   :  { %6861 = vmatpush.bf16.msrb.mxu2 %v11090_v31  ;;  %v11128_v31 = vld [vmem:[%s14303_s1 + $0xae0] sm:$0xff] }
 0x129   :  { %6874 = vmatpush.bf16.msrb.mxu3 %v11098_v32  ;;  %v12638_v53 = vadd.f32 %v6622_v51, %v6610_v50  ;;  %v11125_v50 = vld [vmem:[%s14303_s1 + $0xac8] sm:$0xff]  ;;  %v11124_v56 = vld [vmem:[%s14303_s1 + $0xac0] sm:$0xff] }
 0x12a   :  { %6836 = vmatpush.bf16.msrb.mxu0 %v11073_v33  ;;  %v11103_v33 = vld [vmem:[%s14303_s1 + $0xa18] sm:$0xff] }
 0x12b   :  { %6849 = vmatpush.bf16.msrb.mxu1 %v11081_v34  ;;  %v11111_v34 = vld [vmem:[%s14303_s1 + $0xa58] sm:$0xff] }
 0x12c   :  { %6862 = vmatpush.bf16.msrb.mxu2 %v11089_v35  ;;  %v11119_v35 = vld [vmem:[%s14303_s1 + $0xa98] sm:$0xff] }
 0x12d   :  { %6875 = vmatpush.bf16.msrb.mxu3 %v11097_v36  ;;  %v11127_v36 = vld [vmem:[%s14303_s1 + $0xad8] sm:$0xff] }
 0x12e   :  { %6837 = vmatpush.bf16.msrb.mxu0 %v11072_v39  ;;  %v6611_v63 = vpop.f32.mrf.mxu2 }
 0x12f   :  { %6850 = vmatpush.bf16.msrb.mxu1 %v11080_v40  ;;  %v6624_v0 = vpop.f32.mrf.mxu3  ;;  %v11155_v63 = vld [vmem:[%s14303_s1 + $0xbb8] sm:$0xff] }
 0x130   :  { %6863 = vmatpush.bf16.msrb.mxu2 %v11088_v42  ;;  %v11102_v42 = vld [vmem:[%s14303_s1 + $0xa10] sm:$0xff]  ;;  %v11163_v0 = vld [vmem:[%s14303_s1 + $0xbf8] sm:$0xff] }
 0x131   :  { %6876 = vmatpush.bf16.msrb.mxu3 %v11096_v43  ;;  %v11110_v43 = vld [vmem:[%s14303_s1 + $0xa50] sm:$0xff] }
 0x132   :  { %6838 = vmatpush.bf16.msrb.mxu0 %v11071_v45  ;;  %v11118_v45 = vld [vmem:[%s14303_s1 + $0xa90] sm:$0xff] }
 0x133   :  { %6851 = vmatpush.bf16.msrb.mxu1 %v11079_v46  ;;  %v11126_v46 = vld [vmem:[%s14303_s1 + $0xad0] sm:$0xff] }
 0x134   :  { %6864 = vmatpush.bf16.msrb.mxu2 %v11087_v47  ;;  %v11101_v47 = vld [vmem:[%s14303_s1 + $0xa08] sm:$0xff] }
 0x135   :  { %6877 = vmatpush.bf16.msrb.mxu3 %v11095_v48  ;;  %v11109_v48 = vld [vmem:[%s14303_s1 + $0xa48] sm:$0xff] }
 0x136   :  { %6839 = vmatpush.bf16.msrb.mxu0 %v11070_v54  ;;  %v11108_v54 = vld [vmem:[%s14303_s1 + $0xa40] sm:$0xff] }
 0x137   :  { %6852 = vmatpush.bf16.msrb.mxu1 %v11078_v55  ;;  %v11116_v55 = vld [vmem:[%s14303_s1 + $0xa80] sm:$0xff] }
 0x138   :  { %6865 = vmatpush.bf16.msrb.mxu2 %v11086_v57  ;;  %v11139_v57 = vld [vmem:[%s14303_s1 + $0xb38] sm:$0xff] }
 0x139   :  { %6878 = vmatpush.bf16.msrb.mxu3 %v11094_v58  ;;  %v66_v58 = vld [vmem:[%s14304_s0 + $0x140] sm:$0xff] }
 0x13a   :  { %6840 = vmatpush.bf16.msrb.mxu0 %v11069_v59  ;;  %v68_v59 = vld [vmem:[%s14304_s0 + $0x150] sm:$0xff] }
 0x13b   :  { %6853 = vmatpush.bf16.msrb.mxu1 %v11077_v60  ;;  %v11147_v60 = vld [vmem:[%s14303_s1 + $0xb78] sm:$0xff] }
 0x13c   :  { %6866 = vmatpush.bf16.msrb.mxu2 %v11085_v61  ;;  %v67_v61 = vld [vmem:[%s14304_s0 + $0x148] sm:$0xff] }
 0x13d   :  { %6879 = vmatpush.bf16.msrb.mxu3 %v11093_v62  ;;  %v69_v62 = vld [vmem:[%s14304_s0 + $0x158] sm:$0xff] }
 0x13e   :  { %6841 = vmatpush.bf16.msrb.mxu0 %v11068_v1  ;;  %v6635_v25 = vpop.f32.mrf.mxu0  ;;  %v162_v1 = vpack.c.bf16 %v66_v58, %v66_v58  ;;  %v11178_v58 = vld [vmem:[%s14303_s1 + $0xc70] sm:$0xff] }
 0x13f   :  { %6854 = vmatpush.bf16.msrb.mxu1 %v11076_v2  ;;  %v6636_v26 = vadd.f32 %v6635_v25, %v12638_v53  ;;  %v6648_v29 = vpop.f32.mrf.mxu1  ;;  %v11100_v53 = vld [vmem:[%s14303_s1 + $0xa00] sm:$0xff]  ;;  %v164_v2 = vpack.c.bf16 %v68_v59, %v68_v59  ;;  %v11186_v59 = vld [vmem:[%s14303_s1 + $0xcb0] sm:$0xff] }
 0x140   :  { %6867 = vmatpush.bf16.msrb.mxu2 %v11084_v3  ;;  %v163_v3 = vpack.c.bf16 %v67_v61, %v67_v61  ;;  %v11169_v61 = vld [vmem:[%s14303_s1 + $0xc28] sm:$0xff] }
 0x141   :  { %6880 = vmatpush.bf16.msrb.mxu3 %v11092_v4  ;;  %6842 = vmatmul.bf16.vlgmr.msrb.gmra.mxu0 %v158_v13  ;;  %v6649_v32 = vadd.f32 %v6648_v29, %v6636_v26  ;;  %v165_v4 = vpack.c.bf16 %v69_v62, %v69_v62  ;;  %v11177_v62 = vld [vmem:[%s14303_s1 + $0xc68] sm:$0xff] }
 0x142   :  { %6886 = vmatpush.bf16.msra.mxu0 %v11107_v5  ;;  %6855 = vmatmul.bf16.vlgmr.msrb.gmra.mxu1 %v159_v15  ;;  %v11138_v5 = vld [vmem:[%s14303_s1 + $0xb30] sm:$0xff]  ;;  %v11136_v15 = vld [vmem:[%s14303_s1 + $0xb20] sm:$0xff] }
 0x143   :  { %6899 = vmatpush.bf16.msra.mxu1 %v11115_v8  ;;  %6868 = vmatmul.bf16.vlgmr.msrb.gmra.mxu2 %v160_v14  ;;  %v11162_v8 = vld [vmem:[%s14303_s1 + $0xbf0] sm:$0xff] }
 0x144   :  { %6912 = vmatpush.bf16.msra.mxu2 %v11123_v11  ;;  %6881 = vmatmul.bf16.vlgmr.msrb.gmra.mxu3 %v161_v16  ;;  %v11153_v11 = vld [vmem:[%s14303_s1 + $0xba8] sm:$0xff]  ;;  %v11144_v16 = vld [vmem:[%s14303_s1 + $0xb60] sm:$0xff] }
 0x145   :  { %6925 = vmatpush.bf16.msra.mxu3 %v11131_v12  ;;  %v11161_v12 = vld [vmem:[%s14303_s1 + $0xbe8] sm:$0xff] }
 0x146   :  { %6887 = vmatpush.bf16.msra.mxu0 %v11106_v17  ;;  %v6661_v37 = vpop.f32.mrf.mxu2  ;;  %v6637_v40 = vpop.f32.mrf.mxu0 }
 0x147   :  { %6900 = vmatpush.bf16.msra.mxu1 %v11114_v18  ;;  %v6662_v38 = vadd.f32 %v6661_v37, %v6649_v32  ;;  %v6674_v39 = vpop.f32.mrf.mxu3  ;;  %v6650_v44 = vpop.f32.mrf.mxu1  ;;  %v11152_v18 = vld [vmem:[%s14303_s1 + $0xba0] sm:$0xff]  ;;  %v11149_v37 = vld [vmem:[%s14303_s1 + $0xb88] sm:$0xff] }
 0x148   :  { %6913 = vmatpush.bf16.msra.mxu2 %v11122_v19  ;;  %v11160_v19 = vld [vmem:[%s14303_s1 + $0xbe0] sm:$0xff] }
 0x149   :  { %6926 = vmatpush.bf16.msra.mxu3 %v11130_v20  ;;  %v12749_v41 = vadd.f32 %v6674_v39, %v6662_v38  ;;  %v11157_v38 = vld [vmem:[%s14303_s1 + $0xbc8] sm:$0xff]  ;;  %v11156_v44 = vld [vmem:[%s14303_s1 + $0xbc0] sm:$0xff] }
 0x14a   :  { %6888 = vmatpush.bf16.msra.mxu0 %v11105_v21  ;;  %v11135_v21 = vld [vmem:[%s14303_s1 + $0xb18] sm:$0xff] }
 0x14b   :  { %6901 = vmatpush.bf16.msra.mxu1 %v11113_v22  ;;  %v11143_v22 = vld [vmem:[%s14303_s1 + $0xb58] sm:$0xff] }
 0x14c   :  { %6914 = vmatpush.bf16.msra.mxu2 %v11121_v23  ;;  %v11151_v23 = vld [vmem:[%s14303_s1 + $0xb98] sm:$0xff] }
 0x14d   :  { %6927 = vmatpush.bf16.msra.mxu3 %v11129_v24  ;;  %v11159_v24 = vld [vmem:[%s14303_s1 + $0xbd8] sm:$0xff] }
 0x14e   :  { %6889 = vmatpush.bf16.msra.mxu0 %v11104_v27  ;;  %v6663_v51 = vpop.f32.mrf.mxu2 }
 0x14f   :  { %6902 = vmatpush.bf16.msra.mxu1 %v11112_v28  ;;  %v6676_v52 = vpop.f32.mrf.mxu3  ;;  %v11187_v51 = vld [vmem:[%s14303_s1 + $0xcb8] sm:$0xff] }
 0x150   :  { %6915 = vmatpush.bf16.msra.mxu2 %v11120_v30  ;;  %v11134_v30 = vld [vmem:[%s14303_s1 + $0xb10] sm:$0xff]  ;;  %v11195_v52 = vld [vmem:[%s14303_s1 + $0xcf8] sm:$0xff] }
 0x151   :  { %6928 = vmatpush.bf16.msra.mxu3 %v11128_v31  ;;  %v11142_v31 = vld [vmem:[%s14303_s1 + $0xb50] sm:$0xff] }
 0x152   :  { %6890 = vmatpush.bf16.msra.mxu0 %v11103_v33  ;;  %v11150_v33 = vld [vmem:[%s14303_s1 + $0xb90] sm:$0xff] }
 0x153   :  { %6903 = vmatpush.bf16.msra.mxu1 %v11111_v34  ;;  %v11158_v34 = vld [vmem:[%s14303_s1 + $0xbd0] sm:$0xff] }
 0x154   :  { %6916 = vmatpush.bf16.msra.mxu2 %v11119_v35  ;;  %v11133_v35 = vld [vmem:[%s14303_s1 + $0xb08] sm:$0xff] }
 0x155   :  { %6929 = vmatpush.bf16.msra.mxu3 %v11127_v36  ;;  %v11141_v36 = vld [vmem:[%s14303_s1 + $0xb48] sm:$0xff] }
 0x156   :  { %6891 = vmatpush.bf16.msra.mxu0 %v11102_v42  ;;  %v11140_v42 = vld [vmem:[%s14303_s1 + $0xb40] sm:$0xff] }
 0x157   :  { %6904 = vmatpush.bf16.msra.mxu1 %v11110_v43  ;;  %v11148_v43 = vld [vmem:[%s14303_s1 + $0xb80] sm:$0xff] }
 0x158   :  { %6917 = vmatpush.bf16.msra.mxu2 %v11118_v45  ;;  %v11171_v45 = vld [vmem:[%s14303_s1 + $0xc38] sm:$0xff] }
 0x159   :  { %6930 = vmatpush.bf16.msra.mxu3 %v11126_v46  ;;  %v70_v46 = vld [vmem:[%s14304_s0 + $0x160] sm:$0xff] }
 0x15a   :  { %6892 = vmatpush.bf16.msra.mxu0 %v11101_v47  ;;  %v72_v47 = vld [vmem:[%s14304_s0 + $0x170] sm:$0xff] }
 0x15b   :  { %6905 = vmatpush.bf16.msra.mxu1 %v11109_v48  ;;  %v11179_v48 = vld [vmem:[%s14303_s1 + $0xc78] sm:$0xff] }
 0x15c   :  { %6918 = vmatpush.bf16.msra.mxu2 %v11117_v49  ;;  %v71_v49 = vld [vmem:[%s14304_s0 + $0x168] sm:$0xff] }
 0x15d   :  { %6931 = vmatpush.bf16.msra.mxu3 %v11125_v50  ;;  %v73_v50 = vld [vmem:[%s14304_s0 + $0x178] sm:$0xff] }
 0x15e   :  { %6893 = vmatpush.bf16.msra.mxu0 %v11100_v53  ;;  %v6687_v13 = vpop.f32.mrf.mxu0  ;;  %v166_v53 = vpack.c.bf16 %v70_v46, %v70_v46  ;;  %v11210_v46 = vld [vmem:[%s14303_s1 + $0xd70] sm:$0xff] }
 0x15f   :  { %6906 = vmatpush.bf16.msra.mxu1 %v11108_v54  ;;  %v6688_v14 = vadd.f32 %v6687_v13, %v12749_v41  ;;  %v6700_v17 = vpop.f32.mrf.mxu1  ;;  %v11132_v41 = vld [vmem:[%s14303_s1 + $0xb00] sm:$0xff]  ;;  %v168_v54 = vpack.c.bf16 %v72_v47, %v72_v47  ;;  %v11218_v47 = vld [vmem:[%s14303_s1 + $0xdb0] sm:$0xff] }
 0x160   :  { %6919 = vmatpush.bf16.msra.mxu2 %v11116_v55  ;;  %v167_v55 = vpack.c.bf16 %v71_v49, %v71_v49  ;;  %v11201_v49 = vld [vmem:[%s14303_s1 + $0xd28] sm:$0xff] }
 0x161   :  { %6932 = vmatpush.bf16.msra.mxu3 %v11124_v56  ;;  %6894 = vmatmul.bf16.vlgmr.msra.gmra.mxu0 %v162_v1  ;;  %v6701_v20 = vadd.f32 %v6700_v17, %v6688_v14  ;;  %v169_v56 = vpack.c.bf16 %v73_v50, %v73_v50  ;;  %v11209_v50 = vld [vmem:[%s14303_s1 + $0xd68] sm:$0xff] }
 0x162   :  { %6938 = vmatpush.bf16.msrb.mxu0 %v11139_v57  ;;  %6907 = vmatmul.bf16.vlgmr.msra.gmra.mxu1 %v163_v3  ;;  %v11170_v57 = vld [vmem:[%s14303_s1 + $0xc30] sm:$0xff]  ;;  %v11168_v3 = vld [vmem:[%s14303_s1 + $0xc20] sm:$0xff] }
 0x163   :  { %6951 = vmatpush.bf16.msrb.mxu1 %v11147_v60  ;;  %6920 = vmatmul.bf16.vlgmr.msra.gmra.mxu2 %v164_v2  ;;  %v11194_v60 = vld [vmem:[%s14303_s1 + $0xcf0] sm:$0xff] }
 0x164   :  { %6964 = vmatpush.bf16.msrb.mxu2 %v11155_v63  ;;  %6933 = vmatmul.bf16.vlgmr.msra.gmra.mxu3 %v165_v4  ;;  %v11185_v63 = vld [vmem:[%s14303_s1 + $0xca8] sm:$0xff]  ;;  %v11176_v4 = vld [vmem:[%s14303_s1 + $0xc60] sm:$0xff] }
 0x165   :  { %6977 = vmatpush.bf16.msrb.mxu3 %v11163_v0  ;;  %v11193_v0 = vld [vmem:[%s14303_s1 + $0xce8] sm:$0xff] }
 0x166   :  { %6939 = vmatpush.bf16.msrb.mxu0 %v11138_v5  ;;  %v6713_v25 = vpop.f32.mrf.mxu2  ;;  %v6689_v28 = vpop.f32.mrf.mxu0 }
 0x167   :  { %6952 = vmatpush.bf16.msrb.mxu1 %v11146_v6  ;;  %v6714_v26 = vadd.f32 %v6713_v25, %v6701_v20  ;;  %v6726_v27 = vpop.f32.mrf.mxu3  ;;  %v6702_v32 = vpop.f32.mrf.mxu1  ;;  %v11184_v6 = vld [vmem:[%s14303_s1 + $0xca0] sm:$0xff]  ;;  %v11181_v25 = vld [vmem:[%s14303_s1 + $0xc88] sm:$0xff] }
 0x168   :  { %6965 = vmatpush.bf16.msrb.mxu2 %v11154_v7  ;;  %v11192_v7 = vld [vmem:[%s14303_s1 + $0xce0] sm:$0xff] }
 0x169   :  { %6978 = vmatpush.bf16.msrb.mxu3 %v11162_v8  ;;  %v12860_v29 = vadd.f32 %v6726_v27, %v6714_v26  ;;  %v11189_v26 = vld [vmem:[%s14303_s1 + $0xcc8] sm:$0xff]  ;;  %v11188_v32 = vld [vmem:[%s14303_s1 + $0xcc0] sm:$0xff] }
 0x16a   :  { %6940 = vmatpush.bf16.msrb.mxu0 %v11137_v9  ;;  %v11167_v9 = vld [vmem:[%s14303_s1 + $0xc18] sm:$0xff] }
 0x16b   :  { %6953 = vmatpush.bf16.msrb.mxu1 %v11145_v10  ;;  %v11175_v10 = vld [vmem:[%s14303_s1 + $0xc58] sm:$0xff] }
 0x16c   :  { %6966 = vmatpush.bf16.msrb.mxu2 %v11153_v11  ;;  %v11183_v11 = vld [vmem:[%s14303_s1 + $0xc98] sm:$0xff] }
 0x16d   :  { %6979 = vmatpush.bf16.msrb.mxu3 %v11161_v12  ;;  %v11191_v12 = vld [vmem:[%s14303_s1 + $0xcd8] sm:$0xff] }
 0x16e   :  { %6941 = vmatpush.bf16.msrb.mxu0 %v11136_v15  ;;  %v6715_v39 = vpop.f32.mrf.mxu2 }
 0x16f   :  { %6954 = vmatpush.bf16.msrb.mxu1 %v11144_v16  ;;  %v6728_v40 = vpop.f32.mrf.mxu3  ;;  %v11219_v39 = vld [vmem:[%s14303_s1 + $0xdb8] sm:$0xff] }
 0x170   :  { %6967 = vmatpush.bf16.msrb.mxu2 %v11152_v18  ;;  %v11166_v18 = vld [vmem:[%s14303_s1 + $0xc10] sm:$0xff]  ;;  %v11227_v40 = vld [vmem:[%s14303_s1 + $0xdf8] sm:$0xff] }
 0x171   :  { %6980 = vmatpush.bf16.msrb.mxu3 %v11160_v19  ;;  %v11174_v19 = vld [vmem:[%s14303_s1 + $0xc50] sm:$0xff] }
 0x172   :  { %6942 = vmatpush.bf16.msrb.mxu0 %v11135_v21  ;;  %v11182_v21 = vld [vmem:[%s14303_s1 + $0xc90] sm:$0xff] }
 0x173   :  { %6955 = vmatpush.bf16.msrb.mxu1 %v11143_v22  ;;  %v11190_v22 = vld [vmem:[%s14303_s1 + $0xcd0] sm:$0xff] }
 0x174   :  { %6968 = vmatpush.bf16.msrb.mxu2 %v11151_v23  ;;  %v11165_v23 = vld [vmem:[%s14303_s1 + $0xc08] sm:$0xff] }
 0x175   :  { %6981 = vmatpush.bf16.msrb.mxu3 %v11159_v24  ;;  %v11173_v24 = vld [vmem:[%s14303_s1 + $0xc48] sm:$0xff] }
 0x176   :  { %6943 = vmatpush.bf16.msrb.mxu0 %v11134_v30  ;;  %v11172_v30 = vld [vmem:[%s14303_s1 + $0xc40] sm:$0xff] }
 0x177   :  { %6956 = vmatpush.bf16.msrb.mxu1 %v11142_v31  ;;  %v11180_v31 = vld [vmem:[%s14303_s1 + $0xc80] sm:$0xff] }
 0x178   :  { %6969 = vmatpush.bf16.msrb.mxu2 %v11150_v33  ;;  %v11203_v33 = vld [vmem:[%s14303_s1 + $0xd38] sm:$0xff] }
 0x179   :  { %6982 = vmatpush.bf16.msrb.mxu3 %v11158_v34  ;;  %v74_v34 = vld [vmem:[%s14304_s0 + $0x180] sm:$0xff] }
 0x17a   :  { %6944 = vmatpush.bf16.msrb.mxu0 %v11133_v35  ;;  %v76_v35 = vld [vmem:[%s14304_s0 + $0x190] sm:$0xff] }
 0x17b   :  { %6957 = vmatpush.bf16.msrb.mxu1 %v11141_v36  ;;  %v11211_v36 = vld [vmem:[%s14303_s1 + $0xd78] sm:$0xff] }
 0x17c   :  { %6970 = vmatpush.bf16.msrb.mxu2 %v11149_v37  ;;  %v75_v37 = vld [vmem:[%s14304_s0 + $0x188] sm:$0xff] }
 0x17d   :  { %6983 = vmatpush.bf16.msrb.mxu3 %v11157_v38  ;;  %v77_v38 = vld [vmem:[%s14304_s0 + $0x198] sm:$0xff] }
 0x17e   :  { %6945 = vmatpush.bf16.msrb.mxu0 %v11132_v41  ;;  %v6739_v1 = vpop.f32.mrf.mxu0  ;;  %v170_v41 = vpack.c.bf16 %v74_v34, %v74_v34  ;;  %v11242_v34 = vld [vmem:[%s14303_s1 + $0xe70] sm:$0xff] }
 0x17f   :  { %6958 = vmatpush.bf16.msrb.mxu1 %v11140_v42  ;;  %v6740_v2 = vadd.f32 %v6739_v1, %v12860_v29  ;;  %v6752_v5 = vpop.f32.mrf.mxu1  ;;  %v11164_v29 = vld [vmem:[%s14303_s1 + $0xc00] sm:$0xff]  ;;  %v172_v42 = vpack.c.bf16 %v76_v35, %v76_v35  ;;  %v11250_v35 = vld [vmem:[%s14303_s1 + $0xeb0] sm:$0xff] }
 0x180   :  { %6971 = vmatpush.bf16.msrb.mxu2 %v11148_v43  ;;  %v171_v43 = vpack.c.bf16 %v75_v37, %v75_v37  ;;  %v11233_v37 = vld [vmem:[%s14303_s1 + $0xe28] sm:$0xff] }
 0x181   :  { %6984 = vmatpush.bf16.msrb.mxu3 %v11156_v44  ;;  %6946 = vmatmul.bf16.vlgmr.msrb.gmra.mxu0 %v166_v53  ;;  %v6753_v8 = vadd.f32 %v6752_v5, %v6740_v2  ;;  %v173_v44 = vpack.c.bf16 %v77_v38, %v77_v38  ;;  %v11241_v38 = vld [vmem:[%s14303_s1 + $0xe68] sm:$0xff] }
 0x182   :  { %6990 = vmatpush.bf16.msra.mxu0 %v11171_v45  ;;  %6959 = vmatmul.bf16.vlgmr.msrb.gmra.mxu1 %v167_v55  ;;  %v11202_v45 = vld [vmem:[%s14303_s1 + $0xd30] sm:$0xff]  ;;  %v11200_v55 = vld [vmem:[%s14303_s1 + $0xd20] sm:$0xff] }
 0x183   :  { %7003 = vmatpush.bf16.msra.mxu1 %v11179_v48  ;;  %6972 = vmatmul.bf16.vlgmr.msrb.gmra.mxu2 %v168_v54  ;;  %v11226_v48 = vld [vmem:[%s14303_s1 + $0xdf0] sm:$0xff] }
 0x184   :  { %7016 = vmatpush.bf16.msra.mxu2 %v11187_v51  ;;  %6985 = vmatmul.bf16.vlgmr.msrb.gmra.mxu3 %v169_v56  ;;  %v11217_v51 = vld [vmem:[%s14303_s1 + $0xda8] sm:$0xff]  ;;  %v11208_v56 = vld [vmem:[%s14303_s1 + $0xd60] sm:$0xff] }
 0x185   :  { %7029 = vmatpush.bf16.msra.mxu3 %v11195_v52  ;;  %v11225_v52 = vld [vmem:[%s14303_s1 + $0xde8] sm:$0xff] }
 0x186   :  { %6991 = vmatpush.bf16.msra.mxu0 %v11170_v57  ;;  %v6765_v13 = vpop.f32.mrf.mxu2  ;;  %v6741_v16 = vpop.f32.mrf.mxu0 }
 0x187   :  { %7004 = vmatpush.bf16.msra.mxu1 %v11178_v58  ;;  %v6766_v14 = vadd.f32 %v6765_v13, %v6753_v8  ;;  %v6778_v15 = vpop.f32.mrf.mxu3  ;;  %v6754_v20 = vpop.f32.mrf.mxu1  ;;  %v11216_v58 = vld [vmem:[%s14303_s1 + $0xda0] sm:$0xff]  ;;  %v11213_v13 = vld [vmem:[%s14303_s1 + $0xd88] sm:$0xff] }
 0x188   :  { %7017 = vmatpush.bf16.msra.mxu2 %v11186_v59  ;;  %v11224_v59 = vld [vmem:[%s14303_s1 + $0xde0] sm:$0xff] }
 0x189   :  { %7030 = vmatpush.bf16.msra.mxu3 %v11194_v60  ;;  %v12971_v17 = vadd.f32 %v6778_v15, %v6766_v14  ;;  %v11221_v14 = vld [vmem:[%s14303_s1 + $0xdc8] sm:$0xff]  ;;  %v11220_v20 = vld [vmem:[%s14303_s1 + $0xdc0] sm:$0xff] }
 0x18a   :  { %6992 = vmatpush.bf16.msra.mxu0 %v11169_v61  ;;  %v11199_v61 = vld [vmem:[%s14303_s1 + $0xd18] sm:$0xff] }
 0x18b   :  { %7005 = vmatpush.bf16.msra.mxu1 %v11177_v62  ;;  %v11207_v62 = vld [vmem:[%s14303_s1 + $0xd58] sm:$0xff] }
 0x18c   :  { %7018 = vmatpush.bf16.msra.mxu2 %v11185_v63  ;;  %v11215_v63 = vld [vmem:[%s14303_s1 + $0xd98] sm:$0xff] }
 0x18d   :  { %7031 = vmatpush.bf16.msra.mxu3 %v11193_v0  ;;  %v11223_v0 = vld [vmem:[%s14303_s1 + $0xdd8] sm:$0xff] }
 0x18e   :  { %6993 = vmatpush.bf16.msra.mxu0 %v11168_v3  ;;  %v6767_v27 = vpop.f32.mrf.mxu2 }
 0x18f   :  { %7006 = vmatpush.bf16.msra.mxu1 %v11176_v4  ;;  %v6780_v28 = vpop.f32.mrf.mxu3  ;;  %v11251_v27 = vld [vmem:[%s14303_s1 + $0xeb8] sm:$0xff] }
 0x190   :  { %7019 = vmatpush.bf16.msra.mxu2 %v11184_v6  ;;  %v11198_v6 = vld [vmem:[%s14303_s1 + $0xd10] sm:$0xff]  ;;  %v11259_v28 = vld [vmem:[%s14303_s1 + $0xef8] sm:$0xff] }
 0x191   :  { %7032 = vmatpush.bf16.msra.mxu3 %v11192_v7  ;;  %v11206_v7 = vld [vmem:[%s14303_s1 + $0xd50] sm:$0xff] }
 0x192   :  { %6994 = vmatpush.bf16.msra.mxu0 %v11167_v9  ;;  %v11214_v9 = vld [vmem:[%s14303_s1 + $0xd90] sm:$0xff] }
 0x193   :  { %7007 = vmatpush.bf16.msra.mxu1 %v11175_v10  ;;  %v11222_v10 = vld [vmem:[%s14303_s1 + $0xdd0] sm:$0xff] }
 0x194   :  { %7020 = vmatpush.bf16.msra.mxu2 %v11183_v11  ;;  %v11197_v11 = vld [vmem:[%s14303_s1 + $0xd08] sm:$0xff] }
 0x195   :  { %7033 = vmatpush.bf16.msra.mxu3 %v11191_v12  ;;  %v11205_v12 = vld [vmem:[%s14303_s1 + $0xd48] sm:$0xff] }
 0x196   :  { %6995 = vmatpush.bf16.msra.mxu0 %v11166_v18  ;;  %v11204_v18 = vld [vmem:[%s14303_s1 + $0xd40] sm:$0xff] }
 0x197   :  { %7008 = vmatpush.bf16.msra.mxu1 %v11174_v19  ;;  %v11212_v19 = vld [vmem:[%s14303_s1 + $0xd80] sm:$0xff] }
 0x198   :  { %7021 = vmatpush.bf16.msra.mxu2 %v11182_v21  ;;  %v11235_v21 = vld [vmem:[%s14303_s1 + $0xe38] sm:$0xff] }
 0x199   :  { %7034 = vmatpush.bf16.msra.mxu3 %v11190_v22  ;;  %v78_v22 = vld [vmem:[%s14304_s0 + $0x1a0] sm:$0xff] }
 0x19a   :  { %6996 = vmatpush.bf16.msra.mxu0 %v11165_v23  ;;  %v80_v23 = vld [vmem:[%s14304_s0 + $0x1b0] sm:$0xff] }
 0x19b   :  { %7009 = vmatpush.bf16.msra.mxu1 %v11173_v24  ;;  %v11243_v24 = vld [vmem:[%s14303_s1 + $0xe78] sm:$0xff] }
 0x19c   :  { %7022 = vmatpush.bf16.msra.mxu2 %v11181_v25  ;;  %v79_v25 = vld [vmem:[%s14304_s0 + $0x1a8] sm:$0xff] }
 0x19d   :  { %7035 = vmatpush.bf16.msra.mxu3 %v11189_v26  ;;  %v81_v26 = vld [vmem:[%s14304_s0 + $0x1b8] sm:$0xff] }
 0x19e   :  { %6997 = vmatpush.bf16.msra.mxu0 %v11164_v29  ;;  %v6791_v53 = vpop.f32.mrf.mxu0  ;;  %v174_v29 = vpack.c.bf16 %v78_v22, %v78_v22  ;;  %v11274_v22 = vld [vmem:[%s14303_s1 + $0xf70] sm:$0xff] }
 0x19f   :  { %7010 = vmatpush.bf16.msra.mxu1 %v11172_v30  ;;  %v6792_v54 = vadd.f32 %v6791_v53, %v12971_v17  ;;  %v6804_v57 = vpop.f32.mrf.mxu1  ;;  %v11196_v17 = vld [vmem:[%s14303_s1 + $0xd00] sm:$0xff]  ;;  %v176_v30 = vpack.c.bf16 %v80_v23, %v80_v23  ;;  %v11282_v23 = vld [vmem:[%s14303_s1 + $0xfb0] sm:$0xff] }
 0x1a0   :  { %7023 = vmatpush.bf16.msra.mxu2 %v11180_v31  ;;  %v175_v31 = vpack.c.bf16 %v79_v25, %v79_v25  ;;  %v11265_v25 = vld [vmem:[%s14303_s1 + $0xf28] sm:$0xff] }
 0x1a1   :  { %7036 = vmatpush.bf16.msra.mxu3 %v11188_v32  ;;  %6998 = vmatmul.bf16.vlgmr.msra.gmra.mxu0 %v170_v41  ;;  %v6805_v60 = vadd.f32 %v6804_v57, %v6792_v54  ;;  %v177_v32 = vpack.c.bf16 %v81_v26, %v81_v26  ;;  %v11273_v26 = vld [vmem:[%s14303_s1 + $0xf68] sm:$0xff] }
 0x1a2   :  { %7042 = vmatpush.bf16.msrb.mxu0 %v11203_v33  ;;  %7011 = vmatmul.bf16.vlgmr.msra.gmra.mxu1 %v171_v43  ;;  %v11234_v33 = vld [vmem:[%s14303_s1 + $0xe30] sm:$0xff]  ;;  %v11232_v43 = vld [vmem:[%s14303_s1 + $0xe20] sm:$0xff] }
 0x1a3   :  { %7055 = vmatpush.bf16.msrb.mxu1 %v11211_v36  ;;  %7024 = vmatmul.bf16.vlgmr.msra.gmra.mxu2 %v172_v42  ;;  %v11258_v36 = vld [vmem:[%s14303_s1 + $0xef0] sm:$0xff] }
 0x1a4   :  { %7068 = vmatpush.bf16.msrb.mxu2 %v11219_v39  ;;  %7037 = vmatmul.bf16.vlgmr.msra.gmra.mxu3 %v173_v44  ;;  %v11249_v39 = vld [vmem:[%s14303_s1 + $0xea8] sm:$0xff]  ;;  %v11240_v44 = vld [vmem:[%s14303_s1 + $0xe60] sm:$0xff] }
 0x1a5   :  { %7081 = vmatpush.bf16.msrb.mxu3 %v11227_v40  ;;  %v11257_v40 = vld [vmem:[%s14303_s1 + $0xee8] sm:$0xff] }
 0x1a6   :  { %7043 = vmatpush.bf16.msrb.mxu0 %v11202_v45  ;;  %v6817_v1 = vpop.f32.mrf.mxu2  ;;  %v6793_v4 = vpop.f32.mrf.mxu0 }
 0x1a7   :  { %7056 = vmatpush.bf16.msrb.mxu1 %v11210_v46  ;;  %v6818_v2 = vadd.f32 %v6817_v1, %v6805_v60  ;;  %v6830_v3 = vpop.f32.mrf.mxu3  ;;  %v6806_v8 = vpop.f32.mrf.mxu1  ;;  %v11248_v46 = vld [vmem:[%s14303_s1 + $0xea0] sm:$0xff]  ;;  %v11245_v1 = vld [vmem:[%s14303_s1 + $0xe88] sm:$0xff] }
 0x1a8   :  { %7069 = vmatpush.bf16.msrb.mxu2 %v11218_v47  ;;  %v11256_v47 = vld [vmem:[%s14303_s1 + $0xee0] sm:$0xff] }
 0x1a9   :  { %7082 = vmatpush.bf16.msrb.mxu3 %v11226_v48  ;;  %v13082_v5 = vadd.f32 %v6830_v3, %v6818_v2  ;;  %v11253_v2 = vld [vmem:[%s14303_s1 + $0xec8] sm:$0xff]  ;;  %v11252_v8 = vld [vmem:[%s14303_s1 + $0xec0] sm:$0xff] }
 0x1aa   :  { %7044 = vmatpush.bf16.msrb.mxu0 %v11201_v49  ;;  %v11231_v49 = vld [vmem:[%s14303_s1 + $0xe18] sm:$0xff] }
 0x1ab   :  { %7057 = vmatpush.bf16.msrb.mxu1 %v11209_v50  ;;  %v11239_v50 = vld [vmem:[%s14303_s1 + $0xe58] sm:$0xff] }
 0x1ac   :  { %7070 = vmatpush.bf16.msrb.mxu2 %v11217_v51  ;;  %v11247_v51 = vld [vmem:[%s14303_s1 + $0xe98] sm:$0xff] }
 0x1ad   :  { %7083 = vmatpush.bf16.msrb.mxu3 %v11225_v52  ;;  %v11255_v52 = vld [vmem:[%s14303_s1 + $0xed8] sm:$0xff] }
 0x1ae   :  { %7045 = vmatpush.bf16.msrb.mxu0 %v11200_v55  ;;  %v6819_v15 = vpop.f32.mrf.mxu2 }
 0x1af   :  { %7058 = vmatpush.bf16.msrb.mxu1 %v11208_v56  ;;  %v6832_v16 = vpop.f32.mrf.mxu3  ;;  %v11283_v15 = vld [vmem:[%s14303_s1 + $0xfb8] sm:$0xff] }
 0x1b0   :  { %7071 = vmatpush.bf16.msrb.mxu2 %v11216_v58  ;;  %v11230_v58 = vld [vmem:[%s14303_s1 + $0xe10] sm:$0xff]  ;;  %v11291_v16 = vld [vmem:[%s14303_s1 + $0xff8] sm:$0xff] }
 0x1b1   :  { %7084 = vmatpush.bf16.msrb.mxu3 %v11224_v59  ;;  %v11238_v59 = vld [vmem:[%s14303_s1 + $0xe50] sm:$0xff] }
 0x1b2   :  { %7046 = vmatpush.bf16.msrb.mxu0 %v11199_v61  ;;  %v11246_v61 = vld [vmem:[%s14303_s1 + $0xe90] sm:$0xff] }
 0x1b3   :  { %7059 = vmatpush.bf16.msrb.mxu1 %v11207_v62  ;;  %v11254_v62 = vld [vmem:[%s14303_s1 + $0xed0] sm:$0xff] }
 0x1b4   :  { %7072 = vmatpush.bf16.msrb.mxu2 %v11215_v63  ;;  %v11229_v63 = vld [vmem:[%s14303_s1 + $0xe08] sm:$0xff] }
 0x1b5   :  { %7085 = vmatpush.bf16.msrb.mxu3 %v11223_v0  ;;  %v11237_v0 = vld [vmem:[%s14303_s1 + $0xe48] sm:$0xff] }
 0x1b6   :  { %7047 = vmatpush.bf16.msrb.mxu0 %v11198_v6  ;;  %v11236_v6 = vld [vmem:[%s14303_s1 + $0xe40] sm:$0xff] }
 0x1b7   :  { %7060 = vmatpush.bf16.msrb.mxu1 %v11206_v7  ;;  %v11244_v7 = vld [vmem:[%s14303_s1 + $0xe80] sm:$0xff] }
 0x1b8   :  { %7073 = vmatpush.bf16.msrb.mxu2 %v11214_v9  ;;  %v11267_v9 = vld [vmem:[%s14303_s1 + $0xf38] sm:$0xff] }
 0x1b9   :  { %7086 = vmatpush.bf16.msrb.mxu3 %v11222_v10  ;;  %v82_v10 = vld [vmem:[%s14304_s0 + $0x1c0] sm:$0xff] }
 0x1ba   :  { %7048 = vmatpush.bf16.msrb.mxu0 %v11197_v11  ;;  %v84_v11 = vld [vmem:[%s14304_s0 + $0x1d0] sm:$0xff] }
 0x1bb   :  { %7061 = vmatpush.bf16.msrb.mxu1 %v11205_v12  ;;  %v11275_v12 = vld [vmem:[%s14303_s1 + $0xf78] sm:$0xff] }
 0x1bc   :  { %7074 = vmatpush.bf16.msrb.mxu2 %v11213_v13  ;;  %v83_v13 = vld [vmem:[%s14304_s0 + $0x1c8] sm:$0xff] }
 0x1bd   :  { %7087 = vmatpush.bf16.msrb.mxu3 %v11221_v14  ;;  %v85_v14 = vld [vmem:[%s14304_s0 + $0x1d8] sm:$0xff] }
 0x1be   :  { %7049 = vmatpush.bf16.msrb.mxu0 %v11196_v17  ;;  %v6843_v41 = vpop.f32.mrf.mxu0  ;;  %v178_v17 = vpack.c.bf16 %v82_v10, %v82_v10  ;;  %v11306_v10 = vld [vmem:[%s14303_s1 + $0x1070] sm:$0xff] }
 0x1bf   :  { %7062 = vmatpush.bf16.msrb.mxu1 %v11204_v18  ;;  %v6844_v42 = vadd.f32 %v6843_v41, %v13082_v5  ;;  %v6856_v45 = vpop.f32.mrf.mxu1  ;;  %v11228_v5 = vld [vmem:[%s14303_s1 + $0xe00] sm:$0xff]  ;;  %v180_v18 = vpack.c.bf16 %v84_v11, %v84_v11  ;;  %v11314_v11 = vld [vmem:[%s14303_s1 + $0x10b0] sm:$0xff] }
 0x1c0   :  { %7075 = vmatpush.bf16.msrb.mxu2 %v11212_v19  ;;  %v179_v19 = vpack.c.bf16 %v83_v13, %v83_v13  ;;  %v11297_v13 = vld [vmem:[%s14303_s1 + $0x1028] sm:$0xff] }
 0x1c1   :  { %7088 = vmatpush.bf16.msrb.mxu3 %v11220_v20  ;;  %7050 = vmatmul.bf16.vlgmr.msrb.gmra.mxu0 %v174_v29  ;;  %v6857_v48 = vadd.f32 %v6856_v45, %v6844_v42  ;;  %v181_v20 = vpack.c.bf16 %v85_v14, %v85_v14  ;;  %v11305_v14 = vld [vmem:[%s14303_s1 + $0x1068] sm:$0xff] }
 0x1c2   :  { %7094 = vmatpush.bf16.msra.mxu0 %v11235_v21  ;;  %7063 = vmatmul.bf16.vlgmr.msrb.gmra.mxu1 %v175_v31  ;;  %v11266_v21 = vld [vmem:[%s14303_s1 + $0xf30] sm:$0xff]  ;;  %v11264_v31 = vld [vmem:[%s14303_s1 + $0xf20] sm:$0xff] }
 0x1c3   :  { %7107 = vmatpush.bf16.msra.mxu1 %v11243_v24  ;;  %7076 = vmatmul.bf16.vlgmr.msrb.gmra.mxu2 %v176_v30  ;;  %v11290_v24 = vld [vmem:[%s14303_s1 + $0xff0] sm:$0xff] }
 0x1c4   :  { %7120 = vmatpush.bf16.msra.mxu2 %v11251_v27  ;;  %7089 = vmatmul.bf16.vlgmr.msrb.gmra.mxu3 %v177_v32  ;;  %v11281_v27 = vld [vmem:[%s14303_s1 + $0xfa8] sm:$0xff]  ;;  %v11272_v32 = vld [vmem:[%s14303_s1 + $0xf60] sm:$0xff] }
 0x1c5   :  { %7133 = vmatpush.bf16.msra.mxu3 %v11259_v28  ;;  %v11289_v28 = vld [vmem:[%s14303_s1 + $0xfe8] sm:$0xff] }
 0x1c6   :  { %7095 = vmatpush.bf16.msra.mxu0 %v11234_v33  ;;  %v6869_v53 = vpop.f32.mrf.mxu2  ;;  %v6845_v56 = vpop.f32.mrf.mxu0 }
 0x1c7   :  { %7108 = vmatpush.bf16.msra.mxu1 %v11242_v34  ;;  %v6870_v54 = vadd.f32 %v6869_v53, %v6857_v48  ;;  %v6882_v55 = vpop.f32.mrf.mxu3  ;;  %v6858_v60 = vpop.f32.mrf.mxu1  ;;  %v11280_v34 = vld [vmem:[%s14303_s1 + $0xfa0] sm:$0xff]  ;;  %v11277_v53 = vld [vmem:[%s14303_s1 + $0xf88] sm:$0xff] }
 0x1c8   :  { %7121 = vmatpush.bf16.msra.mxu2 %v11250_v35  ;;  %v11288_v35 = vld [vmem:[%s14303_s1 + $0xfe0] sm:$0xff] }
 0x1c9   :  { %7134 = vmatpush.bf16.msra.mxu3 %v11258_v36  ;;  %v13193_v57 = vadd.f32 %v6882_v55, %v6870_v54  ;;  %v11285_v54 = vld [vmem:[%s14303_s1 + $0xfc8] sm:$0xff]  ;;  %v11284_v60 = vld [vmem:[%s14303_s1 + $0xfc0] sm:$0xff] }
 0x1ca   :  { %7096 = vmatpush.bf16.msra.mxu0 %v11233_v37  ;;  %v11263_v37 = vld [vmem:[%s14303_s1 + $0xf18] sm:$0xff] }
 0x1cb   :  { %7109 = vmatpush.bf16.msra.mxu1 %v11241_v38  ;;  %v11271_v38 = vld [vmem:[%s14303_s1 + $0xf58] sm:$0xff] }
 0x1cc   :  { %7122 = vmatpush.bf16.msra.mxu2 %v11249_v39  ;;  %v11279_v39 = vld [vmem:[%s14303_s1 + $0xf98] sm:$0xff] }
 0x1cd   :  { %7135 = vmatpush.bf16.msra.mxu3 %v11257_v40  ;;  %v11287_v40 = vld [vmem:[%s14303_s1 + $0xfd8] sm:$0xff] }
 0x1ce   :  { %7097 = vmatpush.bf16.msra.mxu0 %v11232_v43  ;;  %v6871_v3 = vpop.f32.mrf.mxu2 }
 0x1cf   :  { %7110 = vmatpush.bf16.msra.mxu1 %v11240_v44  ;;  %v6884_v4 = vpop.f32.mrf.mxu3  ;;  %v11315_v3 = vld [vmem:[%s14303_s1 + $0x10b8] sm:$0xff] }
 0x1d0   :  { %7123 = vmatpush.bf16.msra.mxu2 %v11248_v46  ;;  %v11262_v46 = vld [vmem:[%s14303_s1 + $0xf10] sm:$0xff]  ;;  %v11323_v4 = vld [vmem:[%s14303_s1 + $0x10f8] sm:$0xff] }
 0x1d1   :  { %7136 = vmatpush.bf16.msra.mxu3 %v11256_v47  ;;  %v11270_v47 = vld [vmem:[%s14303_s1 + $0xf50] sm:$0xff] }
 0x1d2   :  { %7098 = vmatpush.bf16.msra.mxu0 %v11231_v49  ;;  %v11278_v49 = vld [vmem:[%s14303_s1 + $0xf90] sm:$0xff] }
 0x1d3   :  { %7111 = vmatpush.bf16.msra.mxu1 %v11239_v50  ;;  %v11286_v50 = vld [vmem:[%s14303_s1 + $0xfd0] sm:$0xff] }
 0x1d4   :  { %7124 = vmatpush.bf16.msra.mxu2 %v11247_v51  ;;  %v11261_v51 = vld [vmem:[%s14303_s1 + $0xf08] sm:$0xff] }
 0x1d5   :  { %7137 = vmatpush.bf16.msra.mxu3 %v11255_v52  ;;  %v11269_v52 = vld [vmem:[%s14303_s1 + $0xf48] sm:$0xff] }
 0x1d6   :  { %7099 = vmatpush.bf16.msra.mxu0 %v11230_v58  ;;  %v11268_v58 = vld [vmem:[%s14303_s1 + $0xf40] sm:$0xff] }
 0x1d7   :  { %7112 = vmatpush.bf16.msra.mxu1 %v11238_v59  ;;  %v11276_v59 = vld [vmem:[%s14303_s1 + $0xf80] sm:$0xff] }
 0x1d8   :  { %7125 = vmatpush.bf16.msra.mxu2 %v11246_v61  ;;  %v11299_v61 = vld [vmem:[%s14303_s1 + $0x1038] sm:$0xff] }
 0x1d9   :  { %7138 = vmatpush.bf16.msra.mxu3 %v11254_v62  ;;  %v86_v62 = vld [vmem:[%s14304_s0 + $0x1e0] sm:$0xff] }
 0x1da   :  { %7100 = vmatpush.bf16.msra.mxu0 %v11229_v63  ;;  %v88_v63 = vld [vmem:[%s14304_s0 + $0x1f0] sm:$0xff] }
 0x1db   :  { %7113 = vmatpush.bf16.msra.mxu1 %v11237_v0  ;;  %v11307_v0 = vld [vmem:[%s14303_s1 + $0x1078] sm:$0xff] }
 0x1dc   :  { %7126 = vmatpush.bf16.msra.mxu2 %v11245_v1  ;;  %v87_v1 = vld [vmem:[%s14304_s0 + $0x1e8] sm:$0xff] }
 0x1dd   :  { %7139 = vmatpush.bf16.msra.mxu3 %v11253_v2  ;;  %v89_v2 = vld [vmem:[%s14304_s0 + $0x1f8] sm:$0xff] }
 0x1de   :  { %7101 = vmatpush.bf16.msra.mxu0 %v11228_v5  ;;  %v6895_v29 = vpop.f32.mrf.mxu0  ;;  %v182_v5 = vpack.c.bf16 %v86_v62, %v86_v62  ;;  %v11338_v62 = vld [vmem:[%s14303_s1 + $0x1170] sm:$0xff] }
 0x1df   :  { %7114 = vmatpush.bf16.msra.mxu1 %v11236_v6  ;;  %v6896_v30 = vadd.f32 %v6895_v29, %v13193_v57  ;;  %v6908_v33 = vpop.f32.mrf.mxu1  ;;  %v11260_v57 = vld [vmem:[%s14303_s1 + $0xf00] sm:$0xff]  ;;  %v184_v6 = vpack.c.bf16 %v88_v63, %v88_v63  ;;  %v11346_v63 = vld [vmem:[%s14303_s1 + $0x11b0] sm:$0xff] }
 0x1e0   :  { %7127 = vmatpush.bf16.msra.mxu2 %v11244_v7  ;;  %v183_v7 = vpack.c.bf16 %v87_v1, %v87_v1  ;;  %v11329_v1 = vld [vmem:[%s14303_s1 + $0x1128] sm:$0xff] }
 0x1e1   :  { %7140 = vmatpush.bf16.msra.mxu3 %v11252_v8  ;;  %7102 = vmatmul.bf16.vlgmr.msra.gmra.mxu0 %v178_v17  ;;  %v6909_v36 = vadd.f32 %v6908_v33, %v6896_v30  ;;  %v185_v8 = vpack.c.bf16 %v89_v2, %v89_v2  ;;  %v11337_v2 = vld [vmem:[%s14303_s1 + $0x1168] sm:$0xff] }
 0x1e2   :  { %7146 = vmatpush.bf16.msrb.mxu0 %v11267_v9  ;;  %7115 = vmatmul.bf16.vlgmr.msra.gmra.mxu1 %v179_v19  ;;  %v11298_v9 = vld [vmem:[%s14303_s1 + $0x1030] sm:$0xff]  ;;  %v11296_v19 = vld [vmem:[%s14303_s1 + $0x1020] sm:$0xff] }
 0x1e3   :  { %7159 = vmatpush.bf16.msrb.mxu1 %v11275_v12  ;;  %7128 = vmatmul.bf16.vlgmr.msra.gmra.mxu2 %v180_v18  ;;  %v11322_v12 = vld [vmem:[%s14303_s1 + $0x10f0] sm:$0xff] }
 0x1e4   :  { %7172 = vmatpush.bf16.msrb.mxu2 %v11283_v15  ;;  %7141 = vmatmul.bf16.vlgmr.msra.gmra.mxu3 %v181_v20  ;;  %v11313_v15 = vld [vmem:[%s14303_s1 + $0x10a8] sm:$0xff]  ;;  %v11304_v20 = vld [vmem:[%s14303_s1 + $0x1060] sm:$0xff] }
 0x1e5   :  { %7185 = vmatpush.bf16.msrb.mxu3 %v11291_v16  ;;  %v11321_v16 = vld [vmem:[%s14303_s1 + $0x10e8] sm:$0xff] }
 0x1e6   :  { %7147 = vmatpush.bf16.msrb.mxu0 %v11266_v21  ;;  %v6921_v41 = vpop.f32.mrf.mxu2  ;;  %v6897_v44 = vpop.f32.mrf.mxu0 }
 0x1e7   :  { %7160 = vmatpush.bf16.msrb.mxu1 %v11274_v22  ;;  %v6922_v42 = vadd.f32 %v6921_v41, %v6909_v36  ;;  %v6934_v43 = vpop.f32.mrf.mxu3  ;;  %v6910_v48 = vpop.f32.mrf.mxu1  ;;  %v11312_v22 = vld [vmem:[%s14303_s1 + $0x10a0] sm:$0xff]  ;;  %v11309_v41 = vld [vmem:[%s14303_s1 + $0x1088] sm:$0xff] }
 0x1e8   :  { %7173 = vmatpush.bf16.msrb.mxu2 %v11282_v23  ;;  %v11320_v23 = vld [vmem:[%s14303_s1 + $0x10e0] sm:$0xff] }
 0x1e9   :  { %7186 = vmatpush.bf16.msrb.mxu3 %v11290_v24  ;;  %v13304_v45 = vadd.f32 %v6934_v43, %v6922_v42  ;;  %v11317_v42 = vld [vmem:[%s14303_s1 + $0x10c8] sm:$0xff]  ;;  %v11316_v48 = vld [vmem:[%s14303_s1 + $0x10c0] sm:$0xff] }
 0x1ea   :  { %7148 = vmatpush.bf16.msrb.mxu0 %v11265_v25  ;;  %v11295_v25 = vld [vmem:[%s14303_s1 + $0x1018] sm:$0xff] }
 0x1eb   :  { %7161 = vmatpush.bf16.msrb.mxu1 %v11273_v26  ;;  %v11303_v26 = vld [vmem:[%s14303_s1 + $0x1058] sm:$0xff] }
 0x1ec   :  { %7174 = vmatpush.bf16.msrb.mxu2 %v11281_v27  ;;  %v11311_v27 = vld [vmem:[%s14303_s1 + $0x1098] sm:$0xff] }
 0x1ed   :  { %7187 = vmatpush.bf16.msrb.mxu3 %v11289_v28  ;;  %v11319_v28 = vld [vmem:[%s14303_s1 + $0x10d8] sm:$0xff] }
 0x1ee   :  { %7149 = vmatpush.bf16.msrb.mxu0 %v11264_v31  ;;  %v6923_v55 = vpop.f32.mrf.mxu2 }
 0x1ef   :  { %7162 = vmatpush.bf16.msrb.mxu1 %v11272_v32  ;;  %v6936_v56 = vpop.f32.mrf.mxu3  ;;  %v11347_v55 = vld [vmem:[%s14303_s1 + $0x11b8] sm:$0xff] }
 0x1f0   :  { %7175 = vmatpush.bf16.msrb.mxu2 %v11280_v34  ;;  %v11294_v34 = vld [vmem:[%s14303_s1 + $0x1010] sm:$0xff]  ;;  %v11355_v56 = vld [vmem:[%s14303_s1 + $0x11f8] sm:$0xff] }
 0x1f1   :  { %7188 = vmatpush.bf16.msrb.mxu3 %v11288_v35  ;;  %v11302_v35 = vld [vmem:[%s14303_s1 + $0x1050] sm:$0xff] }
 0x1f2   :  { %7150 = vmatpush.bf16.msrb.mxu0 %v11263_v37  ;;  %v11310_v37 = vld [vmem:[%s14303_s1 + $0x1090] sm:$0xff] }
 0x1f3   :  { %7163 = vmatpush.bf16.msrb.mxu1 %v11271_v38  ;;  %v11318_v38 = vld [vmem:[%s14303_s1 + $0x10d0] sm:$0xff] }
 0x1f4   :  { %7176 = vmatpush.bf16.msrb.mxu2 %v11279_v39  ;;  %v11293_v39 = vld [vmem:[%s14303_s1 + $0x1008] sm:$0xff] }
 0x1f5   :  { %7189 = vmatpush.bf16.msrb.mxu3 %v11287_v40  ;;  %v11301_v40 = vld [vmem:[%s14303_s1 + $0x1048] sm:$0xff] }
 0x1f6   :  { %7151 = vmatpush.bf16.msrb.mxu0 %v11262_v46  ;;  %v11300_v46 = vld [vmem:[%s14303_s1 + $0x1040] sm:$0xff] }
 0x1f7   :  { %7164 = vmatpush.bf16.msrb.mxu1 %v11270_v47  ;;  %v11308_v47 = vld [vmem:[%s14303_s1 + $0x1080] sm:$0xff] }
 0x1f8   :  { %7177 = vmatpush.bf16.msrb.mxu2 %v11278_v49  ;;  %v11331_v49 = vld [vmem:[%s14303_s1 + $0x1138] sm:$0xff] }
 0x1f9   :  { %7190 = vmatpush.bf16.msrb.mxu3 %v11286_v50  ;;  %v90_v50 = vld [vmem:[%s14304_s0 + $0x200] sm:$0xff] }
 0x1fa   :  { %7152 = vmatpush.bf16.msrb.mxu0 %v11261_v51  ;;  %v92_v51 = vld [vmem:[%s14304_s0 + $0x210] sm:$0xff] }
 0x1fb   :  { %7165 = vmatpush.bf16.msrb.mxu1 %v11269_v52  ;;  %v11339_v52 = vld [vmem:[%s14303_s1 + $0x1178] sm:$0xff] }
 0x1fc   :  { %7178 = vmatpush.bf16.msrb.mxu2 %v11277_v53  ;;  %v91_v53 = vld [vmem:[%s14304_s0 + $0x208] sm:$0xff] }
 0x1fd   :  { %7191 = vmatpush.bf16.msrb.mxu3 %v11285_v54  ;;  %v93_v54 = vld [vmem:[%s14304_s0 + $0x218] sm:$0xff] }
 0x1fe   :  { %7153 = vmatpush.bf16.msrb.mxu0 %v11260_v57  ;;  %v6947_v17 = vpop.f32.mrf.mxu0  ;;  %v186_v57 = vpack.c.bf16 %v90_v50, %v90_v50  ;;  %v11370_v50 = vld [vmem:[%s14303_s1 + $0x1270] sm:$0xff] }
 0x1ff   :  { %7166 = vmatpush.bf16.msrb.mxu1 %v11268_v58  ;;  %v6948_v18 = vadd.f32 %v6947_v17, %v13304_v45  ;;  %v6960_v21 = vpop.f32.mrf.mxu1  ;;  %v11292_v45 = vld [vmem:[%s14303_s1 + $0x1000] sm:$0xff]  ;;  %v188_v58 = vpack.c.bf16 %v92_v51, %v92_v51  ;;  %v11378_v51 = vld [vmem:[%s14303_s1 + $0x12b0] sm:$0xff] }
 0x200   :  { %7179 = vmatpush.bf16.msrb.mxu2 %v11276_v59  ;;  %v187_v59 = vpack.c.bf16 %v91_v53, %v91_v53  ;;  %v11361_v53 = vld [vmem:[%s14303_s1 + $0x1228] sm:$0xff] }
 0x201   :  { %7192 = vmatpush.bf16.msrb.mxu3 %v11284_v60  ;;  %7154 = vmatmul.bf16.vlgmr.msrb.gmra.mxu0 %v182_v5  ;;  %v6961_v24 = vadd.f32 %v6960_v21, %v6948_v18  ;;  %v189_v60 = vpack.c.bf16 %v93_v54, %v93_v54  ;;  %v11369_v54 = vld [vmem:[%s14303_s1 + $0x1268] sm:$0xff] }
 0x202   :  { %7198 = vmatpush.bf16.msra.mxu0 %v11299_v61  ;;  %7167 = vmatmul.bf16.vlgmr.msrb.gmra.mxu1 %v183_v7  ;;  %v11330_v61 = vld [vmem:[%s14303_s1 + $0x1130] sm:$0xff]  ;;  %v11328_v7 = vld [vmem:[%s14303_s1 + $0x1120] sm:$0xff] }
 0x203   :  { %7211 = vmatpush.bf16.msra.mxu1 %v11307_v0  ;;  %7180 = vmatmul.bf16.vlgmr.msrb.gmra.mxu2 %v184_v6  ;;  %v11354_v0 = vld [vmem:[%s14303_s1 + $0x11f0] sm:$0xff] }
 0x204   :  { %7224 = vmatpush.bf16.msra.mxu2 %v11315_v3  ;;  %7193 = vmatmul.bf16.vlgmr.msrb.gmra.mxu3 %v185_v8  ;;  %v11345_v3 = vld [vmem:[%s14303_s1 + $0x11a8] sm:$0xff]  ;;  %v11336_v8 = vld [vmem:[%s14303_s1 + $0x1160] sm:$0xff] }
 0x205   :  { %7237 = vmatpush.bf16.msra.mxu3 %v11323_v4  ;;  %v11353_v4 = vld [vmem:[%s14303_s1 + $0x11e8] sm:$0xff] }
 0x206   :  { %7199 = vmatpush.bf16.msra.mxu0 %v11298_v9  ;;  %v6973_v29 = vpop.f32.mrf.mxu2  ;;  %v6949_v32 = vpop.f32.mrf.mxu0 }
 0x207   :  { %7212 = vmatpush.bf16.msra.mxu1 %v11306_v10  ;;  %v6974_v30 = vadd.f32 %v6973_v29, %v6961_v24  ;;  %v6986_v31 = vpop.f32.mrf.mxu3  ;;  %v6962_v36 = vpop.f32.mrf.mxu1  ;;  %v11344_v10 = vld [vmem:[%s14303_s1 + $0x11a0] sm:$0xff]  ;;  %v11341_v29 = vld [vmem:[%s14303_s1 + $0x1188] sm:$0xff] }
 0x208   :  { %7225 = vmatpush.bf16.msra.mxu2 %v11314_v11  ;;  %v11352_v11 = vld [vmem:[%s14303_s1 + $0x11e0] sm:$0xff] }
 0x209   :  { %7238 = vmatpush.bf16.msra.mxu3 %v11322_v12  ;;  %v13415_v33 = vadd.f32 %v6986_v31, %v6974_v30  ;;  %v11349_v30 = vld [vmem:[%s14303_s1 + $0x11c8] sm:$0xff]  ;;  %v11348_v36 = vld [vmem:[%s14303_s1 + $0x11c0] sm:$0xff] }
 0x20a   :  { %7200 = vmatpush.bf16.msra.mxu0 %v11297_v13  ;;  %v11327_v13 = vld [vmem:[%s14303_s1 + $0x1118] sm:$0xff] }
 0x20b   :  { %7213 = vmatpush.bf16.msra.mxu1 %v11305_v14  ;;  %v11335_v14 = vld [vmem:[%s14303_s1 + $0x1158] sm:$0xff] }
 0x20c   :  { %7226 = vmatpush.bf16.msra.mxu2 %v11313_v15  ;;  %v11343_v15 = vld [vmem:[%s14303_s1 + $0x1198] sm:$0xff] }
 0x20d   :  { %7239 = vmatpush.bf16.msra.mxu3 %v11321_v16  ;;  %v11351_v16 = vld [vmem:[%s14303_s1 + $0x11d8] sm:$0xff] }
 0x20e   :  { %7201 = vmatpush.bf16.msra.mxu0 %v11296_v19  ;;  %v6975_v43 = vpop.f32.mrf.mxu2 }
 0x20f   :  { %7214 = vmatpush.bf16.msra.mxu1 %v11304_v20  ;;  %v6988_v44 = vpop.f32.mrf.mxu3  ;;  %v11379_v43 = vld [vmem:[%s14303_s1 + $0x12b8] sm:$0xff] }
 0x210   :  { %7227 = vmatpush.bf16.msra.mxu2 %v11312_v22  ;;  %v11326_v22 = vld [vmem:[%s14303_s1 + $0x1110] sm:$0xff]  ;;  %v11387_v44 = vld [vmem:[%s14303_s1 + $0x12f8] sm:$0xff] }
 0x211   :  { %7240 = vmatpush.bf16.msra.mxu3 %v11320_v23  ;;  %v11334_v23 = vld [vmem:[%s14303_s1 + $0x1150] sm:$0xff] }
 0x212   :  { %7202 = vmatpush.bf16.msra.mxu0 %v11295_v25  ;;  %v11342_v25 = vld [vmem:[%s14303_s1 + $0x1190] sm:$0xff] }
 0x213   :  { %7215 = vmatpush.bf16.msra.mxu1 %v11303_v26  ;;  %v11350_v26 = vld [vmem:[%s14303_s1 + $0x11d0] sm:$0xff] }
 0x214   :  { %7228 = vmatpush.bf16.msra.mxu2 %v11311_v27  ;;  %v11325_v27 = vld [vmem:[%s14303_s1 + $0x1108] sm:$0xff] }
 0x215   :  { %7241 = vmatpush.bf16.msra.mxu3 %v11319_v28  ;;  %v11333_v28 = vld [vmem:[%s14303_s1 + $0x1148] sm:$0xff] }
 0x216   :  { %7203 = vmatpush.bf16.msra.mxu0 %v11294_v34  ;;  %v11332_v34 = vld [vmem:[%s14303_s1 + $0x1140] sm:$0xff] }
 0x217   :  { %7216 = vmatpush.bf16.msra.mxu1 %v11302_v35  ;;  %v11340_v35 = vld [vmem:[%s14303_s1 + $0x1180] sm:$0xff] }
 0x218   :  { %7229 = vmatpush.bf16.msra.mxu2 %v11310_v37  ;;  %v11363_v37 = vld [vmem:[%s14303_s1 + $0x1238] sm:$0xff] }
 0x219   :  { %7242 = vmatpush.bf16.msra.mxu3 %v11318_v38  ;;  %v94_v38 = vld [vmem:[%s14304_s0 + $0x220] sm:$0xff] }
 0x21a   :  { %7204 = vmatpush.bf16.msra.mxu0 %v11293_v39  ;;  %v96_v39 = vld [vmem:[%s14304_s0 + $0x230] sm:$0xff] }
 0x21b   :  { %7217 = vmatpush.bf16.msra.mxu1 %v11301_v40  ;;  %v11371_v40 = vld [vmem:[%s14303_s1 + $0x1278] sm:$0xff] }
 0x21c   :  { %7230 = vmatpush.bf16.msra.mxu2 %v11309_v41  ;;  %v95_v41 = vld [vmem:[%s14304_s0 + $0x228] sm:$0xff] }
 0x21d   :  { %7243 = vmatpush.bf16.msra.mxu3 %v11317_v42  ;;  %v97_v42 = vld [vmem:[%s14304_s0 + $0x238] sm:$0xff] }
 0x21e   :  { %7205 = vmatpush.bf16.msra.mxu0 %v11292_v45  ;;  %v6999_v5 = vpop.f32.mrf.mxu0  ;;  %v190_v45 = vpack.c.bf16 %v94_v38, %v94_v38  ;;  %v11402_v38 = vld [vmem:[%s14303_s1 + $0x1370] sm:$0xff] }
 0x21f   :  { %7218 = vmatpush.bf16.msra.mxu1 %v11300_v46  ;;  %v7000_v6 = vadd.f32 %v6999_v5, %v13415_v33  ;;  %v7012_v9 = vpop.f32.mrf.mxu1  ;;  %v11324_v33 = vld [vmem:[%s14303_s1 + $0x1100] sm:$0xff]  ;;  %v192_v46 = vpack.c.bf16 %v96_v39, %v96_v39  ;;  %v11410_v39 = vld [vmem:[%s14303_s1 + $0x13b0] sm:$0xff] }
 0x220   :  { %7231 = vmatpush.bf16.msra.mxu2 %v11308_v47  ;;  %v191_v47 = vpack.c.bf16 %v95_v41, %v95_v41  ;;  %v11393_v41 = vld [vmem:[%s14303_s1 + $0x1328] sm:$0xff] }
 0x221   :  { %7244 = vmatpush.bf16.msra.mxu3 %v11316_v48  ;;  %7206 = vmatmul.bf16.vlgmr.msra.gmra.mxu0 %v186_v57  ;;  %v7013_v12 = vadd.f32 %v7012_v9, %v7000_v6  ;;  %v193_v48 = vpack.c.bf16 %v97_v42, %v97_v42  ;;  %v11401_v42 = vld [vmem:[%s14303_s1 + $0x1368] sm:$0xff] }
 0x222   :  { %7250 = vmatpush.bf16.msrb.mxu0 %v11331_v49  ;;  %7219 = vmatmul.bf16.vlgmr.msra.gmra.mxu1 %v187_v59  ;;  %v11362_v49 = vld [vmem:[%s14303_s1 + $0x1230] sm:$0xff]  ;;  %v11360_v59 = vld [vmem:[%s14303_s1 + $0x1220] sm:$0xff] }
 0x223   :  { %7263 = vmatpush.bf16.msrb.mxu1 %v11339_v52  ;;  %7232 = vmatmul.bf16.vlgmr.msra.gmra.mxu2 %v188_v58  ;;  %v11386_v52 = vld [vmem:[%s14303_s1 + $0x12f0] sm:$0xff] }
 0x224   :  { %7276 = vmatpush.bf16.msrb.mxu2 %v11347_v55  ;;  %7245 = vmatmul.bf16.vlgmr.msra.gmra.mxu3 %v189_v60  ;;  %v11377_v55 = vld [vmem:[%s14303_s1 + $0x12a8] sm:$0xff]  ;;  %v11368_v60 = vld [vmem:[%s14303_s1 + $0x1260] sm:$0xff] }
 0x225   :  { %7289 = vmatpush.bf16.msrb.mxu3 %v11355_v56  ;;  %v11385_v56 = vld [vmem:[%s14303_s1 + $0x12e8] sm:$0xff] }
 0x226   :  { %7251 = vmatpush.bf16.msrb.mxu0 %v11330_v61  ;;  %v7025_v17 = vpop.f32.mrf.mxu2  ;;  %v7001_v20 = vpop.f32.mrf.mxu0 }
 0x227   :  { %7264 = vmatpush.bf16.msrb.mxu1 %v11338_v62  ;;  %v7026_v18 = vadd.f32 %v7025_v17, %v7013_v12  ;;  %v7038_v19 = vpop.f32.mrf.mxu3  ;;  %v7014_v24 = vpop.f32.mrf.mxu1  ;;  %v11376_v62 = vld [vmem:[%s14303_s1 + $0x12a0] sm:$0xff]  ;;  %v11373_v17 = vld [vmem:[%s14303_s1 + $0x1288] sm:$0xff] }
 0x228   :  { %7277 = vmatpush.bf16.msrb.mxu2 %v11346_v63  ;;  %v11384_v63 = vld [vmem:[%s14303_s1 + $0x12e0] sm:$0xff] }
 0x229   :  { %7290 = vmatpush.bf16.msrb.mxu3 %v11354_v0  ;;  %v13526_v21 = vadd.f32 %v7038_v19, %v7026_v18  ;;  %v11381_v18 = vld [vmem:[%s14303_s1 + $0x12c8] sm:$0xff]  ;;  %v11380_v24 = vld [vmem:[%s14303_s1 + $0x12c0] sm:$0xff] }
 0x22a   :  { %7252 = vmatpush.bf16.msrb.mxu0 %v11329_v1  ;;  %v11359_v1 = vld [vmem:[%s14303_s1 + $0x1218] sm:$0xff] }
 0x22b   :  { %7265 = vmatpush.bf16.msrb.mxu1 %v11337_v2  ;;  %v11367_v2 = vld [vmem:[%s14303_s1 + $0x1258] sm:$0xff] }
 0x22c   :  { %7278 = vmatpush.bf16.msrb.mxu2 %v11345_v3  ;;  %v11375_v3 = vld [vmem:[%s14303_s1 + $0x1298] sm:$0xff] }
 0x22d   :  { %7291 = vmatpush.bf16.msrb.mxu3 %v11353_v4  ;;  %v11383_v4 = vld [vmem:[%s14303_s1 + $0x12d8] sm:$0xff] }
 0x22e   :  { %7253 = vmatpush.bf16.msrb.mxu0 %v11328_v7  ;;  %v7027_v31 = vpop.f32.mrf.mxu2 }
 0x22f   :  { %7266 = vmatpush.bf16.msrb.mxu1 %v11336_v8  ;;  %v7040_v32 = vpop.f32.mrf.mxu3  ;;  %v11411_v31 = vld [vmem:[%s14303_s1 + $0x13b8] sm:$0xff] }
 0x230   :  { %7279 = vmatpush.bf16.msrb.mxu2 %v11344_v10  ;;  %v11358_v10 = vld [vmem:[%s14303_s1 + $0x1210] sm:$0xff]  ;;  %v11419_v32 = vld [vmem:[%s14303_s1 + $0x13f8] sm:$0xff] }
 0x231   :  { %7292 = vmatpush.bf16.msrb.mxu3 %v11352_v11  ;;  %v11366_v11 = vld [vmem:[%s14303_s1 + $0x1250] sm:$0xff] }
 0x232   :  { %7254 = vmatpush.bf16.msrb.mxu0 %v11327_v13  ;;  %v11374_v13 = vld [vmem:[%s14303_s1 + $0x1290] sm:$0xff] }
 0x233   :  { %7267 = vmatpush.bf16.msrb.mxu1 %v11335_v14  ;;  %v11382_v14 = vld [vmem:[%s14303_s1 + $0x12d0] sm:$0xff] }
 0x234   :  { %7280 = vmatpush.bf16.msrb.mxu2 %v11343_v15  ;;  %v11357_v15 = vld [vmem:[%s14303_s1 + $0x1208] sm:$0xff] }
 0x235   :  { %7293 = vmatpush.bf16.msrb.mxu3 %v11351_v16  ;;  %v11365_v16 = vld [vmem:[%s14303_s1 + $0x1248] sm:$0xff] }
 0x236   :  { %7255 = vmatpush.bf16.msrb.mxu0 %v11326_v22  ;;  %v11364_v22 = vld [vmem:[%s14303_s1 + $0x1240] sm:$0xff] }
 0x237   :  { %7268 = vmatpush.bf16.msrb.mxu1 %v11334_v23  ;;  %v11372_v23 = vld [vmem:[%s14303_s1 + $0x1280] sm:$0xff] }
 0x238   :  { %7281 = vmatpush.bf16.msrb.mxu2 %v11342_v25  ;;  %v11395_v25 = vld [vmem:[%s14303_s1 + $0x1338] sm:$0xff] }
 0x239   :  { %7294 = vmatpush.bf16.msrb.mxu3 %v11350_v26  ;;  %v98_v26 = vld [vmem:[%s14304_s0 + $0x240] sm:$0xff] }
 0x23a   :  { %7256 = vmatpush.bf16.msrb.mxu0 %v11325_v27  ;;  %v100_v27 = vld [vmem:[%s14304_s0 + $0x250] sm:$0xff] }
 0x23b   :  { %7269 = vmatpush.bf16.msrb.mxu1 %v11333_v28  ;;  %v11403_v28 = vld [vmem:[%s14303_s1 + $0x1378] sm:$0xff] }
 0x23c   :  { %7282 = vmatpush.bf16.msrb.mxu2 %v11341_v29  ;;  %v99_v29 = vld [vmem:[%s14304_s0 + $0x248] sm:$0xff] }
 0x23d   :  { %7295 = vmatpush.bf16.msrb.mxu3 %v11349_v30  ;;  %v101_v30 = vld [vmem:[%s14304_s0 + $0x258] sm:$0xff] }
 0x23e   :  { %7257 = vmatpush.bf16.msrb.mxu0 %v11324_v33  ;;  %v7051_v57 = vpop.f32.mrf.mxu0  ;;  %v194_v33 = vpack.c.bf16 %v98_v26, %v98_v26  ;;  %v11434_v26 = vld [vmem:[%s14303_s1 + $0x1470] sm:$0xff] }
 0x23f   :  { %7270 = vmatpush.bf16.msrb.mxu1 %v11332_v34  ;;  %v7052_v58 = vadd.f32 %v7051_v57, %v13526_v21  ;;  %v7064_v61 = vpop.f32.mrf.mxu1  ;;  %v11356_v21 = vld [vmem:[%s14303_s1 + $0x1200] sm:$0xff]  ;;  %v196_v34 = vpack.c.bf16 %v100_v27, %v100_v27  ;;  %v11442_v27 = vld [vmem:[%s14303_s1 + $0x14b0] sm:$0xff] }
 0x240   :  { %7283 = vmatpush.bf16.msrb.mxu2 %v11340_v35  ;;  %v195_v35 = vpack.c.bf16 %v99_v29, %v99_v29  ;;  %v11425_v29 = vld [vmem:[%s14303_s1 + $0x1428] sm:$0xff] }
 0x241   :  { %7296 = vmatpush.bf16.msrb.mxu3 %v11348_v36  ;;  %7258 = vmatmul.bf16.vlgmr.msrb.gmra.mxu0 %v190_v45  ;;  %v7065_v0 = vadd.f32 %v7064_v61, %v7052_v58  ;;  %v197_v36 = vpack.c.bf16 %v101_v30, %v101_v30  ;;  %v11433_v30 = vld [vmem:[%s14303_s1 + $0x1468] sm:$0xff] }
 0x242   :  { %7302 = vmatpush.bf16.msra.mxu0 %v11363_v37  ;;  %7271 = vmatmul.bf16.vlgmr.msrb.gmra.mxu1 %v191_v47  ;;  %v11394_v37 = vld [vmem:[%s14303_s1 + $0x1330] sm:$0xff]  ;;  %v11392_v47 = vld [vmem:[%s14303_s1 + $0x1320] sm:$0xff] }
 0x243   :  { %7315 = vmatpush.bf16.msra.mxu1 %v11371_v40  ;;  %7284 = vmatmul.bf16.vlgmr.msrb.gmra.mxu2 %v192_v46  ;;  %v11418_v40 = vld [vmem:[%s14303_s1 + $0x13f0] sm:$0xff] }
 0x244   :  { %7328 = vmatpush.bf16.msra.mxu2 %v11379_v43  ;;  %7297 = vmatmul.bf16.vlgmr.msrb.gmra.mxu3 %v193_v48  ;;  %v11409_v43 = vld [vmem:[%s14303_s1 + $0x13a8] sm:$0xff]  ;;  %v11400_v48 = vld [vmem:[%s14303_s1 + $0x1360] sm:$0xff] }
 0x245   :  { %7341 = vmatpush.bf16.msra.mxu3 %v11387_v44  ;;  %v11417_v44 = vld [vmem:[%s14303_s1 + $0x13e8] sm:$0xff] }
 0x246   :  { %7303 = vmatpush.bf16.msra.mxu0 %v11362_v49  ;;  %v7077_v5 = vpop.f32.mrf.mxu2  ;;  %v7053_v8 = vpop.f32.mrf.mxu0 }
 0x247   :  { %7316 = vmatpush.bf16.msra.mxu1 %v11370_v50  ;;  %v7078_v6 = vadd.f32 %v7077_v5, %v7065_v0  ;;  %v7090_v7 = vpop.f32.mrf.mxu3  ;;  %v7066_v12 = vpop.f32.mrf.mxu1  ;;  %v11408_v50 = vld [vmem:[%s14303_s1 + $0x13a0] sm:$0xff]  ;;  %v11405_v5 = vld [vmem:[%s14303_s1 + $0x1388] sm:$0xff] }
 0x248   :  { %7329 = vmatpush.bf16.msra.mxu2 %v11378_v51  ;;  %v11416_v51 = vld [vmem:[%s14303_s1 + $0x13e0] sm:$0xff] }
 0x249   :  { %7342 = vmatpush.bf16.msra.mxu3 %v11386_v52  ;;  %v13637_v9 = vadd.f32 %v7090_v7, %v7078_v6  ;;  %v11413_v6 = vld [vmem:[%s14303_s1 + $0x13c8] sm:$0xff]  ;;  %v11412_v12 = vld [vmem:[%s14303_s1 + $0x13c0] sm:$0xff] }
 0x24a   :  { %7304 = vmatpush.bf16.msra.mxu0 %v11361_v53  ;;  %v11391_v53 = vld [vmem:[%s14303_s1 + $0x1318] sm:$0xff] }
 0x24b   :  { %7317 = vmatpush.bf16.msra.mxu1 %v11369_v54  ;;  %v11399_v54 = vld [vmem:[%s14303_s1 + $0x1358] sm:$0xff] }
 0x24c   :  { %7330 = vmatpush.bf16.msra.mxu2 %v11377_v55  ;;  %v11407_v55 = vld [vmem:[%s14303_s1 + $0x1398] sm:$0xff] }
 0x24d   :  { %7343 = vmatpush.bf16.msra.mxu3 %v11385_v56  ;;  %v11415_v56 = vld [vmem:[%s14303_s1 + $0x13d8] sm:$0xff] }
 0x24e   :  { %7305 = vmatpush.bf16.msra.mxu0 %v11360_v59  ;;  %v7079_v19 = vpop.f32.mrf.mxu2 }
 0x24f   :  { %7318 = vmatpush.bf16.msra.mxu1 %v11368_v60  ;;  %v7092_v20 = vpop.f32.mrf.mxu3  ;;  %v11443_v19 = vld [vmem:[%s14303_s1 + $0x14b8] sm:$0xff] }
 0x250   :  { %7331 = vmatpush.bf16.msra.mxu2 %v11376_v62  ;;  %v11390_v62 = vld [vmem:[%s14303_s1 + $0x1310] sm:$0xff]  ;;  %v11451_v20 = vld [vmem:[%s14303_s1 + $0x14f8] sm:$0xff] }
 0x251   :  { %7344 = vmatpush.bf16.msra.mxu3 %v11384_v63  ;;  %v11398_v63 = vld [vmem:[%s14303_s1 + $0x1350] sm:$0xff] }
 0x252   :  { %7306 = vmatpush.bf16.msra.mxu0 %v11359_v1  ;;  %v11406_v1 = vld [vmem:[%s14303_s1 + $0x1390] sm:$0xff] }
 0x253   :  { %7319 = vmatpush.bf16.msra.mxu1 %v11367_v2  ;;  %v11414_v2 = vld [vmem:[%s14303_s1 + $0x13d0] sm:$0xff] }
 0x254   :  { %7332 = vmatpush.bf16.msra.mxu2 %v11375_v3  ;;  %v11389_v3 = vld [vmem:[%s14303_s1 + $0x1308] sm:$0xff] }
 0x255   :  { %7345 = vmatpush.bf16.msra.mxu3 %v11383_v4  ;;  %v11397_v4 = vld [vmem:[%s14303_s1 + $0x1348] sm:$0xff] }
 0x256   :  { %7307 = vmatpush.bf16.msra.mxu0 %v11358_v10  ;;  %v11396_v10 = vld [vmem:[%s14303_s1 + $0x1340] sm:$0xff] }
 0x257   :  { %7320 = vmatpush.bf16.msra.mxu1 %v11366_v11  ;;  %v11404_v11 = vld [vmem:[%s14303_s1 + $0x1380] sm:$0xff] }
 0x258   :  { %7333 = vmatpush.bf16.msra.mxu2 %v11374_v13  ;;  %v11427_v13 = vld [vmem:[%s14303_s1 + $0x1438] sm:$0xff] }
 0x259   :  { %7346 = vmatpush.bf16.msra.mxu3 %v11382_v14  ;;  %v102_v14 = vld [vmem:[%s14304_s0 + $0x260] sm:$0xff] }
 0x25a   :  { %7308 = vmatpush.bf16.msra.mxu0 %v11357_v15  ;;  %v104_v15 = vld [vmem:[%s14304_s0 + $0x270] sm:$0xff] }
 0x25b   :  { %7321 = vmatpush.bf16.msra.mxu1 %v11365_v16  ;;  %v11435_v16 = vld [vmem:[%s14303_s1 + $0x1478] sm:$0xff] }
 0x25c   :  { %7334 = vmatpush.bf16.msra.mxu2 %v11373_v17  ;;  %v103_v17 = vld [vmem:[%s14304_s0 + $0x268] sm:$0xff] }
 0x25d   :  { %7347 = vmatpush.bf16.msra.mxu3 %v11381_v18  ;;  %v105_v18 = vld [vmem:[%s14304_s0 + $0x278] sm:$0xff] }
 0x25e   :  { %7309 = vmatpush.bf16.msra.mxu0 %v11356_v21  ;;  %v7103_v45 = vpop.f32.mrf.mxu0  ;;  %v198_v21 = vpack.c.bf16 %v102_v14, %v102_v14  ;;  %v11466_v14 = vld [vmem:[%s14303_s1 + $0x1570] sm:$0xff] }
 0x25f   :  { %7322 = vmatpush.bf16.msra.mxu1 %v11364_v22  ;;  %v7104_v46 = vadd.f32 %v7103_v45, %v13637_v9  ;;  %v7116_v49 = vpop.f32.mrf.mxu1  ;;  %v11388_v9 = vld [vmem:[%s14303_s1 + $0x1300] sm:$0xff]  ;;  %v200_v22 = vpack.c.bf16 %v104_v15, %v104_v15  ;;  %v11474_v15 = vld [vmem:[%s14303_s1 + $0x15b0] sm:$0xff] }
 0x260   :  { %7335 = vmatpush.bf16.msra.mxu2 %v11372_v23  ;;  %v199_v23 = vpack.c.bf16 %v103_v17, %v103_v17  ;;  %v11457_v17 = vld [vmem:[%s14303_s1 + $0x1528] sm:$0xff] }
 0x261   :  { %7348 = vmatpush.bf16.msra.mxu3 %v11380_v24  ;;  %7310 = vmatmul.bf16.vlgmr.msra.gmra.mxu0 %v194_v33  ;;  %v7117_v52 = vadd.f32 %v7116_v49, %v7104_v46  ;;  %v201_v24 = vpack.c.bf16 %v105_v18, %v105_v18  ;;  %v11465_v18 = vld [vmem:[%s14303_s1 + $0x1568] sm:$0xff] }
 0x262   :  { %7354 = vmatpush.bf16.msrb.mxu0 %v11395_v25  ;;  %7323 = vmatmul.bf16.vlgmr.msra.gmra.mxu1 %v195_v35  ;;  %v11426_v25 = vld [vmem:[%s14303_s1 + $0x1430] sm:$0xff]  ;;  %v11424_v35 = vld [vmem:[%s14303_s1 + $0x1420] sm:$0xff] }
 0x263   :  { %7367 = vmatpush.bf16.msrb.mxu1 %v11403_v28  ;;  %7336 = vmatmul.bf16.vlgmr.msra.gmra.mxu2 %v196_v34  ;;  %v11450_v28 = vld [vmem:[%s14303_s1 + $0x14f0] sm:$0xff] }
 0x264   :  { %7380 = vmatpush.bf16.msrb.mxu2 %v11411_v31  ;;  %7349 = vmatmul.bf16.vlgmr.msra.gmra.mxu3 %v197_v36  ;;  %v11441_v31 = vld [vmem:[%s14303_s1 + $0x14a8] sm:$0xff]  ;;  %v11432_v36 = vld [vmem:[%s14303_s1 + $0x1460] sm:$0xff] }
 0x265   :  { %7393 = vmatpush.bf16.msrb.mxu3 %v11419_v32  ;;  %v11449_v32 = vld [vmem:[%s14303_s1 + $0x14e8] sm:$0xff] }
 0x266   :  { %7355 = vmatpush.bf16.msrb.mxu0 %v11394_v37  ;;  %v7129_v57 = vpop.f32.mrf.mxu2  ;;  %v7105_v60 = vpop.f32.mrf.mxu0 }
 0x267   :  { %7368 = vmatpush.bf16.msrb.mxu1 %v11402_v38  ;;  %v7130_v58 = vadd.f32 %v7129_v57, %v7117_v52  ;;  %v7142_v59 = vpop.f32.mrf.mxu3  ;;  %v7118_v0 = vpop.f32.mrf.mxu1  ;;  %v11440_v38 = vld [vmem:[%s14303_s1 + $0x14a0] sm:$0xff]  ;;  %v11437_v57 = vld [vmem:[%s14303_s1 + $0x1488] sm:$0xff] }
 0x268   :  { %7381 = vmatpush.bf16.msrb.mxu2 %v11410_v39  ;;  %v11448_v39 = vld [vmem:[%s14303_s1 + $0x14e0] sm:$0xff] }
 0x269   :  { %7394 = vmatpush.bf16.msrb.mxu3 %v11418_v40  ;;  %v13748_v61 = vadd.f32 %v7142_v59, %v7130_v58  ;;  %v11445_v58 = vld [vmem:[%s14303_s1 + $0x14c8] sm:$0xff]  ;;  %v11444_v0 = vld [vmem:[%s14303_s1 + $0x14c0] sm:$0xff] }
 0x26a   :  { %7356 = vmatpush.bf16.msrb.mxu0 %v11393_v41  ;;  %v11423_v41 = vld [vmem:[%s14303_s1 + $0x1418] sm:$0xff] }
 0x26b   :  { %7369 = vmatpush.bf16.msrb.mxu1 %v11401_v42  ;;  %v11431_v42 = vld [vmem:[%s14303_s1 + $0x1458] sm:$0xff] }
 0x26c   :  { %7382 = vmatpush.bf16.msrb.mxu2 %v11409_v43  ;;  %v11439_v43 = vld [vmem:[%s14303_s1 + $0x1498] sm:$0xff] }
 0x26d   :  { %7395 = vmatpush.bf16.msrb.mxu3 %v11417_v44  ;;  %v11447_v44 = vld [vmem:[%s14303_s1 + $0x14d8] sm:$0xff] }
 0x26e   :  { %7357 = vmatpush.bf16.msrb.mxu0 %v11392_v47  ;;  %v7131_v7 = vpop.f32.mrf.mxu2 }
 0x26f   :  { %7370 = vmatpush.bf16.msrb.mxu1 %v11400_v48  ;;  %v7144_v8 = vpop.f32.mrf.mxu3  ;;  %v11475_v7 = vld [vmem:[%s14303_s1 + $0x15b8] sm:$0xff] }
 0x270   :  { %7383 = vmatpush.bf16.msrb.mxu2 %v11408_v50  ;;  %v11422_v50 = vld [vmem:[%s14303_s1 + $0x1410] sm:$0xff]  ;;  %v11483_v8 = vld [vmem:[%s14303_s1 + $0x15f8] sm:$0xff] }
 0x271   :  { %7396 = vmatpush.bf16.msrb.mxu3 %v11416_v51  ;;  %v11430_v51 = vld [vmem:[%s14303_s1 + $0x1450] sm:$0xff] }
 0x272   :  { %7358 = vmatpush.bf16.msrb.mxu0 %v11391_v53  ;;  %v11438_v53 = vld [vmem:[%s14303_s1 + $0x1490] sm:$0xff] }
 0x273   :  { %7371 = vmatpush.bf16.msrb.mxu1 %v11399_v54  ;;  %v11446_v54 = vld [vmem:[%s14303_s1 + $0x14d0] sm:$0xff] }
 0x274   :  { %7384 = vmatpush.bf16.msrb.mxu2 %v11407_v55  ;;  %v11421_v55 = vld [vmem:[%s14303_s1 + $0x1408] sm:$0xff] }
 0x275   :  { %7397 = vmatpush.bf16.msrb.mxu3 %v11415_v56  ;;  %v11429_v56 = vld [vmem:[%s14303_s1 + $0x1448] sm:$0xff] }
 0x276   :  { %7359 = vmatpush.bf16.msrb.mxu0 %v11390_v62  ;;  %v11428_v62 = vld [vmem:[%s14303_s1 + $0x1440] sm:$0xff] }
 0x277   :  { %7372 = vmatpush.bf16.msrb.mxu1 %v11398_v63  ;;  %v11436_v63 = vld [vmem:[%s14303_s1 + $0x1480] sm:$0xff] }
 0x278   :  { %7385 = vmatpush.bf16.msrb.mxu2 %v11406_v1  ;;  %v11459_v1 = vld [vmem:[%s14303_s1 + $0x1538] sm:$0xff] }
 0x279   :  { %7398 = vmatpush.bf16.msrb.mxu3 %v11414_v2  ;;  %v106_v2 = vld [vmem:[%s14304_s0 + $0x280] sm:$0xff] }
 0x27a   :  { %7360 = vmatpush.bf16.msrb.mxu0 %v11389_v3  ;;  %v108_v3 = vld [vmem:[%s14304_s0 + $0x290] sm:$0xff] }
 0x27b   :  { %7373 = vmatpush.bf16.msrb.mxu1 %v11397_v4  ;;  %v11467_v4 = vld [vmem:[%s14303_s1 + $0x1578] sm:$0xff] }
 0x27c   :  { %7386 = vmatpush.bf16.msrb.mxu2 %v11405_v5  ;;  %v107_v5 = vld [vmem:[%s14304_s0 + $0x288] sm:$0xff] }
 0x27d   :  { %7399 = vmatpush.bf16.msrb.mxu3 %v11413_v6  ;;  %v109_v6 = vld [vmem:[%s14304_s0 + $0x298] sm:$0xff] }
 0x27e   :  { %7361 = vmatpush.bf16.msrb.mxu0 %v11388_v9  ;;  %v7155_v33 = vpop.f32.mrf.mxu0  ;;  %v202_v9 = vpack.c.bf16 %v106_v2, %v106_v2  ;;  %v11498_v2 = vld [vmem:[%s14303_s1 + $0x1670] sm:$0xff] }
 0x27f   :  { %7374 = vmatpush.bf16.msrb.mxu1 %v11396_v10  ;;  %v7156_v34 = vadd.f32 %v7155_v33, %v13748_v61  ;;  %v7168_v37 = vpop.f32.mrf.mxu1  ;;  %v11420_v61 = vld [vmem:[%s14303_s1 + $0x1400] sm:$0xff]  ;;  %v204_v10 = vpack.c.bf16 %v108_v3, %v108_v3  ;;  %v11506_v3 = vld [vmem:[%s14303_s1 + $0x16b0] sm:$0xff] }
 0x280   :  { %7387 = vmatpush.bf16.msrb.mxu2 %v11404_v11  ;;  %v203_v11 = vpack.c.bf16 %v107_v5, %v107_v5  ;;  %v11489_v5 = vld [vmem:[%s14303_s1 + $0x1628] sm:$0xff] }
 0x281   :  { %7400 = vmatpush.bf16.msrb.mxu3 %v11412_v12  ;;  %7362 = vmatmul.bf16.vlgmr.msrb.gmra.mxu0 %v198_v21  ;;  %v7169_v40 = vadd.f32 %v7168_v37, %v7156_v34  ;;  %v205_v12 = vpack.c.bf16 %v109_v6, %v109_v6  ;;  %v11497_v6 = vld [vmem:[%s14303_s1 + $0x1668] sm:$0xff] }
 0x282   :  { %7406 = vmatpush.bf16.msra.mxu0 %v11427_v13  ;;  %7375 = vmatmul.bf16.vlgmr.msrb.gmra.mxu1 %v199_v23  ;;  %v11458_v13 = vld [vmem:[%s14303_s1 + $0x1530] sm:$0xff]  ;;  %v11456_v23 = vld [vmem:[%s14303_s1 + $0x1520] sm:$0xff] }
 0x283   :  { %7419 = vmatpush.bf16.msra.mxu1 %v11435_v16  ;;  %7388 = vmatmul.bf16.vlgmr.msrb.gmra.mxu2 %v200_v22  ;;  %v11482_v16 = vld [vmem:[%s14303_s1 + $0x15f0] sm:$0xff] }
 0x284   :  { %7432 = vmatpush.bf16.msra.mxu2 %v11443_v19  ;;  %7401 = vmatmul.bf16.vlgmr.msrb.gmra.mxu3 %v201_v24  ;;  %v11473_v19 = vld [vmem:[%s14303_s1 + $0x15a8] sm:$0xff]  ;;  %v11464_v24 = vld [vmem:[%s14303_s1 + $0x1560] sm:$0xff] }
 0x285   :  { %7445 = vmatpush.bf16.msra.mxu3 %v11451_v20  ;;  %v11481_v20 = vld [vmem:[%s14303_s1 + $0x15e8] sm:$0xff] }
 0x286   :  { %7407 = vmatpush.bf16.msra.mxu0 %v11426_v25  ;;  %v7181_v45 = vpop.f32.mrf.mxu2  ;;  %v7157_v48 = vpop.f32.mrf.mxu0 }
 0x287   :  { %7420 = vmatpush.bf16.msra.mxu1 %v11434_v26  ;;  %v7182_v46 = vadd.f32 %v7181_v45, %v7169_v40  ;;  %v7194_v47 = vpop.f32.mrf.mxu3  ;;  %v7170_v52 = vpop.f32.mrf.mxu1  ;;  %v11472_v26 = vld [vmem:[%s14303_s1 + $0x15a0] sm:$0xff]  ;;  %v11469_v45 = vld [vmem:[%s14303_s1 + $0x1588] sm:$0xff] }
 0x288   :  { %7433 = vmatpush.bf16.msra.mxu2 %v11442_v27  ;;  %v11480_v27 = vld [vmem:[%s14303_s1 + $0x15e0] sm:$0xff] }
 0x289   :  { %7446 = vmatpush.bf16.msra.mxu3 %v11450_v28  ;;  %v13859_v49 = vadd.f32 %v7194_v47, %v7182_v46  ;;  %v11477_v46 = vld [vmem:[%s14303_s1 + $0x15c8] sm:$0xff]  ;;  %v11476_v52 = vld [vmem:[%s14303_s1 + $0x15c0] sm:$0xff] }
 0x28a   :  { %7408 = vmatpush.bf16.msra.mxu0 %v11425_v29  ;;  %v11455_v29 = vld [vmem:[%s14303_s1 + $0x1518] sm:$0xff] }
 0x28b   :  { %7421 = vmatpush.bf16.msra.mxu1 %v11433_v30  ;;  %v11463_v30 = vld [vmem:[%s14303_s1 + $0x1558] sm:$0xff] }
 0x28c   :  { %7434 = vmatpush.bf16.msra.mxu2 %v11441_v31  ;;  %v11471_v31 = vld [vmem:[%s14303_s1 + $0x1598] sm:$0xff] }
 0x28d   :  { %7447 = vmatpush.bf16.msra.mxu3 %v11449_v32  ;;  %v11479_v32 = vld [vmem:[%s14303_s1 + $0x15d8] sm:$0xff] }
 0x28e   :  { %7409 = vmatpush.bf16.msra.mxu0 %v11424_v35  ;;  %v7183_v59 = vpop.f32.mrf.mxu2 }
 0x28f   :  { %7422 = vmatpush.bf16.msra.mxu1 %v11432_v36  ;;  %v7196_v60 = vpop.f32.mrf.mxu3  ;;  %v11507_v59 = vld [vmem:[%s14303_s1 + $0x16b8] sm:$0xff] }
 0x290   :  { %7435 = vmatpush.bf16.msra.mxu2 %v11440_v38  ;;  %v11454_v38 = vld [vmem:[%s14303_s1 + $0x1510] sm:$0xff]  ;;  %v11515_v60 = vld [vmem:[%s14303_s1 + $0x16f8] sm:$0xff] }
 0x291   :  { %7448 = vmatpush.bf16.msra.mxu3 %v11448_v39  ;;  %v11462_v39 = vld [vmem:[%s14303_s1 + $0x1550] sm:$0xff] }
 0x292   :  { %7410 = vmatpush.bf16.msra.mxu0 %v11423_v41  ;;  %v11470_v41 = vld [vmem:[%s14303_s1 + $0x1590] sm:$0xff] }
 0x293   :  { %7423 = vmatpush.bf16.msra.mxu1 %v11431_v42  ;;  %v11478_v42 = vld [vmem:[%s14303_s1 + $0x15d0] sm:$0xff] }
 0x294   :  { %7436 = vmatpush.bf16.msra.mxu2 %v11439_v43  ;;  %v11453_v43 = vld [vmem:[%s14303_s1 + $0x1508] sm:$0xff] }
 0x295   :  { %7449 = vmatpush.bf16.msra.mxu3 %v11447_v44  ;;  %v11461_v44 = vld [vmem:[%s14303_s1 + $0x1548] sm:$0xff] }
 0x296   :  { %7411 = vmatpush.bf16.msra.mxu0 %v11422_v50  ;;  %v11460_v50 = vld [vmem:[%s14303_s1 + $0x1540] sm:$0xff] }
 0x297   :  { %7424 = vmatpush.bf16.msra.mxu1 %v11430_v51  ;;  %v11468_v51 = vld [vmem:[%s14303_s1 + $0x1580] sm:$0xff] }
 0x298   :  { %7437 = vmatpush.bf16.msra.mxu2 %v11438_v53  ;;  %v11491_v53 = vld [vmem:[%s14303_s1 + $0x1638] sm:$0xff] }
 0x299   :  { %7450 = vmatpush.bf16.msra.mxu3 %v11446_v54  ;;  %v110_v54 = vld [vmem:[%s14304_s0 + $0x2a0] sm:$0xff] }
 0x29a   :  { %7412 = vmatpush.bf16.msra.mxu0 %v11421_v55  ;;  %v112_v55 = vld [vmem:[%s14304_s0 + $0x2b0] sm:$0xff] }
 0x29b   :  { %7425 = vmatpush.bf16.msra.mxu1 %v11429_v56  ;;  %v11499_v56 = vld [vmem:[%s14303_s1 + $0x1678] sm:$0xff] }
 0x29c   :  { %7438 = vmatpush.bf16.msra.mxu2 %v11437_v57  ;;  %v111_v57 = vld [vmem:[%s14304_s0 + $0x2a8] sm:$0xff] }
 0x29d   :  { %7451 = vmatpush.bf16.msra.mxu3 %v11445_v58  ;;  %v113_v58 = vld [vmem:[%s14304_s0 + $0x2b8] sm:$0xff] }
 0x29e   :  { %7413 = vmatpush.bf16.msra.mxu0 %v11420_v61  ;;  %v7207_v21 = vpop.f32.mrf.mxu0  ;;  %v206_v61 = vpack.c.bf16 %v110_v54, %v110_v54  ;;  %v11530_v54 = vld [vmem:[%s14303_s1 + $0x1770] sm:$0xff] }
 0x29f   :  { %7426 = vmatpush.bf16.msra.mxu1 %v11428_v62  ;;  %v7208_v22 = vadd.f32 %v7207_v21, %v13859_v49  ;;  %v7220_v25 = vpop.f32.mrf.mxu1  ;;  %v11452_v49 = vld [vmem:[%s14303_s1 + $0x1500] sm:$0xff]  ;;  %v208_v62 = vpack.c.bf16 %v112_v55, %v112_v55  ;;  %v11538_v55 = vld [vmem:[%s14303_s1 + $0x17b0] sm:$0xff] }
 0x2a0   :  { %7439 = vmatpush.bf16.msra.mxu2 %v11436_v63  ;;  %v207_v63 = vpack.c.bf16 %v111_v57, %v111_v57  ;;  %v11521_v57 = vld [vmem:[%s14303_s1 + $0x1728] sm:$0xff] }
 0x2a1   :  { %7452 = vmatpush.bf16.msra.mxu3 %v11444_v0  ;;  %7414 = vmatmul.bf16.vlgmr.msra.gmra.mxu0 %v202_v9  ;;  %v7221_v28 = vadd.f32 %v7220_v25, %v7208_v22  ;;  %v209_v0 = vpack.c.bf16 %v113_v58, %v113_v58  ;;  %v11529_v58 = vld [vmem:[%s14303_s1 + $0x1768] sm:$0xff] }
 0x2a2   :  { %7458 = vmatpush.bf16.msrb.mxu0 %v11459_v1  ;;  %7427 = vmatmul.bf16.vlgmr.msra.gmra.mxu1 %v203_v11  ;;  %v11490_v1 = vld [vmem:[%s14303_s1 + $0x1630] sm:$0xff]  ;;  %v11488_v11 = vld [vmem:[%s14303_s1 + $0x1620] sm:$0xff] }
 0x2a3   :  { %7471 = vmatpush.bf16.msrb.mxu1 %v11467_v4  ;;  %7440 = vmatmul.bf16.vlgmr.msra.gmra.mxu2 %v204_v10  ;;  %v11514_v4 = vld [vmem:[%s14303_s1 + $0x16f0] sm:$0xff] }
 0x2a4   :  { %7484 = vmatpush.bf16.msrb.mxu2 %v11475_v7  ;;  %7453 = vmatmul.bf16.vlgmr.msra.gmra.mxu3 %v205_v12  ;;  %v11505_v7 = vld [vmem:[%s14303_s1 + $0x16a8] sm:$0xff]  ;;  %v11496_v12 = vld [vmem:[%s14303_s1 + $0x1660] sm:$0xff] }
 0x2a5   :  { %7497 = vmatpush.bf16.msrb.mxu3 %v11483_v8  ;;  %v11513_v8 = vld [vmem:[%s14303_s1 + $0x16e8] sm:$0xff] }
 0x2a6   :  { %7459 = vmatpush.bf16.msrb.mxu0 %v11458_v13  ;;  %v7233_v33 = vpop.f32.mrf.mxu2  ;;  %v7209_v36 = vpop.f32.mrf.mxu0 }
 0x2a7   :  { %7472 = vmatpush.bf16.msrb.mxu1 %v11466_v14  ;;  %v7234_v34 = vadd.f32 %v7233_v33, %v7221_v28  ;;  %v7246_v35 = vpop.f32.mrf.mxu3  ;;  %v7222_v40 = vpop.f32.mrf.mxu1  ;;  %v11504_v14 = vld [vmem:[%s14303_s1 + $0x16a0] sm:$0xff]  ;;  %v11501_v33 = vld [vmem:[%s14303_s1 + $0x1688] sm:$0xff] }
 0x2a8   :  { %7485 = vmatpush.bf16.msrb.mxu2 %v11474_v15  ;;  %v11512_v15 = vld [vmem:[%s14303_s1 + $0x16e0] sm:$0xff] }
 0x2a9   :  { %7498 = vmatpush.bf16.msrb.mxu3 %v11482_v16  ;;  %v13970_v37 = vadd.f32 %v7246_v35, %v7234_v34  ;;  %v11509_v34 = vld [vmem:[%s14303_s1 + $0x16c8] sm:$0xff]  ;;  %v11508_v40 = vld [vmem:[%s14303_s1 + $0x16c0] sm:$0xff] }
 0x2aa   :  { %7460 = vmatpush.bf16.msrb.mxu0 %v11457_v17  ;;  %v11487_v17 = vld [vmem:[%s14303_s1 + $0x1618] sm:$0xff] }
 0x2ab   :  { %7473 = vmatpush.bf16.msrb.mxu1 %v11465_v18  ;;  %v11495_v18 = vld [vmem:[%s14303_s1 + $0x1658] sm:$0xff] }
 0x2ac   :  { %7486 = vmatpush.bf16.msrb.mxu2 %v11473_v19  ;;  %v11503_v19 = vld [vmem:[%s14303_s1 + $0x1698] sm:$0xff] }
 0x2ad   :  { %7499 = vmatpush.bf16.msrb.mxu3 %v11481_v20  ;;  %v11511_v20 = vld [vmem:[%s14303_s1 + $0x16d8] sm:$0xff] }
 0x2ae   :  { %7461 = vmatpush.bf16.msrb.mxu0 %v11456_v23  ;;  %v7235_v47 = vpop.f32.mrf.mxu2 }
 0x2af   :  { %7474 = vmatpush.bf16.msrb.mxu1 %v11464_v24  ;;  %v7248_v48 = vpop.f32.mrf.mxu3  ;;  %v11539_v47 = vld [vmem:[%s14303_s1 + $0x17b8] sm:$0xff] }
 0x2b0   :  { %7487 = vmatpush.bf16.msrb.mxu2 %v11472_v26  ;;  %v11486_v26 = vld [vmem:[%s14303_s1 + $0x1610] sm:$0xff]  ;;  %v11547_v48 = vld [vmem:[%s14303_s1 + $0x17f8] sm:$0xff] }
 0x2b1   :  { %7500 = vmatpush.bf16.msrb.mxu3 %v11480_v27  ;;  %v11494_v27 = vld [vmem:[%s14303_s1 + $0x1650] sm:$0xff] }
 0x2b2   :  { %7462 = vmatpush.bf16.msrb.mxu0 %v11455_v29  ;;  %v11502_v29 = vld [vmem:[%s14303_s1 + $0x1690] sm:$0xff] }
 0x2b3   :  { %7475 = vmatpush.bf16.msrb.mxu1 %v11463_v30  ;;  %v11510_v30 = vld [vmem:[%s14303_s1 + $0x16d0] sm:$0xff] }
 0x2b4   :  { %7488 = vmatpush.bf16.msrb.mxu2 %v11471_v31  ;;  %v11485_v31 = vld [vmem:[%s14303_s1 + $0x1608] sm:$0xff] }
 0x2b5   :  { %7501 = vmatpush.bf16.msrb.mxu3 %v11479_v32  ;;  %v11493_v32 = vld [vmem:[%s14303_s1 + $0x1648] sm:$0xff] }
 0x2b6   :  { %7463 = vmatpush.bf16.msrb.mxu0 %v11454_v38  ;;  %v11492_v38 = vld [vmem:[%s14303_s1 + $0x1640] sm:$0xff] }
 0x2b7   :  { %7476 = vmatpush.bf16.msrb.mxu1 %v11462_v39  ;;  %v11500_v39 = vld [vmem:[%s14303_s1 + $0x1680] sm:$0xff] }
 0x2b8   :  { %7489 = vmatpush.bf16.msrb.mxu2 %v11470_v41  ;;  %v11523_v41 = vld [vmem:[%s14303_s1 + $0x1738] sm:$0xff] }
 0x2b9   :  { %7502 = vmatpush.bf16.msrb.mxu3 %v11478_v42  ;;  %v114_v42 = vld [vmem:[%s14304_s0 + $0x2c0] sm:$0xff] }
 0x2ba   :  { %7464 = vmatpush.bf16.msrb.mxu0 %v11453_v43  ;;  %v116_v43 = vld [vmem:[%s14304_s0 + $0x2d0] sm:$0xff] }
 0x2bb   :  { %7477 = vmatpush.bf16.msrb.mxu1 %v11461_v44  ;;  %v11531_v44 = vld [vmem:[%s14303_s1 + $0x1778] sm:$0xff] }
 0x2bc   :  { %7490 = vmatpush.bf16.msrb.mxu2 %v11469_v45  ;;  %v115_v45 = vld [vmem:[%s14304_s0 + $0x2c8] sm:$0xff] }
 0x2bd   :  { %7503 = vmatpush.bf16.msrb.mxu3 %v11477_v46  ;;  %v117_v46 = vld [vmem:[%s14304_s0 + $0x2d8] sm:$0xff] }
 0x2be   :  { %7465 = vmatpush.bf16.msrb.mxu0 %v11452_v49  ;;  %v7259_v9 = vpop.f32.mrf.mxu0  ;;  %v210_v49 = vpack.c.bf16 %v114_v42, %v114_v42 }
 0x2bf   :  { %7478 = vmatpush.bf16.msrb.mxu1 %v11460_v50  ;;  %v7260_v10 = vadd.f32 %v7259_v9, %v13970_v37  ;;  %v7272_v13 = vpop.f32.mrf.mxu1  ;;  %v11484_v37 = vld [vmem:[%s14303_s1 + $0x1600] sm:$0xff]  ;;  %v212_v50 = vpack.c.bf16 %v116_v43, %v116_v43 }
 0x2c0   :  { %7491 = vmatpush.bf16.msrb.mxu2 %v11468_v51  ;;  %v211_v51 = vpack.c.bf16 %v115_v45, %v115_v45 }
 0x2c1   :  { %7504 = vmatpush.bf16.msrb.mxu3 %v11476_v52  ;;  %7466 = vmatmul.bf16.vlgmr.msrb.gmra.mxu0 %v206_v61  ;;  %v7273_v16 = vadd.f32 %v7272_v13, %v7260_v10  ;;  %v213_v52 = vpack.c.bf16 %v117_v46, %v117_v46 }
 0x2c2   :  { %7510 = vmatpush.bf16.msra.mxu0 %v11491_v53  ;;  %7479 = vmatmul.bf16.vlgmr.msrb.gmra.mxu1 %v207_v63  ;;  %v11522_v53 = vld [vmem:[%s14303_s1 + $0x1730] sm:$0xff]  ;;  %v11520_v63 = vld [vmem:[%s14303_s1 + $0x1720] sm:$0xff] }
 0x2c3   :  { %7523 = vmatpush.bf16.msra.mxu1 %v11499_v56  ;;  %7492 = vmatmul.bf16.vlgmr.msrb.gmra.mxu2 %v208_v62  ;;  %v11546_v56 = vld [vmem:[%s14303_s1 + $0x17f0] sm:$0xff] }
 0x2c4   :  { %7536 = vmatpush.bf16.msra.mxu2 %v11507_v59  ;;  %7505 = vmatmul.bf16.vlgmr.msrb.gmra.mxu3 %v209_v0  ;;  %v11537_v59 = vld [vmem:[%s14303_s1 + $0x17a8] sm:$0xff]  ;;  %v11528_v0 = vld [vmem:[%s14303_s1 + $0x1760] sm:$0xff] }
 0x2c5   :  { %7549 = vmatpush.bf16.msra.mxu3 %v11515_v60  ;;  %v11545_v60 = vld [vmem:[%s14303_s1 + $0x17e8] sm:$0xff] }
 0x2c6   :  { %7511 = vmatpush.bf16.msra.mxu0 %v11490_v1  ;;  %v7285_v21 = vpop.f32.mrf.mxu2  ;;  %v7261_v24 = vpop.f32.mrf.mxu0 }
 0x2c7   :  { %7524 = vmatpush.bf16.msra.mxu1 %v11498_v2  ;;  %v7286_v22 = vadd.f32 %v7285_v21, %v7273_v16  ;;  %v7298_v23 = vpop.f32.mrf.mxu3  ;;  %v7274_v28 = vpop.f32.mrf.mxu1  ;;  %v11536_v2 = vld [vmem:[%s14303_s1 + $0x17a0] sm:$0xff]  ;;  %v11533_v21 = vld [vmem:[%s14303_s1 + $0x1788] sm:$0xff] }
 0x2c8   :  { %7537 = vmatpush.bf16.msra.mxu2 %v11506_v3  ;;  %v11544_v3 = vld [vmem:[%s14303_s1 + $0x17e0] sm:$0xff] }
 0x2c9   :  { %7550 = vmatpush.bf16.msra.mxu3 %v11514_v4  ;;  %v14081_v25 = vadd.f32 %v7298_v23, %v7286_v22  ;;  %v11541_v22 = vld [vmem:[%s14303_s1 + $0x17c8] sm:$0xff]  ;;  %v118_v28 = vld [vmem:[%s14304_s0 + $0x2e0] sm:$0xff] }
 0x2ca   :  { %7512 = vmatpush.bf16.msra.mxu0 %v11489_v5  ;;  %v11519_v5 = vld [vmem:[%s14303_s1 + $0x1718] sm:$0xff] }
 0x2cb   :  { %7525 = vmatpush.bf16.msra.mxu1 %v11497_v6  ;;  %v11527_v6 = vld [vmem:[%s14303_s1 + $0x1758] sm:$0xff] }
 0x2cc   :  { %7538 = vmatpush.bf16.msra.mxu2 %v11505_v7  ;;  %v11535_v7 = vld [vmem:[%s14303_s1 + $0x1798] sm:$0xff] }
 0x2cd   :  { %7551 = vmatpush.bf16.msra.mxu3 %v11513_v8  ;;  %v11543_v8 = vld [vmem:[%s14303_s1 + $0x17d8] sm:$0xff] }
 0x2ce   :  { %7513 = vmatpush.bf16.msra.mxu0 %v11488_v11  ;;  %v7287_v35 = vpop.f32.mrf.mxu2 }
 0x2cf   :  { %7526 = vmatpush.bf16.msra.mxu1 %v11496_v12  ;;  %v7300_v36 = vpop.f32.mrf.mxu3 }
 0x2d0   :  { %7539 = vmatpush.bf16.msra.mxu2 %v11504_v14  ;;  %v11518_v14 = vld [vmem:[%s14303_s1 + $0x1710] sm:$0xff] }
 0x2d1   :  { %7552 = vmatpush.bf16.msra.mxu3 %v11512_v15  ;;  %v11526_v15 = vld [vmem:[%s14303_s1 + $0x1750] sm:$0xff] }
 0x2d2   :  { %7514 = vmatpush.bf16.msra.mxu0 %v11487_v17  ;;  %v11534_v17 = vld [vmem:[%s14303_s1 + $0x1790] sm:$0xff] }
 0x2d3   :  { %7527 = vmatpush.bf16.msra.mxu1 %v11495_v18  ;;  %v11542_v18 = vld [vmem:[%s14303_s1 + $0x17d0] sm:$0xff] }
 0x2d4   :  { %7540 = vmatpush.bf16.msra.mxu2 %v11503_v19  ;;  %v11517_v19 = vld [vmem:[%s14303_s1 + $0x1708] sm:$0xff] }
 0x2d5   :  { %7553 = vmatpush.bf16.msra.mxu3 %v11511_v20  ;;  %v11525_v20 = vld [vmem:[%s14303_s1 + $0x1748] sm:$0xff] }
 0x2d6   :  { %7515 = vmatpush.bf16.msra.mxu0 %v11486_v26  ;;  %v11524_v26 = vld [vmem:[%s14303_s1 + $0x1740] sm:$0xff] }
 0x2d7   :  { %7528 = vmatpush.bf16.msra.mxu1 %v11494_v27  ;;  %v11532_v27 = vld [vmem:[%s14303_s1 + $0x1780] sm:$0xff] }
 0x2d8   :  { %7541 = vmatpush.bf16.msra.mxu2 %v11502_v29  ;;  %v119_v29 = vld [vmem:[%s14304_s0 + $0x2e8] sm:$0xff] }
 0x2d9   :  { %7554 = vmatpush.bf16.msra.mxu3 %v11510_v30  ;;  %v11540_v30 = vld [vmem:[%s14303_s1 + $0x17c0] sm:$0xff] }
 0x2da   :  { %7516 = vmatpush.bf16.msra.mxu0 %v11485_v31  ;;  %v120_v31 = vld [vmem:[%s14304_s0 + $0x2f0] sm:$0xff] }
 0x2db   :  { %7529 = vmatpush.bf16.msra.mxu1 %v11493_v32  ;;  %v121_v32 = vld [vmem:[%s14304_s0 + $0x2f8] sm:$0xff]  ;;  %v216_v35 = vpack.c.bf16 %v120_v31, %v120_v31 }
 0x2dc   :  { %7542 = vmatpush.bf16.msra.mxu2 %v11501_v33  ;;  %v214_v33 = vpack.c.bf16 %v118_v28, %v118_v28  ;;  %v217_v36 = vpack.c.bf16 %v121_v32, %v121_v32  ;;  %v7663_v28 = vld [vmem:[%s14308_s5 + $0x20] sm:$0xff]  ;;  %v7661_v32 = vld [vmem:[%s14308_s5 + $0x10] sm:$0xff] }
 0x2dd   :  { %7555 = vmatpush.bf16.msra.mxu3 %v11509_v34  ;;  %v215_v34 = vpack.c.bf16 %v119_v29, %v119_v29 }
 0x2de   :  { %7517 = vmatpush.bf16.msra.mxu0 %v11484_v37  ;;  %v7311_v61 = vpop.f32.mrf.mxu0 }
 0x2df   :  { %7530 = vmatpush.bf16.msra.mxu1 %v11492_v38  ;;  %v7312_v62 = vadd.f32 %v7311_v61, %v14081_v25  ;;  %v7324_v1 = vpop.f32.mrf.mxu1  ;;  %v11516_v25 = vld [vmem:[%s14303_s1 + $0x1700] sm:$0xff] }
 0x2e0   :  { %7543 = vmatpush.bf16.msra.mxu2 %v11500_v39 }
 0x2e1   :  { %7556 = vmatpush.bf16.msra.mxu3 %v11508_v40  ;;  %7518 = vmatmul.bf16.vlgmr.msra.gmra.mxu0 %v210_v49  ;;  %v7325_v4 = vadd.f32 %v7324_v1, %v7312_v62 }
 0x2e2   :  { %7562 = vmatpush.bf16.msrb.mxu0 %v11523_v41  ;;  %7531 = vmatmul.bf16.vlgmr.msra.gmra.mxu1 %v211_v51 }
 0x2e3   :  { %7575 = vmatpush.bf16.msrb.mxu1 %v11531_v44  ;;  %7544 = vmatmul.bf16.vlgmr.msra.gmra.mxu2 %v212_v50 }
 0x2e4   :  { %7588 = vmatpush.bf16.msrb.mxu2 %v11539_v47  ;;  %7557 = vmatmul.bf16.vlgmr.msra.gmra.mxu3 %v213_v52 }
 0x2e5   :  { %7601 = vmatpush.bf16.msrb.mxu3 %v11547_v48 }
 0x2e6   :  { %7563 = vmatpush.bf16.msrb.mxu0 %v11522_v53  ;;  %v7337_v9 = vpop.f32.mrf.mxu2  ;;  %v7313_v12 = vpop.f32.mrf.mxu0 }
 0x2e7   :  { %7576 = vmatpush.bf16.msrb.mxu1 %v11530_v54  ;;  %v7338_v10 = vadd.f32 %v7337_v9, %v7325_v4  ;;  %v7350_v11 = vpop.f32.mrf.mxu3  ;;  %v7326_v16 = vpop.f32.mrf.mxu1  ;;  %v7624_v4 = vld [vmem:[%s14307_s3 + $0x48] sm:$0xff]  ;;  %v7621_v9 = vld [vmem:[%s14307_s3 + $0x30] sm:$0xff]  ;;  %v7619_v12 = vld [vmem:[%s14307_s3 + $0x20] sm:$0xff] }
 0x2e8   :  { %7589 = vmatpush.bf16.msrb.mxu2 %v11538_v55 }
 0x2e9   :  { %7602 = vmatpush.bf16.msrb.mxu3 %v11546_v56  ;;  %v7351_v13 = vadd.f32 %v7350_v11, %v7338_v10  ;;  %v7620_v10 = vld [vmem:[%s14307_s3 + $0x28] sm:$0xff] }
 0x2ea   :  { %7564 = vmatpush.bf16.msrb.mxu0 %v11521_v57 }
 0x2eb   :  { %7577 = vmatpush.bf16.msrb.mxu1 %v11529_v58 }
 0x2ec   :  { %7590 = vmatpush.bf16.msrb.mxu2 %v11537_v59 }
 0x2ed   :  { %7603 = vmatpush.bf16.msrb.mxu3 %v11545_v60 }
 0x2ee   :  { %7565 = vmatpush.bf16.msrb.mxu0 %v11520_v63  ;;  %v7339_v23 = vpop.f32.mrf.mxu2 }
 0x2ef   :  { %7578 = vmatpush.bf16.msrb.mxu1 %v11528_v0  ;;  %v7352_v24 = vpop.f32.mrf.mxu3 }
 0x2f0   :  { %7591 = vmatpush.bf16.msrb.mxu2 %v11536_v2  ;;  %v7665_v24 = vld [vmem:[%s14308_s5 + $0x30] sm:$0x3] }
 0x2f1   :  { %7604 = vmatpush.bf16.msrb.mxu3 %v11544_v3  ;;  %v7625_v3 = vld [vmem:[%s14307_s3 + $0x50] sm:$0xf] }
 0x2f2   :  { %7566 = vmatpush.bf16.msrb.mxu0 %v11519_v5 }
 0x2f3   :  { %7579 = vmatpush.bf16.msrb.mxu1 %v11527_v6 }
 0x2f4   :  { %7592 = vmatpush.bf16.msrb.mxu2 %v11535_v7  ;;  %v7623_v7 = vld [vmem:[%s14307_s3 + $0x40] sm:$0xff] }
 0x2f5   :  { %7605 = vmatpush.bf16.msrb.mxu3 %v11543_v8  ;;  %v7622_v8 = vld [vmem:[%s14307_s3 + $0x38] sm:$0xff] }
 0x2f6   :  { %7567 = vmatpush.bf16.msrb.mxu0 %v11518_v14  ;;  %v7618_v14 = vld [vmem:[%s14307_s3 + $0x18] sm:$0xff] }
 0x2f7   :  { %7580 = vmatpush.bf16.msrb.mxu1 %v11526_v15  ;;  %v7617_v15 = vld [vmem:[%s14307_s3 + $0x10] sm:$0xff] }
 0x2f8   :  { %7593 = vmatpush.bf16.msrb.mxu2 %v11534_v17 }
 0x2f9   :  { %7606 = vmatpush.bf16.msrb.mxu3 %v11542_v18 }
 0x2fa   :  { %7568 = vmatpush.bf16.msrb.mxu0 %v11517_v19  ;;  %v7616_v19 = vld [vmem:[%s14307_s3 + $0x8] sm:$0xff] }
 0x2fb   :  { %7581 = vmatpush.bf16.msrb.mxu1 %v11525_v20 }
 0x2fc   :  { %7594 = vmatpush.bf16.msrb.mxu2 %v11533_v21 }
 0x2fd   :  { %7607 = vmatpush.bf16.msrb.mxu3 %v11541_v22  ;;  %v7615_v22 = vld [vmem:[%s14307_s3] sm:$0xff] }
 0x2fe   :  { %7569 = vmatpush.bf16.msrb.mxu0 %v11516_v25  ;;  %v7363_v37 = vpop.f32.mrf.mxu0  ;;  %v7664_v25 = vld [vmem:[%s14308_s5 + $0x28] sm:$0xff] }
 0x2ff   :  { %7582 = vmatpush.bf16.msrb.mxu1 %v11524_v26  ;;  %v7364_v38 = vadd.f32 %v7363_v37, %v7351_v13  ;;  %v7376_v39 = vpop.f32.mrf.mxu1 }
 0x300   :  { %7595 = vmatpush.bf16.msrb.mxu2 %v11532_v27 }
 0x301   :  { %7608 = vmatpush.bf16.msrb.mxu3 %v11540_v30  ;;  %7570 = vmatmul.bf16.vlgmr.msrb.gmra.mxu0 %v214_v33  ;;  %v7377_v40 = vadd.f32 %v7376_v39, %v7364_v38  ;;  %v7662_v30 = vld [vmem:[%s14308_s5 + $0x18] sm:$0xff] }
 0x302   :  { %7583 = vmatmul.bf16.vlgmr.msrb.gmra.mxu1 %v215_v34  ;;  %10776 = vmatpush.msk.msra.mxu0 %vm7634_vm0, %v7625_v3 }
 0x303   :  { %7596 = vmatmul.bf16.vlgmr.msrb.gmra.mxu2 %v216_v35  ;;  %10778 = vmatpush.msk.msra.mxu1 %vm7674_vm1, %v7665_v24 }
 0x304   :  { %7609 = vmatmul.bf16.vlgmr.msrb.gmra.mxu3 %v217_v36  ;;  %7644 = vmatpush.msra.mxu0 %v7624_v4 }
 0x305   :  { %7688 = vmatpush.msra.mxu1 %v7664_v25 }
 0x306   :  { %v7389_v41 = vpop.f32.mrf.mxu2  ;;  %v7365_v44 = vpop.f32.mrf.mxu0  ;;  %7645 = vmatpush.msra.mxu0 %v7623_v7 }
 0x307   :  { %v7390_v42 = vadd.f32 %v7389_v41, %v7377_v40  ;;  %v7402_v43 = vpop.f32.mrf.mxu3  ;;  %v7378_v46 = vpop.f32.mrf.mxu1  ;;  %7689 = vmatpush.msra.mxu1 %v7663_v28 }
 0x308   :  { %7646 = vmatpush.msra.mxu0 %v7622_v8 }
 0x309   :  { %v7403_v45 = vadd.f32 %v7402_v43, %v7390_v42  ;;  %7690 = vmatpush.msra.mxu1 %v7662_v30 }
 0x30a   :  { %7647 = vmatpush.msra.mxu0 %v7621_v9 }
 0x30b   :  { %7691 = vmatpush.msra.mxu1 %v7661_v32 }
 0x30c   :  { %7648 = vmatpush.msra.mxu0 %v7620_v10 }
 0x30e   :  { %v7391_v47 = vpop.f32.mrf.mxu2  ;;  %7649 = vmatpush.msra.mxu0 %v7619_v12 }
 0x30f   :  { %v7404_v48 = vpop.f32.mrf.mxu3 }
 0x310   :  { %7650 = vmatpush.msra.mxu0 %v7618_v14 }
 0x312   :  { %7651 = vmatpush.msra.mxu0 %v7617_v15 }
 0x314   :  { %7652 = vmatpush.msra.mxu0 %v7616_v19 }
 0x316   :  { %7653 = vmatpush.msra.mxu0 %v7615_v22 }
 0x31e   :  { %v7415_v49 = vpop.f32.mrf.mxu0 }
 0x31f   :  { %v7416_v50 = vadd.f32 %v7415_v49, %v7403_v45  ;;  %v7428_v51 = vpop.f32.mrf.mxu1 }
 0x321   :  { %v7429_v52 = vadd.f32 %v7428_v51, %v7416_v50  ;;  %v7660_v50 = vld [vmem:[%s14308_s5 + $0x8] sm:$0xff]  ;;  %v7659_v51 = vld [vmem:[%s14308_s5] sm:$0xff] }
 0x322   :  { %7692 = vmatpush.msra.mxu1 %v7660_v50 }
 0x324   :  { %7693 = vmatpush.msra.mxu1 %v7659_v51 }
 0x326   :  { %v7441_v53 = vpop.f32.mrf.mxu2  ;;  %v7417_v56 = vpop.f32.mrf.mxu0 }
 0x327   :  { %v7442_v54 = vadd.f32 %v7441_v53, %v7429_v52  ;;  %v7454_v55 = vpop.f32.mrf.mxu3  ;;  %v7430_v58 = vpop.f32.mrf.mxu1  ;;  %v11549_v52 = vld [vmem:[%s14306_s4] ss:$0 sm:$0xff] }
 0x328   :  { %v11550_v56 = vld [vmem:[%s14309_s6] ss:$0 sm:$0xff] }
 0x329   :  { %v7455_v57 = vadd.f32 %v7454_v55, %v7442_v54 }
 0x32e   :  { %v7443_v59 = vpop.f32.mrf.mxu2 }
 0x32f   :  { %v7456_v60 = vpop.f32.mrf.mxu3 }
 0x33e   :  { %v7467_v61 = vpop.f32.mrf.mxu0 }
 0x33f   :  { %v7480_v62 = vpop.f32.mrf.mxu1  ;;  %v7468_v17 = vadd.f32 %v7467_v61, %v7455_v57 }
 0x341   :  { %v7481_v23 = vadd.f32 %v7480_v62, %v7468_v17 }
 0x346   :  { %v7493_v63 = vpop.f32.mrf.mxu2  ;;  %v7469_v1 = vpop.f32.mrf.mxu0 }
 0x347   :  { %v7506_v0 = vpop.f32.mrf.mxu3  ;;  %v7482_v2 = vpop.f32.mrf.mxu1  ;;  %v7494_v26 = vadd.f32 %v7493_v63, %v7481_v23 }
 0x349   :  { %v7507_v31 = vadd.f32 %v7506_v0, %v7494_v26 }
 0x34e   :  { %v7495_v5 = vpop.f32.mrf.mxu2 }
 0x34f   :  { %v7508_v6 = vpop.f32.mrf.mxu3 }
 0x35e   :  { %v7519_v11 = vpop.f32.mrf.mxu0 }
 0x35f   :  { %v7532_v13 = vpop.f32.mrf.mxu1  ;;  %v7520_v33 = vadd.f32 %v7519_v11, %v7507_v31 }
 0x361   :  { %v7533_v34 = vadd.f32 %v7532_v13, %v7520_v33 }
 0x366   :  { %v7545_v16 = vpop.f32.mrf.mxu2  ;;  %v7521_v20 = vpop.f32.mrf.mxu0 }
 0x367   :  { %v7558_v18 = vpop.f32.mrf.mxu3  ;;  %v7534_v21 = vpop.f32.mrf.mxu1  ;;  %v7546_v35 = vadd.f32 %v7545_v16, %v7533_v34 }
 0x369   :  { %v7559_v36 = vadd.f32 %v7558_v18, %v7546_v35 }
 0x36e   :  { %v7547_v27 = vpop.f32.mrf.mxu2 }
 0x36f   :  { %v7560_v29 = vpop.f32.mrf.mxu3 }
 0x37e   :  { %v7571_v37 = vpop.f32.mrf.mxu0 }
 0x37f   :  { %v7584_v38 = vpop.f32.mrf.mxu1  ;;  %v7572_v39 = vadd.f32 %v7571_v37, %v7559_v36 }
 0x381   :  { %v7585_v40 = vadd.f32 %v7584_v38, %v7572_v39 }
 0x386   :  { %v7597_v41 = vpop.f32.mrf.mxu2  ;;  %v7573_v44 = vpop.f32.mrf.mxu0 }
 0x387   :  { %v7610_v42 = vpop.f32.mrf.mxu3  ;;  %v7598_v43 = vadd.f32 %v7597_v41, %v7585_v40  ;;  %v7586_v45 = vpop.f32.mrf.mxu1 }
 0x389   :  { %v7611_v46 = vadd.f32 %v7610_v42, %v7598_v43 }
 0x38b   :  { %v7614_v47 = vmax.f32 %v7611_v46, 0.0 }
 0x38d   :  { %10777 = vmatmul.msk.f32.vlgmr.msra.gmra.mxu0 %vm7630_vm2, %v7614_v47 }
 0x38e   :  { %v7599_v48 = vpop.f32.mrf.mxu2 }
 0x38f   :  { %v7612_v49 = vpop.f32.mrf.mxu3 }
 0x40a   :  { %v7655_v53 = vpop.f32.mrf.mxu0 }
 0x40b   :  { %v7656_v54 = vadd.f32 %v11549_v52, %v7655_v53 }
 0x40d   :  { %v7658_v55 = vmax.f32 %v7656_v54, 0.0 }
 0x40f   :  { %10779 = vmatmul.msk.f32.vlgmr.msra.gmra.mxu1 %vm7670_vm3, %v7658_v55 }
 0x48c   :  { %v7695_v57 = vpop.f32.mrf.mxu1 }
 0x48d   :  { %v7696_v58 = vadd.f32 %v11550_v56, %v7695_v57 }
 0x48f   :  { %7699 = vst.msk [vmem:[%s14310_s7] sm:$0xff] %vm7698_vm4, %v7696_v58 }

</bundles_post_ra>
